<compile_context>
chip_gen: v5e
topology: v5e:2x2
jax: 0.10.0
libtpu: 0.0.40
codegen_flags: <defaults>
</compile_context>

<pallas_src>
import jax
import jax.numpy as jnp
from jax import lax
from jax.experimental import pallas as pl
from jax.experimental.pallas import tpu as pltpu

# Small-but-consistent shapes (PyTorch used T=30, C=3, 256x256).
NUM_FRAMES = 4
C, H, W = 3, 16, 128

_TWO_PI = 6.283185307179586
_CHUNK_ROWS = 16          # rows of z1 (and of z2) written per inner iteration
_PAIR_ROWS = 2 * _CHUNK_ROWS


def _box_muller_pair(bits_u, bits_t):
    """Two 32-bit uniform draws -> two independent N(0,1) slabs (same shape).

    Exponent-bit trick builds floats in [1,2) (23 mantissa bits), so u1 is in
    (0,1] (log-safe).  The sin branch is replaced by a sign-randomized
    sqrt(1-cos^2); the sign comes from bit 23 of bits_t (unused by the
    mantissa), which is independent of cos(theta), so (z1, z2) has exactly the
    Box-Muller joint distribution.
    """
    v1 = lax.bitcast_convert_type((bits_u & 0x007FFFFF) | 0x3F800000, jnp.float32)
    v2 = lax.bitcast_convert_type((bits_t & 0x007FFFFF) | 0x3F800000, jnp.float32)
    u1 = 2.0 - v1                       # (0, 1]
    theta = _TWO_PI * (v2 - 1.0)        # 2*pi*u2, u2 in [0, 1)
    r = jnp.sqrt(-2.0 * jnp.log(u1))
    c = jnp.cos(theta)
    z1 = r * c
    sign = jnp.where((bits_t & 0x00800000) != 0, 1.0, -1.0).astype(jnp.float32)
    z2 = r * sign * jnp.sqrt(jnp.maximum(1.0 - c * c, 0.0))
    return z1, z2


def _noise_kernel_tpu(seed_ref, out_ref):
    """On-chip PRNG version: fills one (rows, W) frame-group block with N(0,1)."""
    # Mix the grid step into the seed: distinct stream per frame-group block
    # (required for correctness under "parallel" megacore sharding).
    pltpu.prng_seed(seed_ref[0] + pl.program_id(0))

    rows, lanes = out_ref.shape
    n_chunks = rows // _PAIR_ROWS

    def body(i, carry):
        base = pl.multiple_of(i * _PAIR_ROWS, _PAIR_ROWS)
        bits_u = pltpu.prng_random_bits((_CHUNK_ROWS, lanes))
        bits_t = pltpu.prng_random_bits((_CHUNK_ROWS, lanes))
        z1, z2 = _box_muller_pair(bits_u, bits_t)
        out_ref[pl.ds(base, _CHUNK_ROWS), :] = z1
        out_ref[pl.ds(base + _CHUNK_ROWS, _CHUNK_ROWS), :] = z2
        return carry

    unroll = True if n_chunks <= 8 else 8
    lax.fori_loop(0, n_chunks, body, None, unroll=unroll)


def _noise_kernel_portable(bits_ref, out_ref):
    """Fallback for non-TPU backends / interpret mode (no hardware PRNG):
    same Box-Muller math, uniform bits supplied as an input."""
    rows, _ = out_ref.shape
    half = rows // 2
    z1, z2 = _box_muller_pair(bits_ref[:half, :], bits_ref[half:, :])
    out_ref[:half, :] = z1
    out_ref[half:, :] = z2


def video_generator_forward(text_input, seed=0, num_frames=NUM_FRAMES,
                            frames_per_block=None):
    """JAX/Pallas equivalent of VideoGenerator.forward.

    Returns (1, num_frames, C, H, W) of standard-normal noise, matching the
    PyTorch module's output semantics (text_input is ignored by the reference
    forward, exactly as in the original code).
    """
    del text_input  # reference forward never uses it

    rows_per_frame = C * H
    total_rows = num_frames * rows_per_frame
    assert W % 128 == 0, "lane-dense output requires W % 128 == 0"

    # Auto-size frame groups so each output block is <= ~4 MiB: at the toy size
    # this is the whole video in one block; at T=30, 3x256x256 it becomes a
    # 6-step "parallel" grid that double-buffers safely even in v7x's scoped VMEM.
    if frames_per_block is None:
        frame_bytes = rows_per_frame * W * 4
        frames_per_block = max(1, min(num_frames, (4 << 20) // frame_bytes))
        while num_frames % frames_per_block:
            frames_per_block -= 1
    assert num_frames % frames_per_block == 0
    num_blocks = num_frames // frames_per_block
    rows_per_block = frames_per_block * rows_per_frame
    assert rows_per_block % _PAIR_ROWS == 0, "block rows must cover whole Box-Muller chunks"

    total_elems = total_rows * W
    cost = pl.CostEstimate(
        flops=10 * total_elems,
        transcendentals=2 * total_elems,
        bytes_accessed=4 * total_elems,
    )
    out_shape = jax.ShapeDtypeStruct((total_rows, W), jnp.float32)

    if jax.default_backend() == "tpu":
        seed_arr = jnp.array([seed], dtype=jnp.int32)
        frames_flat = pl.pallas_call(
            _noise_kernel_tpu,
            out_shape=out_shape,
            grid=(num_blocks,),
            in_specs=[pl.BlockSpec(memory_space=pltpu.MemorySpace.SMEM)],
            out_specs=pl.BlockSpec((rows_per_block, W), lambda i: (i, 0)),
            compiler_params=pltpu.CompilerParams(
                dimension_semantics=("parallel",),
            ),
            cost_estimate=cost,
        )(seed_arr)
    else:
        # Portable path (CPU / interpret): hardware PRNG primitives have no
        # lowering here, so feed uniform bits from jax.random instead.
        bits = jax.random.bits(jax.random.PRNGKey(seed), (total_rows, W),
                               dtype=jnp.uint32)
        frames_flat = pl.pallas_call(
            _noise_kernel_portable,
            out_shape=out_shape,
            cost_estimate=cost,
        )(bits)

    # Free layout plumbing on the wrapper side: (T*C*H, W) -> (1, T, C, H, W),
    # matching torch.stack([randn(1, C, H, W) for _ in range(T)], dim=1).
    return frames_flat.reshape(num_frames, C, H, W)[None]


if __name__ == "__main__":
    key = jax.random.PRNGKey(0)
    # Dummy "text" input (token ids); the forward pass ignores it, as in PyTorch.
    text_input = jax.random.randint(key, (1, 8), 0, 1000, dtype=jnp.int32)

    video = video_generator_forward(text_input, seed=0)
    video = jax.block_until_ready(video)

    assert video.shape == (1, NUM_FRAMES, C, H, W), video.shape
    assert video.dtype == jnp.float32
    # Sanity: noise should be roughly zero-mean / unit-variance.
    mean = float(jnp.mean(video))
    std = float(jnp.std(video))
    assert abs(mean) < 0.1, mean
    assert 0.8 < std < 1.2, std

    print("KERNEL_OK")
</pallas_src>

<mosaic_0001>
module attributes {stable_mosaic.version = 11 : i64} {
  func.func @_noise_kernel_portable(%arg0: memref<192x128xi32, #tpu.memory_space<vmem>>, %arg1: memref<192x128xf32, #tpu.memory_space<vmem>>) attributes {dimension_semantics = [], scalar_prefetch = 0 : i64, scratch_operands = 0 : i64, tpu.core_type = #tpu.core_type<tc>} {
    %c0 = arith.constant 0 : index
    %c0_0 = arith.constant 0 : index
    %0 = vector.load %arg0[%c0, %c0_0] : memref<192x128xi32, #tpu.memory_space<vmem>>, vector<96x128xi32>
    %c96 = arith.constant 96 : index
    %c0_1 = arith.constant 0 : index
    %1 = vector.load %arg0[%c96, %c0_1] : memref<192x128xi32, #tpu.memory_space<vmem>>, vector<96x128xi32>
    %c8388607_i32 = arith.constant 8388607 : i32
    %2 = vector.broadcast %c8388607_i32 : i32 to vector<96x128xi32>
    %3 = arith.andi %0, %2 : vector<96x128xi32>
    %c1065353216_i32 = arith.constant 1065353216 : i32
    %4 = vector.broadcast %c1065353216_i32 : i32 to vector<96x128xi32>
    %5 = arith.ori %3, %4 : vector<96x128xi32>
    %6 = tpu.bitcast %5 : vector<96x128xi32> -> vector<96x128xf32>
    %c8388607_i32_2 = arith.constant 8388607 : i32
    %7 = vector.broadcast %c8388607_i32_2 : i32 to vector<96x128xi32>
    %8 = arith.andi %1, %7 : vector<96x128xi32>
    %c1065353216_i32_3 = arith.constant 1065353216 : i32
    %9 = vector.broadcast %c1065353216_i32_3 : i32 to vector<96x128xi32>
    %10 = arith.ori %8, %9 : vector<96x128xi32>
    %11 = tpu.bitcast %10 : vector<96x128xi32> -> vector<96x128xf32>
    %cst = arith.constant 2.000000e+00 : f32
    %12 = vector.broadcast %cst : f32 to vector<96x128xf32>
    %13 = arith.subf %12, %6 : vector<96x128xf32>
    %cst_4 = arith.constant 1.000000e+00 : f32
    %14 = vector.broadcast %cst_4 : f32 to vector<96x128xf32>
    %15 = arith.subf %11, %14 : vector<96x128xf32>
    %cst_5 = arith.constant 6.28318548 : f32
    %16 = vector.broadcast %cst_5 : f32 to vector<96x128xf32>
    %17 = arith.mulf %16, %15 : vector<96x128xf32>
    %18 = math.log %13 : vector<96x128xf32>
    %cst_6 = arith.constant -2.000000e+00 : f32
    %19 = vector.broadcast %cst_6 : f32 to vector<96x128xf32>
    %20 = arith.mulf %19, %18 : vector<96x128xf32>
    %21 = math.sqrt %20 : vector<96x128xf32>
    %22 = math.cos %17 : vector<96x128xf32>
    %23 = arith.mulf %21, %22 : vector<96x128xf32>
    %c8388608_i32 = arith.constant 8388608 : i32
    %24 = vector.broadcast %c8388608_i32 : i32 to vector<96x128xi32>
    %25 = arith.andi %1, %24 : vector<96x128xi32>
    %c0_i32 = arith.constant 0 : i32
    %26 = vector.broadcast %c0_i32 : i32 to vector<96x128xi32>
    %27 = arith.cmpi ne, %25, %26 : vector<96x128xi32>
    %cst_7 = arith.constant 1.000000e+00 : f32
    %cst_8 = arith.constant -1.000000e+00 : f32
    %28 = vector.broadcast %cst_7 : f32 to vector<96x128xf32>
    %29 = vector.broadcast %cst_8 : f32 to vector<96x128xf32>
    %30 = arith.select %27, %28, %29 : vector<96x128xi1>, vector<96x128xf32>
    %31 = arith.mulf %21, %30 : vector<96x128xf32>
    %32 = arith.mulf %22, %22 : vector<96x128xf32>
    %cst_9 = arith.constant 1.000000e+00 : f32
    %33 = vector.broadcast %cst_9 : f32 to vector<96x128xf32>
    %34 = arith.subf %33, %32 : vector<96x128xf32>
    %cst_10 = arith.constant 0.000000e+00 : f32
    %35 = vector.broadcast %cst_10 : f32 to vector<96x128xf32>
    %36 = arith.maximumf %34, %35 : vector<96x128xf32>
    %37 = math.sqrt %36 : vector<96x128xf32>
    %38 = arith.mulf %31, %37 : vector<96x128xf32>
    %c0_11 = arith.constant 0 : index
    %c0_12 = arith.constant 0 : index
    %39 = vector.load %arg1[%c0_11, %c0_12] : memref<192x128xf32, #tpu.memory_space<vmem>>, vector<96x128xf32>
    tpu.vector_store %arg1[%c0_11, %c0_12], %23 {strides = array<i32>} : memref<192x128xf32, #tpu.memory_space<vmem>>, vector<96x128xf32>,
    %c96_13 = arith.constant 96 : index
    %c0_14 = arith.constant 0 : index
    %40 = vector.load %arg1[%c96_13, %c0_14] : memref<192x128xf32, #tpu.memory_space<vmem>>, vector<96x128xf32>
    tpu.vector_store %arg1[%c96_13, %c0_14], %38 {strides = array<i32>} : memref<192x128xf32, #tpu.memory_space<vmem>>, vector<96x128xf32>,
    return
  }
}

</mosaic_0001>

<bundles_post_ra>
// kernel: tpu_custom_call.1
= control target key start
LH: loop header
LB: loop body
LE: loop exit
PB: predicated region body
PF: predicated region fallthrough
CT: control target
= control target key end

     0   :  { %6 = vsyncpa [#allocation3], 0  ;;  %s5540_s0 = inlined_call_operand.hbm [shape: u32[192,128], index: 0, kind: input, shape index: {}]   ;;  %s5541_s1 = inlined_call_operand.hbm [shape: f32[192,128], index: 1, kind: output, shape index: {}]  }
   0x1   :  { %7 = vsyncpa [#allocation4], 0  ;;  %s12_s8 = sshll.u32 %s5540_s0, 4  ;;  %s2676_s9 = smov [#allocation2]   ;;  %s13_s8 = int_to_ptr.hbm [resolvable:$true] %s12_s8 }
   0x2   :  { %s14_s10 = sshll.u32 %s2676_s9, 4  ;;  %s2677_s11 = smov 128   ;;  %s15_s10 = int_to_ptr.vmem [resolvable:$true] %s14_s10 }
   0x3   :  { %s2678_s12 = smov 8  }
   0x4   :  { %20 = dma.hbm_to_vmem [thread:$0]  %s13_s8, 3072, %s15_s10, [#allocation3], %s2677_s11, %s2677_s11, %s2678_s12  }
   0x5   :  { %2672 = dma.done.wait [#allocation3], 3072  }
   0x6   :  { %2673 = vsyncadd [#allocation3], 4294964224  ;;  %v37_v0 = vld [vmem:[#allocation2 + $0x60] sm:$0xff]  ;;  %v26_v6 = vld [vmem:[#allocation2 + $0x8] sm:$0xff]  ;;  %s2687_s0 = smov [#allocation5]   ;;  %s2467_s16 = sshll.u32 %s5541_s1, 4  ;;  %s2468_s16 = int_to_ptr.hbm [resolvable:$true] %s2467_s16 }
   0x7   :  { %v85_v1 = vand.u32 8388607, %v37_v0  ;;  %v25_v5 = vld [vmem:[#allocation2] sm:$0xff]  ;;  %v27_v7 = vld [vmem:[#allocation2 + $0x10] sm:$0xff]  ;;  %v28_v8 = vld [vmem:[#allocation2 + $0x18] sm:$0xff]  ;;  %s2465_s13 = sshll.u32 %s2687_s0, 4  ;;  %s2466_s13 = int_to_ptr.vmem [resolvable:$true] %s2465_s13 }
   0x8   :  { %v49_v9 = vand.u32 8388607, %v25_v5  ;;  %v29_v11 = vld [vmem:[#allocation2 + $0x20] sm:$0xff]  ;;  %v30_v12 = vld [vmem:[#allocation2 + $0x28] sm:$0xff]  ;;  %v31_v13 = vld [vmem:[#allocation2 + $0x30] sm:$0xff] }
   0x9   :  { %v97_v2 = vor.u32 1065353216, %v85_v1  ;;  %v32_v14 = vld [vmem:[#allocation2 + $0x38] sm:$0xff]  ;;  %v33_v15 = vld [vmem:[#allocation2 + $0x40] sm:$0xff]  ;;  %v50_v16 = vand.u32 8388607, %v26_v6  ;;  %v34_v19 = vld [vmem:[#allocation2 + $0x48] sm:$0xff] }
   0xa   :  { %v51_v17 = vand.u32 8388607, %v27_v7  ;;  %v52_v18 = vand.u32 8388607, %v28_v8  ;;  %v35_v20 = vld [vmem:[#allocation2 + $0x50] sm:$0xff]  ;;  %v36_v21 = vld [vmem:[#allocation2 + $0x58] sm:$0xff] }
   0xb   :  { %v2480_v3 = vadd.f32 -1.0, %v97_v2  ;;  %v2707_v22 = vor.u32 1065353216, %v49_v9  ;;  %v38_v24 = vld [vmem:[#allocation2 + $0x68] sm:$0xff]  ;;  %v39_v25 = vld [vmem:[#allocation2 + $0x70] sm:$0xff]  ;;  %v53_v26 = vand.u32 8388607, %v29_v11 }
   0xc   :  { %v54_v27 = vand.u32 8388607, %v30_v12  ;;  %v40_v28 = vld [vmem:[#allocation2 + $0x78] sm:$0xff]  ;;  %v41_v29 = vld [vmem:[#allocation2 + $0x80] sm:$0xff]  ;;  %v55_v30 = vand.u32 8388607, %v31_v13 }
   0xd   :  { %v2704_v4 = vmul.f32 6.2831855, %v2480_v3  ;;  %v56_v31 = vand.u32 8388607, %v32_v14  ;;  %v42_v32 = vld [vmem:[#allocation2 + $0x88] sm:$0xff]  ;;  %v43_v33 = vld [vmem:[#allocation2 + $0x90] sm:$0xff] }
   0xe   :  { %v44_v34 = vld [vmem:[#allocation2 + $0x98] sm:$0xff]  ;;  %v2709_v35 = vor.u32 1065353216, %v50_v16  ;;  %v2711_v36 = vor.u32 1065353216, %v51_v17  ;;  %v2713_v37 = vor.u32 1065353216, %v52_v18  ;;  %v45_v38 = vld [vmem:[#allocation2 + $0xa0] sm:$0xff]  ;;  %v46_v39 = vld [vmem:[#allocation2 + $0xa8] sm:$0xff] }
   0xf   :  { %5638 = vst [vmem:[#allocation8_spill] sm:$0xff] %v2704_v4  ;;  %v340_v10 = vand.u32 2139095040, %v2704_v4  ;;  %v47_v40 = vld [vmem:[#allocation2 + $0xb0] sm:$0xff]  ;;  %v57_v41 = vand.u32 8388607, %v33_v15  ;;  %v48_v44 = vld [vmem:[#allocation2 + $0xb8] sm:$0xff] }
  0x10   :  { %v58_v42 = vand.u32 8388607, %v34_v19  ;;  %v59_v45 = vand.u32 8388607, %v35_v20  ;;  %v60_v46 = vand.u32 8388607, %v36_v21 }
  0x11   :  { %v341_v23 = vshrl.u32 %v340_v10, 23  ;;  %v2715_v47 = vor.u32 1065353216, %v53_v26  ;;  %v2717_v48 = vor.u32 1065353216, %v54_v27  ;;  %v2719_v49 = vor.u32 1065353216, %v55_v30 }
  0x12   :  { %v2721_v50 = vor.u32 1065353216, %v56_v31  ;;  %v86_v51 = vand.u32 8388607, %v38_v24  ;;  %v87_v52 = vand.u32 8388607, %v39_v25  ;;  %v2723_v56 = vor.u32 1065353216, %v57_v41 }
  0x13   :  { %v2492_v43 = vadd.s32 4294967169, %v341_v23  ;;  %v88_v53 = vand.u32 8388607, %v40_v28  ;;  %v89_v54 = vand.u32 8388607, %v41_v29  ;;  %v2725_v63 = vor.u32 1065353216, %v58_v42 }
  0x14   :  { %v90_v55 = vand.u32 8388607, %v42_v32  ;;  %v91_v57 = vand.u32 8388607, %v43_v33  ;;  %v92_v58 = vand.u32 8388607, %v44_v34 }
  0x15   :  { %v347_v59 = vadd.s32 1, %v2492_v43  ;;  %v93_v60 = vand.u32 8388607, %v45_v38  ;;  %v94_v61 = vand.u32 8388607, %v46_v39  ;;  %v2727_v0 = vor.u32 1065353216, %v59_v45 }
  0x16   :  { %v95_v62 = vand.u32 8388607, %v47_v40  ;;  %v2729_v1 = vor.u32 1065353216, %v60_v46  ;;  %v96_v2 = vand.u32 8388607, %v48_v44  ;;  %v98_v3 = vor.u32 1065353216, %v86_v51 }
  0x17   :  { %v99_v5 = vor.u32 1065353216, %v87_v52  ;;  %v100_v6 = vor.u32 1065353216, %v88_v53  ;;  %v101_v7 = vor.u32 1065353216, %v89_v54  ;;  %v2731_v8 = vor.u32 1065353216, %v90_v55 }
  0x18   :  { %v2733_v9 = vor.u32 1065353216, %v91_v57  ;;  %v2735_v10 = vor.u32 1065353216, %v92_v58  ;;  %vm348_vm0 = vcmp.gt.s32.totalorder %v347_v59, 0  ;;  %v2737_v11 = vor.u32 1065353216, %v93_v60 }
  0x19   :  { %v2739_v12 = vor.u32 1065353216, %v94_v61  ;;  %v2741_v13 = vor.u32 1065353216, %v95_v62  ;;  %v349_v14 = vsel %vm348_vm0, %v347_v59, 0  ;;  %v2743_v15 = vor.u32 1065353216, %v96_v2 }
  0x1a   :  { %v121_v16 = vsub.f32 2.0, %v2707_v22  ;;  %v351_v17 = vand.u32 31, %v349_v14  ;;  %v122_v18 = vsub.f32 2.0, %v2709_v35  ;;  %v123_v19 = vsub.f32 2.0, %v2711_v36 }
  0x1b   :  { %v124_v20 = vsub.f32 2.0, %v2713_v37  ;;  %v125_v21 = vsub.f32 2.0, %v2715_v47  ;;  %v126_v24 = vsub.f32 2.0, %v2717_v48  ;;  %v5542_v25 = vand.u32 2147483647, %v2704_v4 }
  0x1c   :  { %v2750_v23 = vsub.s32 32, %v351_v17  ;;  %v5555_v26 = vmov 2102212464   ;;  %v127_v22 = vsub.f32 2.0, %v2719_v49  ;;  %v2756_v28 = vshrl.u32 %v349_v14, 5 }
  0x1d   :  { %v363_v27 = vshll.u32 %v5555_v26, %v351_v17  ;;  %v5550_v29 = vmov 2475754826   ;;  %v5553_v31 = vmov 2131351028   ;;  %v5545_v35 = vmov 920167782  }
  0x1e   :  { %v357_v30 = vshll.u32 %v5550_v29, %v351_v17  ;;  %v360_v32 = vshll.u32 %v5553_v31, %v351_v17  ;;  %v358_v33 = vshrl.u32 %v5553_v31, %v2750_v23  ;;  %v361_v34 = vshrl.u32 %v5555_v26, %v2750_v23 }
  0x1f   :  { %v364_v36 = vshrl.u32 %v5545_v35, %v2750_v23  ;;  %v366_v37 = vshll.u32 %v5545_v35, %v351_v17  ;;  %v128_v38 = vsub.f32 2.0, %v2721_v50  ;;  %v5548_v39 = vmov 683565275  }
  0x20   :  { %v354_v40 = vshll.u32 %v5548_v39, %v351_v17  ;;  %v355_v41 = vshrl.u32 %v5550_v29, %v2750_v23  ;;  %v129_v42 = vsub.f32 2.0, %v2723_v56  ;;  %v344_v43 = vand.u32 8388607, %v5542_v25 }
  0x21   :  { %v365_v44 = vor.u32 %v364_v36, %v363_v27  ;;  %v5543_v45 = vmov 1326507024   ;;  %v130_v51 = vsub.f32 2.0, %v2725_v63  ;;  %v131_v52 = vsub.f32 2.0, %v2727_v0 }
  0x22   :  { %v367_v46 = vshrl.u32 %v5543_v45, %v2750_v23  ;;  %v2481_v53 = vadd.f32 -1.0, %v98_v3  ;;  %vm372_vm1 = vcmp.lt.s32.totalorder %v2756_v28, 4  ;;  %v132_v54 = vsub.f32 2.0, %v2729_v1 }
  0x23   :  { %v2780_v55 = vor.u32 %v358_v33, %v357_v30  ;;  %v2782_v57 = vor.u32 %v361_v34, %v360_v32  ;;  %v2482_v59 = vadd.f32 -1.0, %v99_v5  ;;  %v2784_v60 = vor.u32 %v355_v41, %v354_v40 }
  0x24   :  { %v368_v58 = vor.u32 %v367_v46, %v366_v37  ;;  %vm369_vm2 = vcmp.lt.s32.totalorder %v2756_v28, 1  ;;  %vm371_vm3 = vcmp.lt.s32.totalorder %v2756_v28, 3  ;;  %v2483_v61 = vadd.f32 -1.0, %v100_v6 }
  0x25   :  { %2540 = vlog2.f32 %v121_v16  ;;  %v345_v62 = vor.u32 8388608, %v344_v43  ;;  %v378_v2 = vsel %vm372_vm1, %v365_v44, 920167782  ;;  %v2484_v3 = vadd.f32 -1.0, %v101_v7 }
  0x26   :  { %v2790_v14 = vmul.f32 6.2831855, %v2481_v53  ;;  %2542 = vlog2.f32 %v122_v18  ;;  %v382_v17 = vsel %vm372_vm1, %v368_v58, 1326507024  ;;  %vm370_vm4 = vcmp.lt.s32.totalorder %v2756_v28, 2 }
  0x27   :  { %2544 = vlog2.f32 %v123_v19  ;;  %v381_v5 = vsel %vm369_vm2, %v2780_v55, %v2782_v57  ;;  %v383_v6 = vsel %vm371_vm3, %v365_v44, %v382_v17  ;;  %v2485_v16 = vadd.f32 -1.0, %v2731_v8 }
  0x28   :  { %5639 = vst [vmem:[#allocation9_spill] sm:$0xff] %v2790_v14  ;;  %v2486_v7 = vadd.f32 -1.0, %v2733_v9  ;;  %v377_v18 = vsel %vm369_vm2, %v2784_v60, %v2780_v55  ;;  %v379_v19 = vsel %vm371_vm3, %v2782_v57, %v378_v2  ;;  %v2487_v27 = vadd.f32 -1.0, %v2735_v10 }
  0x29   :  { %v2488_v30 = vadd.f32 -1.0, %v2737_v11  ;;  %v2489_v32 = vadd.f32 -1.0, %v2739_v12  ;;  %v2813_v33 = vshll.u32 %v345_v62, 8  ;;  %v2490_v8 = vadd.f32 -1.0, %v2741_v13 }
  0x2a   :  { %v2491_v9 = vadd.f32 -1.0, %v2743_v15  ;;  %2546 = vlog2.f32 %v124_v20  ;;  %v2819_v34 = vsel %vm370_vm4, %v381_v5, %v383_v6  ;;  %v2821_v37 = vmul.f32 6.2831855, %v2482_v59 }
  0x2b   :  { %v2541_v36 = vpop.eup %2540  ;;  %2548 = vlog2.f32 %v125_v21  ;;  %v2827_v10 = vsel %vm370_vm4, %v377_v18, %v379_v19  ;;  %v494_v11 = vand.u32 2139095040, %v2790_v14  ;;  %v2830_v13 = vmul.f32 6.2831855, %v2483_v61 }
  0x2c   :  { %5640 = vst [vmem:[#allocation10_spill] sm:$0xff] %v2821_v37  ;;  %v2543_v12 = vpop.eup %2542  ;;  %v2832_v15 = vmul.f32 6.2831855, %v2484_v3  ;;  %v2834_v20 = vmul.f32 6.2831855, %v2485_v16  ;;  %2550 = vlog2.f32 %v126_v24  ;;  %v386_v47 = vand.u32 65535, %v2813_v33 }
  0x2d   :  { %5641 = vst [vmem:[#allocation11_spill] sm:$0xff] %v2830_v13  ;;  %v2545_v40 = vpop.eup %2544  ;;  %v2836_v41 = vmul.f32 6.2831855, %v2486_v7  ;;  %v389_v21 = vshrl.u32 %v2819_v34, 16  ;;  %v2842_v43 = vmul.f32 6.2831855, %v2487_v27  ;;  %2552 = vlog2.f32 %v127_v22 }
  0x2e   :  { %5642 = vst [vmem:[#allocation12_spill] sm:$0xff] %v2832_v15  ;;  %v2844_v44 = vmul.f32 6.2831855, %v2488_v30  ;;  %v411_v46 = vshrl.u32 %v2827_v10, 16  ;;  %v2849_v53 = vmul.f32 6.2831855, %v2489_v32  ;;  %2554 = vlog2.f32 %v128_v38 }
  0x2f   :  { %5643 = vst [vmem:[#allocation13_spill] sm:$0xff] %v2834_v20  ;;  %v158_v58 = vmul.f32 0.6931472, %v2541_v36  ;;  %v495_v48 = vshrl.u32 %v494_v11, 23  ;;  %v2853_v59 = vmul.f32 6.2831855, %v2490_v8  ;;  %2556 = vlog2.f32 %v129_v42 }
  0x30   :  { %5644 = vst [vmem:[#allocation14_spill] sm:$0xff] %v2836_v41  ;;  %v2547_v24 = vpop.eup %2546  ;;  %v160_v61 = vmul.f32 0.6931472, %v2543_v12  ;;  %v162_v62 = vmul.f32 0.6931472, %v2545_v40  ;;  %v387_v49 = vshrl.u32 %v2813_v33, 16  ;;  %v2859_v3 = vmul.u32 %v389_v21, %v386_v47 }
  0x31   :  { %5645 = vst [vmem:[#allocation15_spill] sm:$0xff] %v2842_v43  ;;  %v2549_v2 = vpop.eup %2548  ;;  %v388_v22 = vand.u32 65535, %v2819_v34  ;;  %v2495_v17 = vadd.s32 4294967169, %v495_v48  ;;  %v2861_v5 = vmul.f32 6.2831855, %v2491_v9  ;;  %2558 = vlog2.f32 %v130_v51 }
  0x32   :  { %5646 = vst [vmem:[#allocation16_spill] sm:$0xff] %v2844_v44  ;;  %v410_v50 = vand.u32 65535, %v2827_v10  ;;  %v2868_v38 = vmul.u32 %v411_v46, %v386_v47  ;;  %v2551_v56 = vpop.eup %2550  ;;  %v164_v42 = vmul.f32 0.6931472, %v2547_v24  ;;  %2560 = vlog2.f32 %v131_v52 }
  0x33   :  { %5647 = vst [vmem:[#allocation17_spill] sm:$0xff] %v2849_v53  ;;  %v2872_v6 = vmul.f32 -2.0, %v158_v58  ;;  %v501_v16 = vadd.s32 1, %v2495_v17  ;;  %v2553_v7 = vpop.eup %2552  ;;  %v166_v18 = vmul.f32 0.6931472, %v2549_v2  ;;  %2562 = vlog2.f32 %v132_v54 }
  0x34   :  { %5648 = vst [vmem:[#allocation18_spill] sm:$0xff] %v2853_v59  ;;  %v2876_v63 = vmul.f32 -2.0, %v160_v61  ;;  %v2878_v51 = vmul.f32 -2.0, %v162_v62  ;;  %v2555_v19 = vpop.eup %2554  ;;  %v390_v27 = vmul.u32 %v388_v22, %v386_v47  ;;  %v2880_v30 = vmul.u32 %v388_v22, %v387_v49 }
  0x35   :  { %5649 = vst [vmem:[#allocation19_spill] sm:$0xff] %v2861_v5  ;;  %v394_v32 = vshll.u32 %v2859_v3, 16  ;;  %vm502_vm5 = vcmp.gt.s32.totalorder %v501_v16, 0  ;;  %v2557_v0 = vpop.eup %2556  ;;  %v168_v52 = vmul.f32 0.6931472, %v2551_v56  ;;  %v412_v8 = vmul.u32 %v410_v50, %v386_v47 }
  0x36   :  { %v416_v9 = vshll.u32 %v2868_v38, 16  ;;  %v503_v34 = vsel %vm502_vm5, %v501_v16, 0  ;;  %v2884_v36 = vmul.f32 -2.0, %v164_v42  ;;  %2564 = vrsqrt.f32 %v2872_v6 }
  0x37   :  { %v2887_v1 = vmul.u32 %v410_v50, %v387_v49  ;;  %v505_v54 = vand.u32 31, %v503_v34  ;;  %v2559_v11 = vpop.eup %2558  ;;  %v170_v12 = vmul.f32 0.6931472, %v2553_v7  ;;  %v2889_v40 = vmul.f32 -2.0, %v166_v18 }
  0x38   :  { %2566 = vrsqrt.f32 %v2876_v63  ;;  %v2561_v48 = vpop.eup %2560  ;;  %v396_v47 = vshll.u32 %v2880_v30, 16  ;;  %vm398_vm6 = vc.u32 %v390_v27, %v394_v32  ;;  %v400_v24 = vadd.s32 %v394_v32, %v390_v27 }
  0x39   :  { %v2894_v61 = vpop.eup %2562  ;;  %v172_v62 = vmul.f32 0.6931472, %v2555_v19  ;;  %v2896_v2 = vmul.f32 -2.0, %v168_v52  ;;  %vm420_vm7 = vc.u32 %v412_v8, %v416_v9  ;;  %v2898_v22 = vsub.s32 32, %v505_v54 }
  0x3a   :  { %v174_v17 = vmul.f32 0.6931472, %v2557_v0  ;;  %v393_v50 = vmul.u32 %v389_v21, %v387_v49  ;;  %v5547_v56 = vshll.u32 %v2887_v1, 16  ;;  %v2901_v42 = vadd.s32 %v416_v9, %v412_v8 }
  0x3b   :  { %v2903_v16 = vmul.f32 -2.0, %v170_v12  ;;  %v5557_v18 = vmov 0   ;;  %v415_v19 = vmul.u32 %v411_v46, %v387_v49  ;;  %v176_v52 = vmul.f32 0.6931472, %v2559_v11 }
  0x3c   :  { %v399_v27 = vsel %vm398_vm6, 1, %v5557_v18  ;;  %v2909_v32 = vpop.eup %2564  ;;  %2568 = vrsqrt.f32 %v2878_v51  ;;  %vm402_vm8 = vc.u32 %v400_v24, %v396_v47  ;;  %v421_v21 = vsel %vm420_vm7, 1, %v5557_v18 }
  0x3d   :  { %v517_v8 = vshll.u32 %v5555_v26, %v505_v54  ;;  %v518_v9 = vshrl.u32 %v5545_v35, %v2898_v22  ;;  %v520_v12 = vshll.u32 %v5545_v35, %v505_v54  ;;  %v521_v10 = vshrl.u32 %v5543_v45, %v2898_v22 }
  0x3e   :  { %v2913_v0 = vpop.eup %2566  ;;  %v401_v46 = vadd.s32 %v399_v27, %v393_v50  ;;  %vm424_vm9 = vc.u32 %v2901_v42, %v5547_v56  ;;  %v5559_v49 = vand.u32 2147483647, %v2790_v14  ;;  %v2925_v11 = vshrl.u32 %v503_v34, 5 }
  0x3f   :  { %v403_v47 = vsel %vm402_vm8, 1, %v5557_v18  ;;  %v423_v24 = vadd.s32 %v421_v21, %v415_v19  ;;  %v508_v25 = vshll.u32 %v5548_v39, %v505_v54  ;;  %v511_v7 = vshll.u32 %v5550_v29, %v505_v54 }
  0x40   :  { %v509_v58 = vshrl.u32 %v5550_v29, %v2898_v22  ;;  %v512_v50 = vshrl.u32 %v5553_v31, %v2898_v22  ;;  %v514_v27 = vshll.u32 %v5553_v31, %v505_v54  ;;  %v515_v45 = vshrl.u32 %v5555_v26, %v2898_v22 }
  0x41   :  { %v2937_v34 = vmul.f32 -2.0, %v172_v62  ;;  %v425_v35 = vsel %vm424_vm9, 1, %v5557_v18  ;;  %v519_v19 = vor.u32 %v518_v9, %v517_v8  ;;  %v522_v21 = vor.u32 %v521_v10, %v520_v12 }
  0x42   :  { %v2940_v56 = vpop.eup %2568  ;;  %v178_v39 = vmul.f32 0.6931472, %v2561_v48  ;;  %v498_v29 = vand.u32 8388607, %v5559_v49  ;;  %vm526_vm10 = vcmp.lt.s32.totalorder %v2925_v11, 4  ;;  %v648_v5 = vand.u32 2139095040, %v2821_v37 }
  0x43   :  { %v2946_v54 = vmul.f32 -2.0, %v174_v17  ;;  %v395_v31 = vshrl.u32 %v2859_v3, 16  ;;  %v405_v62 = vadd.s32 %v403_v47, %v401_v46  ;;  %v417_v26 = vshrl.u32 %v2868_v38, 16 }
  0x44   :  { %v427_v18 = vadd.s32 %v425_v35, %v423_v24  ;;  %v2950_v8 = vor.u32 %v509_v58, %v508_v25  ;;  %v2952_v9 = vor.u32 %v512_v50, %v511_v7  ;;  %v2954_v48 = vor.u32 %v515_v45, %v514_v27 }
  0x45   :  { %vm523_vm11 = vcmp.lt.s32.totalorder %v2925_v11, 1  ;;  %vm525_vm12 = vcmp.lt.s32.totalorder %v2925_v11, 3  ;;  %v532_v17 = vsel %vm526_vm10, %v519_v19, 920167782  ;;  %v536_v3 = vsel %vm526_vm10, %v522_v21, 1326507024 }
  0x46   :  { %2570 = vrsqrt.f32 %v2884_v36  ;;  %v499_v25 = vor.u32 8388608, %v498_v29  ;;  %v649_v35 = vshrl.u32 %v648_v5, 23  ;;  %v194_v45 = vmul.f32 %v2909_v32, %v2872_v6 }
  0x47   :  { %v206_v38 = vmul.f32 %v2913_v0, %v2876_v63  ;;  %v5650_v58 = vmov 683565275   ;;  %vm524_vm13 = vcmp.lt.s32.totalorder %v2925_v11, 2  ;;  %v531_v10 = vsel %vm523_vm11, %v2950_v8, %v2952_v9 }
  0x48   :  { %v353_v7 = vshrl.u32 %v5650_v58, %v2750_v23  ;;  %v533_v29 = vsel %vm525_vm12, %v2954_v48, %v532_v17  ;;  %v535_v5 = vsel %vm523_vm11, %v2952_v9, %v2954_v48  ;;  %v537_v46 = vsel %vm525_vm12, %v519_v19, %v536_v3 }
  0x49   :  { %v397_v23 = vshrl.u32 %v2880_v30, 16  ;;  %v406_v47 = vadd.s32 %v405_v62, %v395_v31  ;;  %v419_v24 = vshrl.u32 %v2887_v1, 16  ;;  %v428_v50 = vadd.s32 %v427_v18, %v417_v26 }
  0x4a   :  { %v180_v27 = vmul.f32 0.6931472, %v2894_v61  ;;  %v374_v21 = vsel %vm372_vm1, %v2782_v57, 2102212464  ;;  %v2990_v17 = vshll.u32 %v499_v25, 8  ;;  %v2498_v49 = vadd.s32 4294967169, %v649_v35 }
  0x4b   :  { %v2992_v12 = vmul.f32 -2.0, %v176_v52  ;;  %v195_v59 = vmul.f32 %v2909_v32, %v194_v45  ;;  %v2997_v30 = vsel %vm524_vm13, %v531_v10, %v533_v29  ;;  %v3001_v26 = vsel %vm524_vm13, %v535_v5, %v537_v46 }
  0x4c   :  { %v3003_v31 = vpop.eup %2570  ;;  %v207_v61 = vmul.f32 %v2913_v0, %v206_v38  ;;  %v218_v57 = vmul.f32 %v2940_v56, %v2878_v51  ;;  %2572 = vrsqrt.f32 %v2889_v40  ;;  %v373_v18 = vsel %vm369_vm2, %v353_v7, %v2784_v60 }
  0x4d   :  { %5651 = vst [vmem:[#allocation20_spill] sm:$0xff] %v2992_v12  ;;  %v375_v52 = vsel %vm371_vm3, %v2780_v55, %v374_v21  ;;  %v3015_v19 = vadd.s32 %v406_v47, %v397_v23  ;;  %v5653_v62 = vshll.u32 %v2887_v1, 16  ;;  %v429_v25 = vadd.s32 %v428_v50, %v419_v24 }
  0x4e   :  { %v540_v35 = vand.u32 65535, %v2990_v17  ;;  %v543_v45 = vshrl.u32 %v3001_v26, 16  ;;  %v5561_v38 = vshrl.u32 %v2997_v30, 16  ;;  %v655_v10 = vadd.s32 1, %v2498_v49 }
  0x4f   :  { %5652 = vst [vmem:[#allocation21_spill] sm:$0xff] %v3015_v19  ;;  %v3020_v3 = vadd.s32 %v2901_v42, %v5653_v62  ;;  %v3025_v60 = vmul.f32 -2.0, %v178_v39  ;;  %v3027_v7 = vmul.f32 -2.0, %v180_v27  ;;  %v196_v55 = vmul.f32 0.5, %v195_v59 }
  0x50   :  { %v208_v5 = vmul.f32 0.5, %v207_v61  ;;  %v219_v1 = vmul.f32 %v2940_v56, %v218_v57  ;;  %v376_v46 = vsel %vm370_vm4, %v373_v18, %v375_v52  ;;  %v433_v23 = vadd.s32 1, %v429_v25 }
  0x51   :  { %5654 = vst [vmem:[#allocation22_spill] sm:$0xff] %v3020_v3  ;;  %v541_v47 = vshrl.u32 %v2990_v17, 16  ;;  %v542_v49 = vand.u32 65535, %v3001_v26  ;;  %v564_v39 = vand.u32 65535, %v2997_v30  ;;  %vm432_vm14 = vc.u32 %v3015_v19, %v3020_v3 }
  0x52   :  { %5655 = vst [vmem:[#allocation23_spill] sm:$0xff] %v3025_v60  ;;  %v3037_v24 = vpop.eup %2572  ;;  %v3041_v59 = vmul.u32 %v543_v45, %v540_v35  ;;  %v3045_v50 = vmul.u32 %v5561_v38, %v540_v35  ;;  %vm656_vm15 = vcmp.gt.s32.totalorder %v655_v10, 0  ;;  %v197_v28 = vsub.f32 1.5, %v196_v55 }
  0x53   :  { %5656 = vst [vmem:[#allocation24_spill] sm:$0xff] %v3027_v7  ;;  %v230_v27 = vmul.f32 %v3003_v31, %v2884_v36  ;;  %2574 = vrsqrt.f32 %v2896_v2  ;;  %vm200_vm0 = vcmp.eq.f32.partialorder %v2872_v6, inf  ;;  %v209_v26 = vsub.f32 1.5, %v208_v5 }
  0x54   :  { %v220_v61 = vmul.f32 0.5, %v219_v1  ;;  %2576 = vrsqrt.f32 %v2903_v16  ;;  %v430_v57 = vmul.u32 %v2813_v33, %v376_v46  ;;  %v434_v18 = vsel %vm432_vm14, %v433_v23, %v429_v25 }
  0x55   :  { %v3054_v52 = vmul.u32 %v542_v49, %v541_v47  ;;  %v566_v62 = vmul.u32 %v564_v39, %v540_v35  ;;  %v657_v55 = vsel %vm656_vm15, %v655_v10, 0  ;;  %v544_v42 = vmul.u32 %v542_v49, %v540_v35 }
  0x56   :  { %v548_v29 = vshll.u32 %v3041_v59, 16  ;;  %v3057_v38 = vmul.u32 %v564_v39, %v541_v47  ;;  %v570_v21 = vshll.u32 %v3045_v50, 16  ;;  %v198_v53 = vmul.f32 %v2909_v32, %v197_v28 }
  0x57   :  { %v231_v5 = vmul.f32 %v3003_v31, %v230_v27  ;;  %v242_v1 = vmul.f32 %v3037_v24, %v2889_v40  ;;  %2578 = vrsqrt.f32 %v2937_v34  ;;  %v3067_v35 = vadd.s32 %v434_v18, %v430_v57 }
  0x58   :  { %v659_v10 = vand.u32 31, %v657_v55  ;;  %v210_v23 = vmul.f32 %v2913_v0, %v209_v26  ;;  %v221_v49 = vsub.f32 1.5, %v220_v61  ;;  %2580 = vrsqrt.f32 %v2946_v54 }
  0x59   :  { %v3069_v46 = vpop.eup %2574  ;;  %v550_v32 = vshll.u32 %v3054_v52, 16  ;;  %vm552_vm1 = vc.u32 %v544_v42, %v548_v29  ;;  %v554_v28 = vadd.s32 %v548_v29, %v544_v42  ;;  %v3077_v33 = vadd.s32 %v570_v21, %v566_v62 }
  0x5a   :  { %v3074_v39 = vpop.eup %2576  ;;  %v199_v57 = vmul.f32 %v198_v53, %v2872_v6  ;;  %v3080_v18 = vmul.f32 0.5, %v231_v5  ;;  %v243_v25 = vmul.f32 %v3037_v24, %v242_v1  ;;  %vm574_vm2 = vc.u32 %v566_v62, %v570_v21 }
  0x5b   :  { %v254_v0 = vmul.f32 %v3069_v46, %v2896_v2  ;;  %v436_v26 = vadd.s32 536870912, %v3067_v35  ;;  %v547_v61 = vmul.u32 %v543_v45, %v541_v47  ;;  %v3086_v44 = vsub.s32 32, %v659_v10 }
  0x5c   :  { %v211_v29 = vmul.f32 %v210_v23, %v2876_v63  ;;  %v5658_v27 = vmov 0   ;;  %v5659_v53 = vshrl.u32 %v2997_v30, 16  ;;  %v222_v21 = vmul.f32 %v2940_v56, %v221_v49 }
  0x5d   :  { %5657 = vst [vmem:[#allocation25_spill] sm:$0xff] %v3086_v44  ;;  %v553_v43 = vsel %vm552_vm1, 1, %v5658_v27  ;;  %v3093_v41 = vpop.eup %2578  ;;  %vm556_vm3 = vc.u32 %v554_v28, %v550_v32  ;;  %v575_v62 = vsel %vm574_vm2, 1, %v5658_v27  ;;  %v5660_v45 = vshll.u32 %v3057_v38, 16 }
  0x5e   :  { %v569_v5 = vmul.u32 %v5659_v53, %v541_v47  ;;  %v3100_v1 = vpop.eup %2580  ;;  %v3105_v23 = vsel %vm200_vm0, %v2872_v6, %v199_v57  ;;  %vm212_vm5 = vcmp.eq.f32.partialorder %v2876_v63, inf  ;;  %v233_v30 = vsub.f32 1.5, %v3080_v18 }
  0x5f   :  { %vm578_vm4 = vc.u32 %v3077_v33, %v5660_v45  ;;  %v3109_v47 = vmul.f32 0.5, %v243_v25  ;;  %v3112_v49 = vshrl.u32 %v436_v26, 30  ;;  %v555_v32 = vadd.s32 %v553_v43, %v547_v61 }
  0x60   :  { %v5662_v28 = vmov 2102212464   ;;  %v5663_v45 = vmov 920167782   ;;  %v557_v14 = vsel %vm556_vm3, 1, %v5658_v27  ;;  %v577_v57 = vadd.s32 %v575_v62, %v569_v5 }
  0x61   :  { %5661 = vst [vmem:[#allocation26_spill] sm:$0xff] %v3112_v49  ;;  %v671_v53 = vshll.u32 %v5662_v28, %v659_v10  ;;  %v672_v42 = vshrl.u32 %v5663_v45, %v3086_v44  ;;  %v579_v20 = vsel %vm578_vm4, 1, %v5658_v27  ;;  %v3119_v4 = vshrl.u32 %v657_v55, 5 }
  0x62   :  { %v662_v25 = vshll.u32 %v5650_v58, %v659_v10  ;;  %v5664_v18 = vmov 2475754826   ;;  %v674_v26 = vshll.u32 %v5663_v45, %v659_v10  ;;  %v5665_v43 = vmov 1326507024  }
  0x63   :  { %v665_v7 = vshll.u32 %v5664_v18, %v659_v10  ;;  %v675_v61 = vshrl.u32 %v5665_v43, %v3086_v44  ;;  %v663_v56 = vshrl.u32 %v5664_v18, %v3086_v44  ;;  %v5666_v60 = vmov 2131351028  }
  0x64   :  { %v666_v15 = vshrl.u32 %v5666_v60, %v3086_v44  ;;  %v668_v5 = vshll.u32 %v5666_v60, %v659_v10  ;;  %v669_v55 = vshrl.u32 %v5662_v28, %v3086_v44  ;;  %vm202_vm6 = vcmp.eq.f32.partialorder %v2872_v6, 0.0 }
  0x65   :  { %v255_v62 = vmul.f32 %v3069_v46, %v254_v0  ;;  %v266_v45 = vmul.f32 %v3074_v39, %v2903_v16  ;;  %v438_v43 = vshll.u32 %v3112_v49, 30  ;;  %v673_v3 = vor.u32 %v672_v42, %v671_v53 }
  0x66   :  { %vm214_vm7 = vcmp.eq.f32.partialorder %v2876_v63, 0.0  ;;  %v571_v18 = vshrl.u32 %v3045_v50, 16  ;;  %v581_v19 = vadd.s32 %v579_v20, %v577_v57  ;;  %v5667_v10 = vand.u32 2147483647, %v2821_v37 }
  0x67   :  { %vm680_vm8 = vcmp.lt.s32.totalorder %v3119_v4, 4  ;;  %2582 = vrsqrt.f32 %v2992_v12  ;;  %v549_v0 = vshrl.u32 %v3041_v59, 16  ;;  %v559_v44 = vadd.s32 %v557_v14, %v555_v32 }
  0x68   :  { %v652_v60 = vand.u32 8388607, %v5667_v10  ;;  %v676_v28 = vor.u32 %v675_v61, %v674_v26  ;;  %vm224_vm9 = vcmp.eq.f32.partialorder %v2878_v51, inf  ;;  %v507_v42 = vshrl.u32 %v5650_v58, %v2898_v22 }
  0x69   :  { %v3148_v53 = vor.u32 %v663_v56, %v662_v25  ;;  %v3150_v50 = vor.u32 %v666_v15, %v665_v7  ;;  %v3152_v20 = vor.u32 %v669_v55, %v668_v5  ;;  %v3155_v57 = vsub.s32 %v3067_v35, %v438_v43 }
  0x6a   :  { %vm677_vm14 = vcmp.lt.s32.totalorder %v3119_v4, 1  ;;  %vm679_vm15 = vcmp.lt.s32.totalorder %v3119_v4, 3  ;;  %v686_v14 = vsel %vm680_vm8, %v673_v3, 920167782  ;;  %vm236_vm0 = vcmp.eq.f32.partialorder %v2884_v36, inf }
  0x6b   :  { %v528_v22 = vsel %vm526_vm10, %v2954_v48, 2102212464  ;;  %v573_v15 = vshrl.u32 %v3057_v38, 16  ;;  %v582_v7 = vadd.s32 %v581_v19, %v571_v18  ;;  %v653_v59 = vor.u32 8388608, %v652_v60 }
  0x6c   :  { %v213_v35 = vsel %vm212_vm5, %v2876_v63, %v211_v29  ;;  %v551_v56 = vshrl.u32 %v3054_v52, 16  ;;  %v560_v32 = vadd.s32 %v559_v44, %v549_v0  ;;  %v690_v25 = vsel %vm680_vm8, %v676_v28, 1326507024 }
  0x6d   :  { %v223_v26 = vmul.f32 %v222_v21, %v2878_v51  ;;  %vm226_vm1 = vcmp.eq.f32.partialorder %v2878_v51, 0.0  ;;  %vm678_vm10 = vcmp.lt.s32.totalorder %v3119_v4, 2  ;;  %v685_v48 = vsel %vm677_vm14, %v3148_v53, %v3150_v50  ;;  %v3182_v60 = vpop.eup %2582 }
  0x6e   :  { %v687_v19 = vsel %vm679_vm15, %v3152_v20, %v686_v14  ;;  %v234_v44 = vmul.f32 %v3003_v31, %v233_v30  ;;  %vm238_vm2 = vcmp.eq.f32.partialorder %v2884_v36, 0.0  ;;  %v441_v52 = vsub.s32 0, %v3155_v57 }
  0x6f   :  { %v527_v29 = vsel %vm523_vm11, %v507_v42, %v2950_v8  ;;  %v529_v21 = vsel %vm525_vm12, %v2952_v9, %v528_v22  ;;  %v583_v28 = vadd.s32 %v582_v7, %v573_v15  ;;  %v689_v18 = vsel %vm677_vm14, %v3150_v50, %v3152_v20 }
  0x70   :  { %v691_v31 = vsel %vm679_vm15, %v673_v3, %v690_v25  ;;  %v3199_v30 = vshll.u32 %v653_v59, 8  ;;  %vm440_vm3 = vcmp.lt.s32.totalorder %v3155_v57, 0  ;;  %v3202_v43 = vadd.s32 %v560_v32, %v551_v56 }
  0x71   :  { %v5668_v8 = vshll.u32 %v3057_v38, 16  ;;  %v3211_v9 = vsel %vm678_vm10, %v685_v48, %v687_v19  ;;  %v5670_v5 = vand.u32 2147483648, %v2872_v6  ;;  %v245_v55 = vsub.f32 1.5, %v3109_v47 }
  0x72   :  { %v256_v10 = vmul.f32 0.5, %v255_v62  ;;  %v267_v0 = vmul.f32 %v3074_v39, %v266_v45  ;;  %v5672_v38 = vand.u32 2147483648, %v2876_v63  ;;  %v235_v42 = vmul.f32 %v234_v44, %v2884_v36 }
  0x73   :  { %v3207_v61 = vadd.s32 %v3077_v33, %v5668_v8  ;;  %v3218_v3 = vsel %vm202_vm6, %v5670_v5, %v3105_v23  ;;  %vm248_vm11 = vcmp.eq.f32.partialorder %v2889_v40, inf  ;;  %v530_v6 = vsel %vm524_vm13, %v527_v29, %v529_v21 }
  0x74   :  { %5671 = vst [vmem:[#allocation28_spill] sm:$0xff] %v3218_v3  ;;  %v3226_v33 = vsel %vm214_vm7, %v5672_v38, %v213_v35  ;;  %v3234_v23 = vsel %vm678_vm10, %v689_v18, %v691_v31  ;;  %v442_v47 = vsel %vm440_vm3, %v441_v52, %v3155_v57  ;;  %v587_v45 = vadd.s32 1, %v583_v28 }
  0x75   :  { %5669 = vst [vmem:[#allocation27_spill] sm:$0xff] %v3207_v61  ;;  %v694_v62 = vand.u32 65535, %v3199_v30  ;;  %v719_v63 = vshrl.u32 %v3211_v9, 16  ;;  %v225_v14 = vsel %vm224_vm9, %v2878_v51, %v223_v26  ;;  %v278_v22 = vmul.f32 %v3093_v41, %v2937_v34 }
  0x76   :  { %5673 = vst [vmem:[#allocation29_spill] sm:$0xff] %v3226_v33  ;;  %v290_v11 = vmul.f32 %v3100_v1, %v2946_v54  ;;  %vm586_vm12 = vc.u32 %v3202_v43, %v3207_v61  ;;  %v246_v15 = vmul.f32 %v3037_v24, %v245_v55  ;;  %vm250_vm13 = vcmp.eq.f32.partialorder %v2889_v40, 0.0 }
  0x77   :  { %v257_v7 = vsub.f32 1.5, %v256_v10  ;;  %v268_v59 = vmul.f32 0.5, %v267_v0  ;;  %v697_v35 = vshrl.u32 %v3234_v23, 16  ;;  %v237_v56 = vsel %vm236_vm0, %v2884_v36, %v235_v42 }
  0x78   :  { %v443_v32 = vclz %v442_v47  ;;  %v584_v25 = vmul.u32 %v2990_v17, %v530_v6  ;;  %v802_v26 = vand.u32 2139095040, %v2830_v13  ;;  %v588_v48 = vsel %vm586_vm12, %v587_v45, %v583_v28 }
  0x79   :  { %v695_v19 = vshrl.u32 %v3199_v30, 16  ;;  %v718_v24 = vand.u32 65535, %v3211_v9  ;;  %v3258_v44 = vmul.u32 %v719_v63, %v694_v62  ;;  %v5674_v52 = vand.u32 2147483648, %v2878_v51 }
  0x7a   :  { %v279_v21 = vmul.f32 %v3093_v41, %v278_v22  ;;  %v291_v18 = vmul.f32 %v3100_v1, %v290_v11  ;;  %v803_v17 = vshrl.u32 %v802_v26, 23  ;;  %v5676_v31 = vand.u32 2147483648, %v2884_v36 }
  0x7b   :  { %v3264_v29 = vsel %vm226_vm1, %v5674_v52, %v225_v14  ;;  %v247_v8 = vmul.f32 %v246_v15, %v2889_v40  ;;  %vm260_vm4 = vcmp.eq.f32.partialorder %v2896_v2, inf  ;;  %v696_v9 = vand.u32 65535, %v3234_v23 }
  0x7c   :  { %5675 = vst [vmem:[#allocation30_spill] sm:$0xff] %v3264_v29  ;;  %v3272_v28 = vsel %vm238_vm2, %v5676_v31, %v237_v56  ;;  %v3277_v51 = vmul.u32 %v697_v35, %v694_v62  ;;  %v258_v5 = vmul.f32 %v3069_v46, %v257_v7  ;;  %v2493_v55 = vadd.s32 4294967294, %v443_v32  ;;  %v5689_v29 = vld [vmem:[#allocation25_spill] sm:$0xff] }
  0x7d   :  { %5677 = vst [vmem:[#allocation31_spill] sm:$0xff] %v3272_v28  ;;  %v3280_v10 = vadd.s32 %v588_v48, %v584_v25  ;;  %v2501_v0 = vadd.s32 4294967169, %v803_v17  ;;  %v269_v38 = vsub.f32 1.5, %v268_v59  ;;  %v720_v42 = vmul.u32 %v718_v24, %v694_v62 }
  0x7e   :  { %v3282_v6 = vmul.u32 %v718_v24, %v695_v19  ;;  %v724_v36 = vshll.u32 %v3258_v44, 16  ;;  %v280_v47 = vmul.f32 0.5, %v279_v21  ;;  %v292_v45 = vmul.f32 0.5, %v291_v18 }
  0x7f   :  { %v302_v14 = vmul.f32 %v3182_v60, %v2992_v12  ;;  %v809_v23 = vadd.s32 1, %v2501_v0  ;;  %v249_v46 = vsel %vm248_vm11, %v2889_v40, %v247_v8  ;;  %v698_v22 = vmul.u32 %v696_v9, %v694_v62  ;;  %v5680_v0 = vld [vmem:[#allocation21_spill] sm:$0xff] }
  0x80   :  { %v3290_v11 = vmul.u32 %v696_v9, %v695_v19  ;;  %v702_v15 = vshll.u32 %v3277_v51, 16  ;;  %v259_v7 = vmul.f32 %v258_v5, %v2896_v2  ;;  %vm2494_vm5 = vcmp.lt.s32.totalorder %v2493_v55, 0 }
  0x81   :  { %v590_v59 = vadd.s32 536870912, %v3280_v10  ;;  %vm810_vm6 = vcmp.gt.s32.totalorder %v809_v23, 0  ;;  %v5581_v56 = vshll.u32 %v3282_v6, 16  ;;  %vm728_vm7 = vc.u32 %v720_v42, %v724_v36 }
  0x82   :  { %v3296_v32 = vadd.s32 %v724_v36, %v720_v42  ;;  %v811_v25 = vsel %vm810_vm6, %v809_v23, 0  ;;  %v5678_v26 = vand.u32 2147483648, %v2889_v40  ;;  %v270_v48 = vmul.f32 %v3074_v39, %v269_v38  ;;  %v5681_v40 = vld [vmem:[#allocation22_spill] sm:$0xff] }
  0x83   :  { %v813_v52 = vand.u32 31, %v811_v25  ;;  %v281_v21 = vsub.f32 1.5, %v280_v47  ;;  %v704_v18 = vshll.u32 %v3290_v11, 16  ;;  %v708_v17 = vadd.s32 %v702_v15, %v698_v22 }
  0x84   :  { %v3302_v62 = vsel %vm250_vm13, %v5678_v26, %v249_v46  ;;  %v723_v31 = vmul.u32 %v719_v63, %v695_v19  ;;  %v293_v8 = vsub.f32 1.5, %v292_v45  ;;  %v446_v9 = vsel %vm2494_vm5, 0, %v2493_v55 }
  0x85   :  { %5679 = vst [vmem:[#allocation32_spill] sm:$0xff] %v3302_v62  ;;  %vm706_vm9 = vc.u32 %v698_v22, %v702_v15  ;;  %v729_v5 = vsel %vm728_vm7, 1, %v5658_v27  ;;  %v431_v42 = vadd.s32 %v5681_v40, %v5680_v0  ;;  %v447_v36 = vsub.s32 32, %v446_v9 }
  0x86   :  { %v3311_v23 = vshrl.u32 %v590_v59, 30  ;;  %vm732_vm0 = vc.u32 %v3296_v32, %v5581_v56  ;;  %v3319_v39 = vsel %vm260_vm4, %v2896_v2, %v259_v7  ;;  %v3322_v63 = vmul.f32 %v3182_v60, %v302_v14 }
  0x87   :  { %v701_v55 = vmul.u32 %v697_v35, %v695_v19  ;;  %v3324_v38 = vsub.s32 32, %v813_v52  ;;  %v3327_v47 = vmul.f32 %v270_v48, %v2903_v16  ;;  %v707_v45 = vsel %vm706_vm9, 1, %v5658_v27 }
  0x88   :  { %5682 = vst [vmem:[#allocation21_spill] sm:$0xff] %v3311_v23  ;;  %vm710_vm1 = vc.u32 %v708_v17, %v704_v18  ;;  %v731_v46 = vadd.s32 %v729_v5, %v723_v31  ;;  %v3331_v22 = vmul.f32 %v3093_v41, %v281_v21  ;;  %v3334_v15 = vmul.f32 %v3100_v1, %v293_v8  ;;  %v5685_v5 = vld [vmem:[#allocation12_spill] sm:$0xff] }
  0x89   :  { %v448_v7 = vshll.u32 %v3155_v57, %v446_v9  ;;  %v733_v14 = vsel %vm732_vm0, 1, %v5658_v27  ;;  %v449_v35 = vshrl.u32 %v431_v42, %v447_v36  ;;  %v451_v19 = vsub.s32 4294967266, %v446_v9 }
  0x8a   :  { %v592_v59 = vshll.u32 %v3311_v23, 30  ;;  %v709_v48 = vadd.s32 %v707_v45, %v701_v55  ;;  %v711_v18 = vsel %vm710_vm1, 1, %v5658_v27  ;;  %v5683_v17 = vmov 2102212464  }
  0x8b   :  { %v825_v31 = vshll.u32 %v5683_v17, %v813_v52  ;;  %v5684_v41 = vmov 920167782   ;;  %v725_v1 = vshrl.u32 %v3258_v44, 16  ;;  %v735_v8 = vadd.s32 %v733_v14, %v731_v46 }
  0x8c   :  { %v826_v21 = vshrl.u32 %v5684_v41, %v3324_v38  ;;  %v3345_v57 = vshrl.u32 %v811_v25, 5  ;;  %v956_v0 = vand.u32 2139095040, %v5685_v5  ;;  %v816_v9 = vshll.u32 %v5650_v58, %v813_v52 }
  0x8d   :  { %v5686_v40 = vmov 2475754826   ;;  %v828_v36 = vshll.u32 %v5684_v41, %v813_v52  ;;  %v5687_v55 = vmov 1326507024   ;;  %vm262_vm2 = vcmp.eq.f32.partialorder %v2896_v2, 0.0 }
  0x8e   :  { %v819_v42 = vshll.u32 %v5686_v40, %v813_v52  ;;  %v829_v45 = vshrl.u32 %v5687_v55, %v3324_v38  ;;  %v817_v24 = vshrl.u32 %v5686_v40, %v3324_v38  ;;  %v5688_v44 = vmov 2131351028  }
  0x8f   :  { %v820_v25 = vshrl.u32 %v5688_v44, %v3324_v38  ;;  %v822_v46 = vshll.u32 %v5688_v44, %v813_v52  ;;  %v823_v14 = vshrl.u32 %v5683_v17, %v3324_v38  ;;  %v452_v56 = vadd.s32 127, %v451_v19 }
  0x90   :  { %v703_v26 = vshrl.u32 %v3277_v51, 16  ;;  %v713_v62 = vadd.s32 %v711_v18, %v709_v48  ;;  %v827_v28 = vor.u32 %v826_v21, %v825_v31  ;;  %v661_v33 = vshrl.u32 %v5650_v58, %v5689_v29 }
  0x91   :  { %v5690_v3 = vand.u32 2147483647, %v2830_v13  ;;  %vm834_vm3 = vcmp.lt.s32.totalorder %v3345_v57, 4  ;;  %v957_v23 = vshrl.u32 %v956_v0, 23  ;;  %v3368_v49 = vsub.s32 %v3280_v10, %v592_v59  ;;  %v5694_v0 = vld [vmem:[#allocation23_spill] sm:$0xff] }
  0x92   :  { %v705_v52 = vshrl.u32 %v3290_v11, 16  ;;  %v727_v19 = vshrl.u32 %v3282_v6, 16  ;;  %v830_v61 = vor.u32 %v829_v45, %v828_v36  ;;  %v736_v51 = vadd.s32 %v735_v8, %v725_v1 }
  0x93   :  { %v806_v37 = vand.u32 8388607, %v5690_v3  ;;  %v3372_v48 = vor.u32 %v817_v24, %v816_v9  ;;  %v3374_v18 = vor.u32 %v820_v25, %v819_v42  ;;  %v3376_v29 = vor.u32 %v823_v14, %v822_v46 }
  0x94   :  { %v714_v31 = vadd.s32 %v713_v62, %v703_v26  ;;  %vm831_vm11 = vcmp.lt.s32.totalorder %v3345_v57, 1  ;;  %vm833_vm12 = vcmp.lt.s32.totalorder %v3345_v57, 3  ;;  %v840_v3 = vsel %vm834_vm3, %v827_v28, 920167782 }
  0x95   :  { %vm272_vm13 = vcmp.eq.f32.partialorder %v2903_v16, inf  ;;  %v450_v10 = vor.u32 %v449_v35, %v448_v7  ;;  %v682_v11 = vsel %vm680_vm8, %v3152_v20, 2102212464  ;;  %v807_v24 = vor.u32 8388608, %v806_v37 }
  0x96   :  { %v2504_v59 = vadd.s32 4294967169, %v957_v23  ;;  %vm284_vm4 = vcmp.eq.f32.partialorder %v2937_v34, inf  ;;  %vm296_vm5 = vcmp.eq.f32.partialorder %v2946_v54, inf  ;;  %v453_v62 = vshll.u32 %v452_v56, 23 }
  0x97   :  { %v595_v26 = vsub.s32 0, %v3368_v49  ;;  %v681_v21 = vsel %vm677_vm14, %v661_v33, %v3148_v53  ;;  %v844_v7 = vsel %vm834_vm3, %v830_v61, 1326507024  ;;  %v737_v35 = vadd.s32 %v736_v51, %v727_v19 }
  0x98   :  { %vm832_vm6 = vcmp.lt.s32.totalorder %v3345_v57, 2  ;;  %v839_v37 = vsel %vm831_vm11, %v3372_v48, %v3374_v18  ;;  %v841_v20 = vsel %vm833_vm12, %v3376_v29, %v840_v3  ;;  %vm594_vm8 = vcmp.lt.s32.totalorder %v3368_v49, 0 }
  0x99   :  { %v683_v53 = vsel %vm679_vm15, %v3150_v50, %v682_v11  ;;  %v3406_v33 = vadd.s32 %v714_v31, %v705_v52  ;;  %v5691_v61 = vshll.u32 %v3282_v6, 16  ;;  %vm274_vm14 = vcmp.eq.f32.partialorder %v2903_v16, 0.0 }
  0x9a   :  { %vm286_vm7 = vcmp.eq.f32.partialorder %v2937_v34, 0.0  ;;  %vm298_vm9 = vcmp.eq.f32.partialorder %v2946_v54, 0.0  ;;  %v843_v23 = vsel %vm831_vm11, %v3374_v18, %v3376_v29  ;;  %v845_v50 = vsel %vm833_vm12, %v827_v28, %v844_v7  ;;  %v5695_v7 = vld [vmem:[#allocation24_spill] sm:$0xff] }
  0x9b   :  { %v3411_v56 = vadd.s32 %v3296_v32, %v5691_v61  ;;  %v3422_v1 = vshll.u32 %v807_v24, 8  ;;  %v963_v6 = vadd.s32 1, %v2504_v59  ;;  %v5692_v32 = vand.u32 2147483648, %v2896_v2 }
  0x9c   :  { %2584 = vrsqrt.f32 %v5694_v0  ;;  %v454_v9 = vor.u32 4788187, %v453_v62  ;;  %v3434_v42 = vsel %vm832_vm6, %v839_v37, %v841_v20  ;;  %v304_v36 = vmul.f32 0.5, %v3322_v63 }
  0x9d   :  { %v3429_v8 = vsel %vm262_vm2, %v5692_v32, %v3319_v39  ;;  %v596_v28 = vsel %vm594_vm8, %v595_v26, %v3368_v49  ;;  %v684_v45 = vsel %vm678_vm10, %v681_v21, %v683_v53  ;;  %v741_v25 = vadd.s32 1, %v737_v35 }
  0x9e   :  { %5693 = vst [vmem:[#allocation22_spill] sm:$0xff] %v3429_v8  ;;  %v283_v2 = vmul.f32 %v3331_v22, %v2937_v34  ;;  %v295_v39 = vmul.f32 %v3334_v15, %v2946_v54  ;;  %vm740_vm15 = vc.u32 %v3406_v33, %v3411_v56  ;;  %v3450_v63 = vsel %vm832_vm6, %v843_v23, %v845_v50 }
  0x9f   :  { %v457_v46 = vcvt.s32.f32 %v450_v10  ;;  %v848_v14 = vand.u32 65535, %v3422_v1  ;;  %v873_v4 = vshrl.u32 %v3434_v42, 16  ;;  %vm964_vm10 = vcmp.gt.s32.totalorder %v963_v6, 0 }
  0xa0   :  { %v455_v52 = vand.u32 2147483647, %v454_v9  ;;  %v597_v19 = vclz %v596_v28  ;;  %v738_v22 = vmul.u32 %v3199_v30, %v684_v45  ;;  %v5594_v51 = vand.u32 2147483647, %v5685_v5 }
  0xa1   :  { %v742_v15 = vsel %vm740_vm15, %v741_v25, %v737_v35  ;;  %v3457_v31 = vshrl.u32 %v3422_v1, 16  ;;  %v851_v3 = vshrl.u32 %v3450_v63, 16  ;;  %v872_v11 = vand.u32 65535, %v3434_v42 }
  0xa2   :  { %v3461_v10 = vpop.eup %2584  ;;  %v273_v24 = vsel %vm272_vm13, %v2903_v16, %v3327_v47  ;;  %v305_v59 = vsub.f32 1.5, %v304_v36  ;;  %v965_v62 = vsel %vm964_vm10, %v963_v6, 0  ;;  %v285_v26 = vsel %vm284_vm4, %v2937_v34, %v283_v2 }
  0xa3   :  { %v297_v21 = vsel %vm296_vm5, %v2946_v54, %v295_v39  ;;  %2586 = vrsqrt.f32 %v5695_v7  ;;  %v3475_v35 = vmul.u32 %v873_v4, %v848_v14  ;;  %v3477_v37 = vmul.f32 %v457_v46, %v455_v52 }
  0xa4   :  { %v3479_v20 = vadd.s32 4294967294, %v597_v19  ;;  %v3481_v47 = vadd.s32 %v742_v15, %v738_v22  ;;  %v960_v53 = vand.u32 8388607, %v5594_v51  ;;  %v850_v61 = vand.u32 65535, %v3450_v63 }
  0xa5   :  { %v3486_v23 = vmul.u32 %v851_v3, %v848_v14  ;;  %v3489_v50 = vmul.u32 %v872_v11, %v3457_v31  ;;  %v967_v6 = vand.u32 31, %v965_v62  ;;  %v5696_v32 = vand.u32 2147483648, %v2903_v16 }
  0xa6   :  { %v5698_v42 = vand.u32 2147483648, %v2937_v34  ;;  %v5700_v28 = vand.u32 2147483648, %v2946_v54  ;;  %v3510_v25 = vmul.f32 %v3182_v60, %v305_v59  ;;  %v314_v16 = vmul.f32 %v3461_v10, %v5694_v0  ;;  %v5702_v34 = vld [vmem:[#allocation8_spill] sm:$0xff] }
  0xa7   :  { %v3495_v9 = vsel %vm274_vm14, %v5696_v32, %v273_v24  ;;  %v874_v2 = vmul.u32 %v872_v11, %v848_v14  ;;  %v878_v39 = vshll.u32 %v3475_v35, 16  ;;  %v3515_v63 = vsub.s32 32, %v967_v6 }
  0xa8   :  { %5697 = vst [vmem:[#allocation25_spill] sm:$0xff] %v3495_v9  ;;  %v3501_v36 = vsel %vm286_vm7, %v5698_v42, %v285_v26  ;;  %v3507_v45 = vsel %vm298_vm9, %v5700_v28, %v297_v21  ;;  %vm339_vm0 = vcmp.lt.s32.totalorder %v5702_v34, 0  ;;  %v459_v46 = vxor.u32 2147483648, %v3477_v37 }
  0xa9   :  { %5699 = vst [vmem:[#allocation33_spill] sm:$0xff] %v3501_v36  ;;  %vm2497_vm1 = vcmp.lt.s32.totalorder %v3479_v20, 0  ;;  %v744_v54 = vadd.s32 536870912, %v3481_v47  ;;  %v961_v52 = vor.u32 8388608, %v960_v53  ;;  %v3521_v19 = vpop.eup %2586  ;;  %v852_v60 = vmul.u32 %v850_v61, %v848_v14 }
  0xaa   :  { %5701 = vst [vmem:[#allocation34_spill] sm:$0xff] %v3507_v45  ;;  %v3524_v22 = vmul.u32 %v850_v61, %v3457_v31  ;;  %v856_v15 = vshll.u32 %v3486_v23, 16  ;;  %v970_v24 = vshll.u32 %v5650_v58, %v967_v6  ;;  %v971_v59 = vshrl.u32 %v5686_v40, %v3515_v63 }
  0xab   :  { %v973_v26 = vshll.u32 %v5686_v40, %v967_v6  ;;  %v974_v21 = vshrl.u32 %v5688_v44, %v3515_v63  ;;  %vm3534_vm2 = vc.u32 %v874_v2, %v878_v39  ;;  %v3538_v14 = vadd.s32 %v878_v39, %v874_v2 }
  0xac   :  { %v3540_v61 = vshrl.u32 %v965_v62, 5  ;;  %v976_v32 = vshll.u32 %v5688_v44, %v967_v6  ;;  %v5705_v42 = vand.u32 2147483647, %v5702_v34  ;;  %v977_v30 = vshrl.u32 %v5683_v17, %v3515_v63 }
  0xad   :  { %v979_v51 = vshll.u32 %v5683_v17, %v967_v6  ;;  %v980_v11 = vshrl.u32 %v5684_v41, %v3515_v63  ;;  %v982_v2 = vshll.u32 %v5684_v41, %v967_v6  ;;  %v858_v62 = vshll.u32 %v3524_v22, 16 }
  0xae   :  { %vm3545_vm13 = vcmp.le.f32.partialorder %v5705_v42, 0.7853982  ;;  %vm860_vm4 = vc.u32 %v852_v60, %v856_v15  ;;  %v862_v39 = vadd.s32 %v856_v15, %v852_v60  ;;  %v983_v42 = vshrl.u32 %v5687_v55, %v3515_v63 }
  0xaf   :  { %v877_v45 = vmul.u32 %v873_v4, %v3457_v31  ;;  %v3559_v36 = vor.u32 %v971_v59, %v970_v24  ;;  %v3561_v9 = vor.u32 %v974_v21, %v973_v26  ;;  %v981_v8 = vor.u32 %v980_v11, %v979_v51 }
  0xb0   :  { %v3563_v5 = vshrl.u32 %v744_v54, 30  ;;  %v883_v6 = vsel %vm3534_vm2, 1, %v5658_v27  ;;  %vm985_vm5 = vcmp.lt.s32.totalorder %v3540_v61, 1  ;;  %vm988_vm8 = vcmp.lt.s32.totalorder %v3540_v61, 4 }
  0xb1   :  { %v855_v60 = vmul.u32 %v851_v3, %v3457_v31  ;;  %v5709_v15 = vshll.u32 %v3489_v50, 16  ;;  %v3574_v4 = vor.u32 %v977_v30, %v976_v32  ;;  %v984_v24 = vor.u32 %v983_v42, %v982_v2 }
  0xb2   :  { %5708 = vst [vmem:[#allocation8_spill] sm:$0xff] %v3563_v5  ;;  %v861_v51 = vsel %vm860_vm4, 1, %v5658_v27  ;;  %vm864_vm7 = vc.u32 %v862_v39, %v858_v62  ;;  %vm987_vm9 = vcmp.lt.s32.totalorder %v3540_v61, 3  ;;  %v3578_v54 = vshll.u32 %v961_v52, 8 }
  0xb3   :  { %vm886_vm14 = vc.u32 %v3538_v14, %v5709_v15  ;;  %v885_v11 = vadd.s32 %v883_v6, %v877_v45  ;;  %vm986_vm15 = vcmp.lt.s32.totalorder %v3540_v61, 2  ;;  %v993_v31 = vsel %vm985_vm5, %v3559_v36, %v3561_v9 }
  0xb4   :  { %v994_v3 = vsel %vm988_vm8, %v981_v8, 920167782  ;;  %v315_v30 = vmul.f32 %v3461_v10, %v314_v16  ;;  %v460_v59 = vsel %vm339_vm0, %v459_v46, %v3477_v37  ;;  %v3594_v45 = vsel %vm2497_vm1, 0, %v3479_v20 }
  0xb5   :  { %v887_v52 = vsel %vm886_vm14, 1, %v5658_v27  ;;  %v746_v26 = vshll.u32 %v3563_v5, 30  ;;  %v863_v21 = vadd.s32 %v861_v51, %v855_v60  ;;  %v995_v53 = vsel %vm987_vm9, %v3574_v4, %v994_v3 }
  0xb6   :  { %v998_v16 = vsel %vm988_vm8, %v984_v24, 1326507024  ;;  %v865_v32 = vsel %vm864_vm7, 1, %v5658_v27  ;;  %v996_v37 = vsel %vm986_vm15, %v993_v31, %v995_v53  ;;  %v997_v20 = vsel %vm985_vm5, %v3561_v9, %v3574_v4 }
  0xb7   :  { %v1002_v46 = vand.u32 65535, %v3578_v54  ;;  %v879_v2 = vshrl.u32 %v3475_v35, 16  ;;  %v889_v62 = vadd.s32 %v887_v52, %v885_v11  ;;  %v999_v39 = vsel %vm987_vm9, %v981_v8, %v998_v16 }
  0xb8   :  { %v1027_v42 = vshrl.u32 %v996_v37, 16  ;;  %v3616_v6 = vmul.f32 %v3510_v25, %v2992_v12  ;;  %v326_v60 = vmul.f32 %v3521_v19, %v5695_v7  ;;  %v3623_v15 = vsel %vm3545_vm13, %v5702_v34, %v460_v59 }
  0xb9   :  { %v857_v24 = vshrl.u32 %v3486_v23, 16  ;;  %v867_v35 = vadd.s32 %v865_v32, %v863_v21  ;;  %v1000_v51 = vsel %vm986_vm15, %v997_v20, %v999_v39  ;;  %v1003_v8 = vshrl.u32 %v3578_v54, 16 }
  0xba   :  { %v1026_v11 = vand.u32 65535, %v996_v37  ;;  %v3629_v31 = vmul.f32 0.5, %v315_v30  ;;  %v605_v25 = vsub.s32 4294967266, %v3594_v45  ;;  %v815_v3 = vshrl.u32 %v5650_v58, %v3324_v38  ;;  %v5710_v30 = vld [vmem:[#allocation27_spill] sm:$0xff] }
  0xbb   :  { %v3634_v52 = vmul.u32 %v1027_v42, %v1002_v46  ;;  %v3637_v59 = vsub.s32 %v3481_v47, %v746_v26  ;;  %v881_v23 = vshrl.u32 %v3489_v50, 16  ;;  %v890_v21 = vadd.s32 %v889_v62, %v879_v2 }
  0xbc   :  { %v1005_v53 = vshrl.u32 %v1000_v51, 16  ;;  %v3642_v16 = vmul.f32 %v3623_v15, %v3623_v15  ;;  %v585_v32 = vadd.s32 %v5710_v30, %v3202_v43  ;;  %v836_v38 = vsel %vm834_vm3, %v3376_v29, 2102212464 }
  0xbd   :  { %v1004_v37 = vand.u32 65535, %v1000_v51  ;;  %v859_v20 = vshrl.u32 %v3524_v22, 16  ;;  %v868_v47 = vadd.s32 %v867_v35, %v857_v24  ;;  %v3652_v39 = vmul.u32 %v1026_v11, %v1003_v8 }
  0xbe   :  { %v3650_v26 = vmul.u32 %v1005_v53, %v1002_v46  ;;  %v601_v2 = vsub.s32 32, %v3594_v45  ;;  %v606_v62 = vadd.s32 127, %v605_v25  ;;  %v1028_v7 = vmul.u32 %v1026_v11, %v1002_v46 }
  0xbf   :  { %v1032_v13 = vshll.u32 %v3634_v52, 16  ;;  %vm748_vm10 = vcmp.lt.s32.totalorder %v3637_v59, 0  ;;  %v749_v43 = vsub.s32 0, %v3637_v59  ;;  %v835_v29 = vsel %vm831_vm11, %v815_v3, %v3372_v48 }
  0xc0   :  { %v891_v22 = vadd.s32 %v890_v21, %v881_v23  ;;  %v837_v24 = vsel %vm833_vm12, %v3374_v18, %v836_v38  ;;  %v1006_v35 = vmul.u32 %v1004_v37, %v1002_v46  ;;  %v3664_v51 = vmul.u32 %v1004_v37, %v1003_v8 }
  0xc1   :  { %v1010_v11 = vshll.u32 %v3650_v26, 16  ;;  %vm308_vm3 = vcmp.eq.f32.partialorder %v2992_v12, inf  ;;  %v602_v25 = vshll.u32 %v3368_v49, %v3594_v45  ;;  %v3670_v30 = vadd.s32 %v868_v47, %v859_v20 }
  0xc2   :  { %v5711_v5 = vshll.u32 %v3489_v50, 16  ;;  %v5605_v3 = vshll.u32 %v3652_v39, 16  ;;  %v603_v18 = vshrl.u32 %v585_v32, %v601_v2  ;;  %v607_v46 = vshll.u32 %v606_v62, 23 }
  0xc3   :  { %vm1036_vm11 = vc.u32 %v1028_v7, %v1032_v13  ;;  %v3678_v23 = vadd.s32 %v1032_v13, %v1028_v7  ;;  %v750_v21 = vsel %vm748_vm10, %v749_v43, %v3637_v59  ;;  %v838_v49 = vsel %vm832_vm6, %v835_v29, %v837_v24  ;;  %v5712_v29 = vld [vmem:[#allocation13_spill] sm:$0xff] }
  0xc4   :  { %v3675_v48 = vadd.s32 %v3538_v14, %v5711_v5  ;;  %v895_v45 = vadd.s32 1, %v891_v22  ;;  %v1031_v38 = vmul.u32 %v1027_v42, %v1003_v8  ;;  %v1012_v50 = vshll.u32 %v3664_v51, 16 }
  0xc5   :  { %vm1014_vm12 = vc.u32 %v1006_v35, %v1010_v11  ;;  %v1016_v5 = vadd.s32 %v1010_v11, %v1006_v35  ;;  %v1037_v14 = vsel %vm1036_vm11, 1, %v5658_v27  ;;  %v327_v32 = vmul.f32 %v3521_v19, %v326_v60  ;;  %v5713_v11 = vld [vmem:[#allocation26_spill] sm:$0xff] }
  0xc6   :  { %v473_v13 = vmul.f32 -0.00019511016, %v3642_v16  ;;  %vm894_vm1 = vc.u32 %v3670_v30, %v3675_v48  ;;  %vm1040_vm2 = vc.u32 %v3678_v23, %v5605_v3  ;;  %v317_v57 = vsub.f32 1.5, %v3629_v31 }
  0xc7   :  { %v604_v7 = vor.u32 %v603_v18, %v602_v25  ;;  %v608_v42 = vor.u32 4788187, %v607_v46  ;;  %v1009_v37 = vmul.u32 %v1005_v53, %v1003_v8  ;;  %v751_v20 = vclz %v750_v21 }
  0xc8   :  { %v892_v47 = vmul.u32 %v3422_v1, %v838_v49  ;;  %v1015_v2 = vsel %vm1014_vm12, 1, %v5658_v27  ;;  %v1039_v60 = vadd.s32 %v1037_v14, %v1031_v38  ;;  %v896_v62 = vsel %vm894_vm1, %v895_v45, %v891_v22  ;;  %v5722_v14 = vld [vmem:[#allocation14_spill] sm:$0xff] }
  0xc9   :  { %vm1018_vm6 = vc.u32 %v1016_v5, %v1012_v50  ;;  %v1041_v43 = vsel %vm1040_vm2, 1, %v5658_v27  ;;  %v1110_v24 = vand.u32 2139095040, %v5712_v29  ;;  %v3699_v35 = vmul.f32 0.5, %v327_v32 }
  0xca   :  { %v461_v3 = vsub.s32 4, %v5713_v11  ;;  %v466_v31 = vmul.f32 -0.001358992, %v3642_v16  ;;  %v474_v25 = vadd.f32 0.008332121, %v473_v13  ;;  %v611_v53 = vcvt.s32.f32 %v604_v7 }
  0xcb   :  { %v609_v8 = vand.u32 2147483647, %v608_v42  ;;  %v1017_v18 = vadd.s32 %v1015_v2, %v1009_v37  ;;  %v1111_v1 = vshrl.u32 %v1110_v24, 23  ;;  %v3703_v46 = vadd.s32 %v896_v62, %v892_v47  ;;  %v5715_v47 = vld [vmem:[#allocation9_spill] sm:$0xff] }
  0xcc   :  { %v1019_v22 = vsel %vm1018_vm6, 1, %v5658_v27  ;;  %v1033_v21 = vshrl.u32 %v3634_v52, 16  ;;  %v1043_v49 = vadd.s32 %v1041_v43, %v1039_v60  ;;  %v3711_v45 = vsel %vm308_vm3, %v2992_v12, %v3616_v6 }
  0xcd   :  { %5714 = vst [vmem:[#allocation27_spill] sm:$0xff] %v3711_v45  ;;  %v3714_v38 = vmul.f32 %v3461_v10, %v317_v57  ;;  %v2499_v50 = vadd.s32 4294967294, %v751_v20  ;;  %v2507_v5 = vadd.s32 4294967169, %v1111_v1  ;;  %v3720_v32 = vsel %vm339_vm0, %v461_v3, %v5713_v11 }
  0xce   :  { %v467_v52 = vadd.f32 0.041655596, %v466_v31  ;;  %v475_v13 = vmul.f32 %v474_v25, %v3642_v16  ;;  %v612_v7 = vmul.f32 %v611_v53, %v609_v8  ;;  %v1011_v42 = vshrl.u32 %v3650_v26, 16 }
  0xcf   :  { %v1021_v6 = vadd.s32 %v1019_v22, %v1017_v18  ;;  %v1117_v37 = vadd.s32 1, %v2507_v5  ;;  %vm493_vm4 = vcmp.lt.s32.totalorder %v5715_v47, 0  ;;  %v898_v10 = vadd.s32 536870912, %v3703_v46  ;;  %v5720_v5 = vld [vmem:[#allocation21_spill] sm:$0xff] }
  0xd0   :  { %v1035_v57 = vshrl.u32 %v3652_v39, 16  ;;  %v1044_v20 = vadd.s32 %v1043_v49, %v1033_v21  ;;  %vm2500_vm0 = vcmp.lt.s32.totalorder %v2499_v50, 0  ;;  %v969_v2 = vshrl.u32 %v5650_v58, %v3515_v63 }
  0xd1   :  { %vm1118_vm14 = vcmp.gt.s32.totalorder %v1117_v37, 0  ;;  %v468_v26 = vmul.f32 %v467_v52, %v3642_v16  ;;  %v476_v60 = vadd.f32 -0.16666654, %v475_v13  ;;  %v990_v62 = vsel %vm988_vm8, %v3574_v4, 2102212464 }
  0xd2   :  { %v1119_v43 = vsel %vm1118_vm14, %v1117_v37, 0  ;;  %v613_v24 = vxor.u32 2147483648, %v612_v7  ;;  %v1013_v11 = vshrl.u32 %v3664_v51, 16  ;;  %v1022_v31 = vadd.s32 %v1021_v6, %v1011_v42 }
  0xd3   :  { %v1121_v25 = vand.u32 31, %v1119_v43  ;;  %v3737_v8 = vsel %vm2500_vm0, 0, %v2499_v50  ;;  %v3739_v53 = vshrl.u32 %v898_v10, 30  ;;  %v1045_v18 = vadd.s32 %v1044_v20, %v1035_v57 }
  0xd4   :  { %v5606_v63 = vand.u32 2147483647, %v5712_v29  ;;  %v5717_v1 = vand.u32 2147483647, %v5715_v47  ;;  %v989_v4 = vsel %vm985_vm5, %v969_v2, %v3559_v36  ;;  %v991_v51 = vsel %vm987_vm9, %v3561_v9, %v990_v62 }
  0xd5   :  { %5716 = vst [vmem:[#allocation26_spill] sm:$0xff] %v3739_v53  ;;  %v3754_v21 = vsub.s32 32, %v1121_v25  ;;  %v469_v49 = vadd.f32 -0.4999988, %v468_v26  ;;  %v3757_v50 = vmul.f32 %v476_v60, %v3642_v16  ;;  %v615_v52 = vsub.s32 4, %v5720_v5 }
  0xd6   :  { %vm3744_vm7 = vcmp.le.f32.partialorder %v5717_v1, 0.7853982  ;;  %v739_v13 = vadd.s32 %v3411_v56, %v3406_v33  ;;  %v614_v42 = vsel %vm493_vm4, %v613_v24, %v612_v7  ;;  %v759_v36 = vsub.s32 4294967266, %v3737_v8 }
  0xd7   :  { %v3765_v6 = vadd.s32 %v1022_v31, %v1013_v11  ;;  %v5721_v9 = vshll.u32 %v3652_v39, 16  ;;  %v900_v10 = vshll.u32 %v3739_v53, 30  ;;  %v992_v57 = vsel %vm986_vm15, %v989_v4, %v991_v51 }
  0xd8   :  { %v1049_v20 = vadd.s32 1, %v1045_v18  ;;  %v1114_v33 = vand.u32 8388607, %v5606_v63  ;;  %v1124_v56 = vshll.u32 %v5650_v58, %v1121_v25  ;;  %v1127_v7 = vshll.u32 %v5686_v40, %v1121_v25 }
  0xd9   :  { %v3770_v37 = vadd.s32 %v3678_v23, %v5721_v9  ;;  %v1133_v2 = vshll.u32 %v5683_v17, %v1121_v25  ;;  %v1134_v39 = vshrl.u32 %v5684_v41, %v3754_v21  ;;  %v1125_v23 = vshrl.u32 %v5686_v40, %v3754_v21 }
  0xda   :  { %v1128_v61 = vshrl.u32 %v5688_v44, %v3754_v21  ;;  %v1130_v26 = vshll.u32 %v5688_v44, %v1121_v25  ;;  %v1131_v60 = vshrl.u32 %v5683_v17, %v3754_v21  ;;  %v3792_v62 = vsel %vm3744_vm7, %v5715_v47, %v614_v42 }
  0xdb   :  { %v755_v24 = vsub.s32 32, %v3737_v8  ;;  %vm1048_vm5 = vc.u32 %v3765_v6, %v3770_v37  ;;  %v3797_v11 = vshrl.u32 %v1119_v43, 5  ;;  %v760_v31 = vadd.s32 127, %v759_v36 }
  0xdc   :  { %v1046_v1 = vmul.u32 %v3578_v54, %v992_v57  ;;  %v1136_v4 = vshll.u32 %v5684_v41, %v1121_v25  ;;  %v1137_v51 = vshrl.u32 %v5687_v55, %v3754_v21  ;;  %v3804_v9 = vsub.s32 %v3703_v46, %v900_v10 }
  0xdd   :  { %v1115_v42 = vor.u32 8388608, %v1114_v33  ;;  %v1135_v63 = vor.u32 %v1134_v39, %v1133_v2  ;;  %v1264_v3 = vand.u32 2139095040, %v5722_v14  ;;  %v1050_v45 = vsel %vm1048_vm5, %v1049_v20, %v1045_v18 }
  0xde   :  { %v3807_v12 = vor.u32 %v1125_v23, %v1124_v56  ;;  %v3809_v43 = vor.u32 %v1128_v61, %v1127_v7  ;;  %v3811_v36 = vor.u32 %v1131_v60, %v1130_v26  ;;  %v3815_v54 = vmul.f32 %v3792_v62, %v3792_v62 }
  0xdf   :  { %vm1139_vm8 = vcmp.lt.s32.totalorder %v3797_v11, 1  ;;  %vm1141_vm9 = vcmp.lt.s32.totalorder %v3797_v11, 3  ;;  %vm1142_vm15 = vcmp.lt.s32.totalorder %v3797_v11, 4  ;;  %v756_v46 = vshll.u32 %v3637_v59, %v3737_v8 }
  0xe0   :  { %v757_v25 = vshrl.u32 %v739_v13, %v755_v24  ;;  %v761_v18 = vshll.u32 %v760_v31, 23  ;;  %v1138_v10 = vor.u32 %v1137_v51, %v1136_v4  ;;  %v903_v57 = vsub.s32 0, %v3804_v9 }
  0xe1   :  { %v3823_v20 = vadd.s32 %v1050_v45, %v1046_v1  ;;  %v1148_v33 = vsel %vm1142_vm15, %v1135_v63, 920167782  ;;  %v3827_v56 = vshll.u32 %v1115_v42, 8  ;;  %vm1140_vm10 = vcmp.lt.s32.totalorder %v3797_v11, 2 }
  0xe2   :  { %v1147_v7 = vsel %vm1139_vm8, %v3807_v12, %v3809_v43  ;;  %v1149_v59 = vsel %vm1141_vm9, %v3811_v36, %v1148_v33  ;;  %v1265_v8 = vshrl.u32 %v1264_v3, 23  ;;  %v3839_v45 = vmul.f32 %v3714_v38, %v5694_v0 }
  0xe3   :  { %v5723_v13 = vsel %vm3545_vm13, 0, %v3720_v32  ;;  %v3850_v39 = vsel %vm493_vm4, %v615_v52, %v5720_v5  ;;  %vm902_vm3 = vcmp.lt.s32.totalorder %v3804_v9, 0  ;;  %v470_v23 = vmul.f32 %v469_v49, %v3642_v16 }
  0xe4   :  { %v3845_v2 = vand.u32 3, %v5723_v13  ;;  %v758_v3 = vor.u32 %v757_v25, %v756_v46  ;;  %v762_v61 = vor.u32 4788187, %v761_v18  ;;  %v1152_v38 = vsel %vm1142_vm15, %v1138_v10, 1326507024 }
  0xe5   :  { %v627_v28 = vmul.f32 -0.00019511016, %v3815_v54  ;;  %v1052_v32 = vadd.s32 536870912, %v3823_v20  ;;  %v1150_v26 = vsel %vm1140_vm10, %v1147_v7, %v1149_v59  ;;  %v1151_v5 = vsel %vm1139_vm8, %v3809_v43, %v3811_v36  ;;  %v5725_v7 = vld [vmem:[#allocation10_spill] sm:$0xff] }
  0xe6   :  { %v478_v52 = vadd.f32 1.0, %v3757_v50  ;;  %v904_v16 = vsel %vm902_vm3, %v903_v57, %v3804_v9  ;;  %v1156_v49 = vand.u32 65535, %v3827_v56  ;;  %v2510_v60 = vadd.s32 4294967169, %v1265_v8 }
  0xe7   :  { %v620_v24 = vmul.f32 -0.001358992, %v3815_v54  ;;  %v1153_v31 = vsel %vm1141_vm9, %v1135_v63, %v1152_v38  ;;  %v1157_v1 = vshrl.u32 %v3827_v56, 16  ;;  %v1180_v4 = vand.u32 65535, %v1150_v26 }
  0xe8   :  { %v763_v51 = vand.u32 2147483647, %v762_v61  ;;  %v765_v42 = vcvt.s32.f32 %v758_v3  ;;  %v1154_v46 = vsel %vm1140_vm10, %v1151_v5, %v1153_v31  ;;  %v1181_v25 = vshrl.u32 %v1150_v26, 16 }
  0xe9   :  { %v628_v50 = vadd.f32 0.008332121, %v627_v28  ;;  %v905_v18 = vclz %v904_v16  ;;  %v3873_v10 = vshrl.u32 %v1052_v32, 30  ;;  %v1158_v57 = vand.u32 65535, %v1154_v46 }
  0xea   :  { %v471_v33 = vadd.f32 1.0, %v470_v23  ;;  %vm647_vm13 = vcmp.lt.s32.totalorder %v5725_v7, 0  ;;  %v1159_v59 = vshrl.u32 %v1154_v46, 16  ;;  %v3876_v8 = vmul.u32 %v1181_v25, %v1156_v49 }
  0xeb   :  { %5724 = vst [vmem:[#allocation9_spill] sm:$0xff] %v3873_v10  ;;  %v1271_v63 = vadd.s32 1, %v2510_v60  ;;  %v479_v13 = vmul.f32 %v478_v52, %v3623_v15  ;;  %vm483_vm11 = vcmp.eq.s32.totalorder %v3845_v2, 0  ;;  %vm486_vm12 = vcmp.eq.s32.totalorder %v3845_v2, 2 }
  0xec   :  { %v621_v3 = vadd.f32 0.041655596, %v620_v24  ;;  %v3881_v61 = vmul.u32 %v1158_v57, %v1157_v1  ;;  %v1182_v38 = vmul.u32 %v1180_v4, %v1156_v49  ;;  %v766_v28 = vmul.f32 %v765_v42, %v763_v51 }
  0xed   :  { %v1160_v32 = vmul.u32 %v1158_v57, %v1156_v49  ;;  %v1161_v26 = vmul.u32 %v1159_v59, %v1156_v49  ;;  %v3883_v23 = vmul.u32 %v1180_v4, %v1157_v1  ;;  %v629_v5 = vmul.f32 %v628_v50, %v3815_v54 }
  0xee   :  { %v2502_v16 = vadd.s32 4294967294, %v905_v18  ;;  %v1054_v60 = vshll.u32 %v3873_v10, 30  ;;  %v1186_v15 = vshll.u32 %v3876_v8, 16  ;;  %v1166_v31 = vshll.u32 %v3881_v61, 16 }
  0xef   :  { %v1164_v52 = vshll.u32 %v1161_v26, 16  ;;  %v5612_v24 = vshll.u32 %v3883_v23, 16  ;;  %vm1272_vm1 = vcmp.gt.s32.totalorder %v1271_v63, 0  ;;  %v1163_v46 = vmul.u32 %v1159_v59, %v1157_v1 }
  0xf0   :  { %v1185_v29 = vmul.u32 %v1181_v25, %v1157_v1  ;;  %vm1190_vm2 = vc.u32 %v1182_v38, %v1186_v15  ;;  %v3890_v51 = vadd.s32 %v1186_v15, %v1182_v38  ;;  %v767_v49 = vxor.u32 2147483648, %v766_v28 }
  0xf1   :  { %vm1168_vm6 = vc.u32 %v1160_v32, %v1164_v52  ;;  %v1170_v4 = vadd.s32 %v1164_v52, %v1160_v32  ;;  %v1191_v42 = vsel %vm1190_vm2, 1, %v5658_v27  ;;  %v3894_v50 = vsub.s32 %v3823_v20, %v1054_v60 }
  0xf2   :  { %v1169_v18 = vsel %vm1168_vm6, 1, %v5658_v27  ;;  %vm1194_vm4 = vc.u32 %v3890_v51, %v5612_v24  ;;  %v1273_v57 = vsel %vm1272_vm1, %v1271_v63, 0  ;;  %v484_v59 = vxor.u32 2147483648, %v479_v13 }
  0xf3   :  { %v487_v1 = vxor.u32 2147483648, %v471_v33  ;;  %v618_v25 = vsel %vm3744_vm7, 0, %v3850_v39  ;;  %vm1172_vm0 = vc.u32 %v1170_v4, %v1166_v31  ;;  %v622_v38 = vmul.f32 %v621_v3, %v3815_v54 }
  0xf4   :  { %vm2503_vm14 = vcmp.lt.s32.totalorder %v2502_v16, 0  ;;  %v1171_v32 = vadd.s32 %v1169_v18, %v1163_v46  ;;  %v1193_v20 = vadd.s32 %v1191_v42, %v1185_v29  ;;  %v630_v60 = vadd.f32 -0.16666654, %v629_v5 }
  0xf5   :  { %v1173_v15 = vsel %vm1172_vm0, 1, %v5658_v27  ;;  %v1195_v52 = vsel %vm1194_vm4, 1, %v5658_v27  ;;  %v1275_v10 = vand.u32 31, %v1273_v57  ;;  %v3906_v24 = vand.u32 3, %v618_v25 }
  0xf6   :  { %v5726_v63 = vand.u32 2147483647, %v5725_v7  ;;  %v768_v22 = vsel %vm647_vm13, %v767_v49, %v766_v28  ;;  %v1057_v39 = vsub.s32 0, %v3894_v50  ;;  %v3919_v29 = vsel %vm483_vm11, %v471_v33, %v484_v59 }
  0xf7   :  { %v3923_v3 = vsel %vm486_vm12, %v487_v1, %v479_v13  ;;  %v3925_v5 = vsel %vm2503_vm14, 0, %v2502_v16  ;;  %vm1056_vm7 = vcmp.lt.s32.totalorder %v3894_v50, 0  ;;  %v1165_v31 = vshrl.u32 %v1161_v26, 16 }
  0xf8   :  { %vm3910_vm5 = vcmp.le.f32.partialorder %v5726_v63, 0.7853982  ;;  %v1175_v46 = vadd.s32 %v1173_v15, %v1171_v32  ;;  %v1187_v4 = vshrl.u32 %v3876_v8, 16  ;;  %v1197_v42 = vadd.s32 %v1195_v52, %v1193_v20 }
  0xf9   :  { %v623_v28 = vadd.f32 -0.4999988, %v622_v38  ;;  %v631_v49 = vmul.f32 %v630_v60, %v3815_v54  ;;  %v3933_v33 = vsel %vm3910_vm5, %v5725_v7, %v768_v22  ;;  %v3935_v18 = vsub.s32 32, %v1275_v10 }
  0xfa   :  { %v913_v13 = vsub.s32 4294967266, %v3925_v5  ;;  %v1058_v16 = vsel %vm1056_vm7, %v1057_v39, %v3894_v50  ;;  %v1123_v26 = vshrl.u32 %v5650_v58, %v3754_v21  ;;  %v5615_v8 = vand.u32 2147483647, %v5722_v14 }
  0xfb   :  { %v1144_v59 = vsel %vm1142_vm15, %v3811_v36, 2102212464  ;;  %v1167_v1 = vshrl.u32 %v3881_v61, 16  ;;  %v1189_v25 = vshrl.u32 %v3883_v23, 16  ;;  %v3947_v38 = vshrl.u32 %v1273_v57, 5 }
  0xfc   :  { %v1176_v32 = vadd.s32 %v1175_v46, %v1165_v31  ;;  %v1198_v20 = vadd.s32 %v1197_v42, %v1187_v4  ;;  %v1281_v60 = vshll.u32 %v5686_v40, %v1275_v10  ;;  %v1284_v15 = vshll.u32 %v5688_v44, %v1275_v10 }
  0xfd   :  { %v1282_v21 = vshrl.u32 %v5688_v44, %v3935_v18  ;;  %v1285_v52 = vshrl.u32 %v5683_v17, %v3935_v18  ;;  %v1287_v36 = vshll.u32 %v5683_v17, %v1275_v10  ;;  %v1288_v61 = vshrl.u32 %v5684_v41, %v3935_v18 }
  0xfe   :  { %v1268_v57 = vand.u32 8388607, %v5615_v8  ;;  %v1278_v63 = vshll.u32 %v5650_v58, %v1275_v10  ;;  %v1279_v22 = vshrl.u32 %v5686_v40, %v3935_v18  ;;  %v1290_v39 = vshll.u32 %v5684_v41, %v1275_v10 }
  0xff   :  { %vm320_vm15 = vcmp.eq.f32.partialorder %v5694_v0, inf  ;;  %vm482_vm3 = vcmp.lt.s32.totalorder %v3845_v2, 2  ;;  %v1059_v31 = vclz %v1058_v16  ;;  %v1143_v46 = vsel %vm1139_vm8, %v1123_v26, %v3807_v12 }
 0x100   :  { %v1289_v4 = vor.u32 %v1288_v61, %v1287_v36  ;;  %v1291_v42 = vshrl.u32 %v5687_v55, %v3935_v18  ;;  %v1145_v8 = vsel %vm1141_vm9, %v3809_v43, %v1144_v59  ;;  %v5729_v14 = vshll.u32 %v3883_v23, 16 }
 0x101   :  { %v1199_v44 = vadd.s32 %v1198_v20, %v1189_v25  ;;  %vm1296_vm11 = vcmp.lt.s32.totalorder %v3947_v38, 4  ;;  %v3980_v16 = vadd.s32 %v1176_v32, %v1167_v1  ;;  %v3982_v40 = vor.u32 %v1282_v21, %v1281_v60 }
 0x102   :  { %v3977_v10 = vadd.s32 %v3890_v51, %v5729_v14  ;;  %v3984_v12 = vor.u32 %v1285_v52, %v1284_v15  ;;  %v1292_v26 = vor.u32 %v1291_v42, %v1290_v39  ;;  %v3988_v36 = vmul.f32 %v3933_v33, %v3933_v33 }
 0x103   :  { %v893_v43 = vadd.s32 %v3675_v48, %v3670_v30  ;;  %v3992_v23 = vor.u32 %v1279_v22, %v1278_v63  ;;  %vm1293_vm8 = vcmp.lt.s32.totalorder %v3947_v38, 1  ;;  %v909_v14 = vsub.s32 32, %v3925_v5 }
 0x104   :  { %v1269_v51 = vor.u32 8388608, %v1268_v57  ;;  %vm1295_vm9 = vcmp.lt.s32.totalorder %v3947_v38, 3  ;;  %v1302_v59 = vsel %vm1296_vm11, %v1289_v4, 920167782  ;;  %v914_v1 = vadd.s32 127, %v913_v13 }
 0x105   :  { %v2505_v25 = vadd.s32 4294967294, %v1059_v31  ;;  %v1146_v32 = vsel %vm1140_vm10, %v1143_v46, %v1145_v8  ;;  %v1203_v20 = vadd.s32 1, %v1199_v44  ;;  %vm1202_vm12 = vc.u32 %v3980_v16, %v3977_v10 }
 0x106   :  { %vm1294_vm1 = vcmp.lt.s32.totalorder %v3947_v38, 2  ;;  %v1305_v30 = vsel %vm1293_vm8, %v3982_v40, %v3984_v12  ;;  %v1306_v48 = vsel %vm1296_vm11, %v1292_v26, 1326507024  ;;  %v624_v13 = vmul.f32 %v623_v28, %v3815_v54 }
 0x107   :  { %v1301_v11 = vsel %vm1293_vm8, %v3992_v23, %v3982_v40  ;;  %v1303_v8 = vsel %vm1295_vm9, %v3984_v12, %v1302_v59  ;;  %v1307_v60 = vsel %vm1295_vm9, %v1289_v4, %v1306_v48  ;;  %v632_v15 = vadd.f32 1.0, %v631_v49 }
 0x108   :  { %v774_v21 = vmul.f32 -0.001358992, %v3988_v36  ;;  %v1200_v52 = vmul.u32 %v3827_v56, %v1146_v32  ;;  %v4022_v61 = vshll.u32 %v1269_v51, 8  ;;  %v781_v54 = vmul.f32 -0.00019511016, %v3988_v36 }
 0x109   :  { %vm2506_vm10 = vcmp.lt.s32.totalorder %v2505_v25, 0  ;;  %v1204_v28 = vsel %vm1202_vm12, %v1203_v20, %v1199_v44  ;;  %v4027_v57 = vsel %vm1294_vm1, %v1305_v30, %v1307_v60  ;;  %v910_v63 = vshll.u32 %v3804_v9, %v3925_v5 }
 0x10a   :  { %v911_v22 = vshrl.u32 %v893_v43, %v909_v14  ;;  %v915_v39 = vshll.u32 %v914_v1, 23  ;;  %v4033_v49 = vsel %vm1294_vm1, %v1301_v11, %v1303_v8  ;;  %v4039_v56 = vsel %vm320_vm15, %v5694_v0, %v3839_v45 }
 0x10b   :  { %5730 = vst [vmem:[#allocation21_spill] sm:$0xff] %v4039_v56  ;;  %v5731_v44 = vsub.f32 1.5, %v3699_v35  ;;  %vm480_vm2 = vweird.f32 %v5702_v34  ;;  %v489_v9 = vsel %vm482_vm3, %v3919_v29, %v3923_v3  ;;  %v4051_v5 = vsel %vm2506_vm10, 0, %v2505_v25  ;;  %v5734_v3 = vld [vmem:[#allocation8_spill] sm:$0xff] }
 0x10c   :  { %v4053_v46 = vadd.s32 %v1204_v28, %v1200_v52  ;;  %v1310_v4 = vand.u32 65535, %v4022_v61  ;;  %v1313_v45 = vshrl.u32 %v4027_v57, 16  ;;  %v625_v42 = vadd.f32 1.0, %v624_v13 }
 0x10d   :  { %v4044_v31 = vmul.f32 %v3521_v19, %v5731_v44  ;;  %v633_v35 = vmul.f32 %v632_v15, %v3792_v62  ;;  %vm637_vm6 = vcmp.eq.s32.totalorder %v3906_v24, 0  ;;  %v1335_v34 = vshrl.u32 %v4033_v49, 16 }
 0x10e   :  { %v775_v19 = vadd.f32 0.041655596, %v774_v21  ;;  %v782_v26 = vadd.f32 0.008332121, %v781_v54  ;;  %v912_v43 = vor.u32 %v911_v22, %v910_v63  ;;  %v916_v2 = vor.u32 4788187, %v915_v39 }
 0x10f   :  { %5732 = vst [vmem:[#allocation35_spill] sm:$0xff] %v4044_v31  ;;  %v4060_v29 = vsel %vm480_vm2, nan, %v489_v9  ;;  %vm636_vm4 = vcmp.lt.s32.totalorder %v3906_v24, 2  ;;  %vm640_vm0 = vcmp.eq.s32.totalorder %v3906_v24, 2  ;;  %v769_v14 = vsub.s32 4, %v5734_v3  ;;  %v5735_v21 = vld [vmem:[#allocation11_spill] sm:$0xff] }
 0x110   :  { %5733 = vst [vmem:[#allocation36_spill] sm:$0xff] %v4060_v29  ;;  %v1067_v51 = vsub.s32 4294967266, %v4051_v5  ;;  %v1206_v62 = vadd.s32 536870912, %v4053_v46  ;;  %v1311_v59 = vshrl.u32 %v4022_v61, 16  ;;  %v1312_v1 = vand.u32 65535, %v4027_v57  ;;  %v5748_v31 = vld [vmem:[#allocation16_spill] sm:$0xff] }
 0x111   :  { %v4069_v25 = vmul.u32 %v1313_v45, %v1310_v4  ;;  %v638_v32 = vxor.u32 2147483648, %v633_v35  ;;  %v641_v20 = vxor.u32 2147483648, %v625_v42  ;;  %v1334_v30 = vand.u32 65535, %v4033_v49 }
 0x112   :  { %v4072_v48 = vmul.u32 %v1335_v34, %v1310_v4  ;;  %v776_v13 = vmul.f32 %v775_v19, %v3988_v36  ;;  %v783_v11 = vmul.f32 %v782_v26, %v3988_v36  ;;  %v917_v8 = vand.u32 2147483647, %v916_v2 }
 0x113   :  { %v919_v60 = vcvt.s32.f32 %v912_v43  ;;  %vm634_vm14 = vweird.f32 %v5715_v47  ;;  %v770_v15 = vsel %vm647_vm13, %v769_v14, %v5734_v3  ;;  %vm801_vm7 = vcmp.lt.s32.totalorder %v5735_v21, 0 }
 0x114   :  { %v1047_v52 = vadd.s32 %v3770_v37, %v3765_v6  ;;  %v1063_v54 = vsub.s32 32, %v4051_v5  ;;  %v1068_v28 = vadd.s32 127, %v1067_v51  ;;  %v4084_v57 = vshrl.u32 %v1206_v62, 30  ;;  %v5739_v51 = vld [vmem:[#allocation15_spill] sm:$0xff] }
 0x115   :  { %v1314_v63 = vmul.u32 %v1312_v1, %v1310_v4  ;;  %v4086_v22 = vmul.u32 %v1312_v1, %v1311_v59  ;;  %v1318_v39 = vshll.u32 %v4069_v25, 16  ;;  %v642_v49 = vsel %vm640_vm0, %v641_v20, %v633_v35 }
 0x116   :  { %v1336_v44 = vmul.u32 %v1334_v30, %v1310_v4  ;;  %v4091_v9 = vmul.u32 %v1334_v30, %v1311_v59  ;;  %v1340_v19 = vshll.u32 %v4072_v48, 16  ;;  %v639_v6 = vsel %vm637_vm6, %v625_v42, %v638_v32 }
 0x117   :  { %v777_v37 = vadd.f32 -0.4999988, %v776_v13  ;;  %v784_v26 = vadd.f32 -0.16666654, %v783_v11  ;;  %v5736_v43 = vand.u32 2147483647, %v5735_v21  ;;  %v920_v3 = vmul.f32 %v919_v60, %v917_v8 }
 0x118   :  { %v1064_v35 = vshll.u32 %v3894_v50, %v4051_v5  ;;  %v1065_v4 = vshrl.u32 %v1047_v52, %v1063_v54  ;;  %v1069_v14 = vshll.u32 %v1068_v28, 23  ;;  %v1418_v62 = vand.u32 2139095040, %v5739_v51 }
 0x119   :  { %vm4098_vm13 = vcmp.le.f32.partialorder %v5736_v43, 0.7853982  ;;  %v1208_v1 = vshll.u32 %v4084_v57, 30  ;;  %v1320_v42 = vshll.u32 %v4086_v22, 16  ;;  %vm1322_vm15 = vc.u32 %v1314_v63, %v1318_v39 }
 0x11a   :  { %v1324_v32 = vadd.s32 %v1318_v39, %v1314_v63  ;;  %v1342_v20 = vshll.u32 %v4091_v9, 16  ;;  %vm1344_vm3 = vc.u32 %v1336_v44, %v1340_v19  ;;  %v4108_v30 = vadd.s32 %v1340_v19, %v1336_v44 }
 0x11b   :  { %v1419_v13 = vshrl.u32 %v1418_v62, 23  ;;  %v643_v11 = vsel %vm636_vm4, %v639_v6, %v642_v49  ;;  %v772_v50 = vsel %vm3910_vm5, 0, %v770_v15  ;;  %v921_v5 = vxor.u32 2147483648, %v920_v3 }
 0x11c   :  { %v1317_v8 = vmul.u32 %v1313_v45, %v1311_v59  ;;  %v785_v60 = vmul.f32 %v784_v26, %v3988_v36  ;;  %v1323_v52 = vsel %vm1322_vm15, 1, %v5658_v27  ;;  %v1339_v54 = vmul.u32 %v1335_v34, %v1311_v59 }
 0x11d   :  { %v2513_v28 = vadd.s32 4294967169, %v1419_v13  ;;  %v1066_v63 = vor.u32 %v1065_v4, %v1064_v35  ;;  %v1070_v39 = vor.u32 4788187, %v1069_v14  ;;  %vm1326_vm12 = vc.u32 %v1324_v32, %v1320_v42  ;;  %v5741_v42 = vld [vmem:[#allocation26_spill] sm:$0xff]  ;;  %v5742_v13 = vld [vmem:[#allocation12_spill] sm:$0xff] }
 0x11e   :  { %v1345_v44 = vsel %vm1344_vm3, 1, %v5658_v27  ;;  %v778_v19 = vmul.f32 %v777_v37, %v3988_v36  ;;  %v4119_v24 = vsub.s32 %v4053_v46, %v1208_v1  ;;  %vm1348_vm5 = vc.u32 %v4108_v30, %v1342_v20 }
 0x11f   :  { %v1425_v53 = vadd.s32 1, %v2513_v28  ;;  %v4126_v45 = vsel %vm634_vm14, nan, %v643_v11  ;;  %v4128_v34 = vand.u32 3, %v772_v50  ;;  %v922_v59 = vsel %vm801_vm7, %v921_v5, %v920_v3 }
 0x120   :  { %5740 = vst [vmem:[#allocation8_spill] sm:$0xff] %v4126_v45  ;;  %v1325_v15 = vadd.s32 %v1323_v52, %v1317_v8  ;;  %v786_v49 = vadd.f32 1.0, %v785_v60  ;;  %v1327_v36 = vsel %vm1326_vm12, 1, %v5658_v27  ;;  %v1347_v46 = vadd.s32 %v1345_v44, %v1339_v54 }
 0x121   :  { %vm1426_vm10 = vcmp.gt.s32.totalorder %v1425_v53, 0  ;;  %v1071_v6 = vand.u32 2147483647, %v1070_v39  ;;  %v1073_v37 = vcvt.s32.f32 %v1066_v63  ;;  %v1349_v26 = vsel %vm1348_vm5, 1, %v5658_v27 }
 0x122   :  { %v1427_v43 = vsel %vm1426_vm10, %v1425_v53, 0  ;;  %v4134_v35 = vadd.f32 1.0, %v778_v19  ;;  %v4139_v47 = vsel %vm4098_vm13, %v5735_v21, %v922_v59  ;;  %v1211_v3 = vsub.s32 0, %v4119_v24 }
 0x123   :  { %v1429_v4 = vand.u32 31, %v1427_v43  ;;  %vm1210_vm2 = vcmp.lt.s32.totalorder %v4119_v24, 0  ;;  %v1319_v14 = vshrl.u32 %v4069_v25, 16  ;;  %v1329_v62 = vadd.s32 %v1327_v36, %v1325_v15 }
 0x124   :  { %v5619_v1 = vand.u32 2147483647, %v5739_v51  ;;  %v923_v32 = vsub.s32 4, %v5741_v42  ;;  %vm955_vm6 = vcmp.lt.s32.totalorder %v5742_v13, 0  ;;  %v1341_v11 = vshrl.u32 %v4072_v48, 16 }
 0x125   :  { %v1351_v50 = vadd.s32 %v1349_v26, %v1347_v46  ;;  %v4148_v5 = vsub.s32 32, %v1429_v4  ;;  %v4151_v8 = vmul.f32 %v786_v49, %v3933_v33  ;;  %v4155_v60 = vmul.f32 %v4139_v47, %v4139_v47 }
 0x126   :  { %v1074_v25 = vmul.f32 %v1073_v37, %v1071_v6  ;;  %v1277_v52 = vshrl.u32 %v5650_v58, %v3935_v18  ;;  %v1212_v54 = vsel %vm1210_vm2, %v1211_v3, %v4119_v24  ;;  %v1298_v48 = vsel %vm1296_vm11, %v3984_v12, 2102212464 }
 0x127   :  { %v1321_v28 = vshrl.u32 %v4086_v22, 16  ;;  %v1343_v63 = vshrl.u32 %v4091_v9, 16  ;;  %v1330_v33 = vadd.s32 %v1329_v62, %v1319_v14  ;;  %v1422_v39 = vand.u32 8388607, %v5619_v1 }
 0x128   :  { %v1441_v44 = vshll.u32 %v5683_v17, %v1429_v4  ;;  %v1442_v19 = vshrl.u32 %v5684_v41, %v4148_v5  ;;  %v5743_v18 = vand.u32 2147483647, %v5742_v13  ;;  %v1352_v12 = vadd.s32 %v1351_v50, %v1341_v11 }
 0x129   :  { %v4176_v59 = vshrl.u32 %v1427_v43, 5  ;;  %v1432_v22 = vshll.u32 %v5650_v58, %v1429_v4  ;;  %v5746_v15 = vmov 2475754826   ;;  %v5747_v46 = vmov 2131351028  }
 0x12a   :  { %vm4172_vm4 = vcmp.le.f32.partialorder %v5743_v18, 0.7853982  ;;  %v1435_v49 = vshll.u32 %v5746_v15, %v1429_v4  ;;  %v1433_v36 = vshrl.u32 %v5746_v15, %v4148_v5  ;;  %v1436_v6 = vshrl.u32 %v5747_v46, %v4148_v5 }
 0x12b   :  { %v1438_v37 = vshll.u32 %v5747_v46, %v1429_v4  ;;  %v1439_v26 = vshrl.u32 %v5683_v17, %v4148_v5  ;;  %v1075_v3 = vxor.u32 2147483648, %v1074_v25  ;;  %v1213_v14 = vclz %v1212_v54 }
 0x12c   :  { %v1297_v43 = vsel %vm1293_vm8, %v1277_v52, %v3992_v23  ;;  %v1299_v62 = vsel %vm1295_vm9, %v3982_v40, %v1298_v48  ;;  %vm794_vm11 = vcmp.eq.s32.totalorder %v4128_v34, 2  ;;  %v4197_v11 = vadd.s32 %v4108_v30, %v1342_v20 }
 0x12d   :  { %v1443_v50 = vor.u32 %v1442_v19, %v1441_v44  ;;  %v1444_v18 = vshll.u32 %v5684_v41, %v1429_v4  ;;  %v1445_v54 = vshrl.u32 %v5687_v55, %v4148_v5  ;;  %v4202_v1 = vadd.s32 %v1330_v33, %v1321_v28 }
 0x12e   :  { %v1353_v23 = vadd.s32 %v1352_v12, %v1343_v63  ;;  %v1423_v52 = vor.u32 8388608, %v1422_v39  ;;  %v1572_v56 = vand.u32 2139095040, %v5748_v31  ;;  %v4205_v40 = vor.u32 %v1433_v36, %v1432_v22 }
 0x12f   :  { %v4207_v48 = vor.u32 %v1436_v6, %v1435_v49  ;;  %v4209_v9 = vor.u32 %v1439_v26, %v1438_v37  ;;  %vm1450_vm8 = vcmp.lt.s32.totalorder %v4176_v59, 4  ;;  %v4215_v20 = vsel %vm801_vm7, %v923_v32, %v5741_v42 }
 0x130   :  { %v928_v30 = vmul.f32 -0.001358992, %v4155_v60  ;;  %vm1447_vm9 = vcmp.lt.s32.totalorder %v4176_v59, 1  ;;  %vm1449_vm0 = vcmp.lt.s32.totalorder %v4176_v59, 3  ;;  %v1076_v4 = vsel %vm955_vm6, %v1075_v3, %v1074_v25 }
 0x131   :  { %v2508_v28 = vadd.s32 4294967294, %v1213_v14  ;;  %v1446_v63 = vor.u32 %v1445_v54, %v1444_v18  ;;  %v1456_v33 = vsel %vm1450_vm8, %v1443_v50, 920167782  ;;  %v1300_v39 = vsel %vm1294_vm1, %v1297_v43, %v1299_v62 }
 0x132   :  { %vm1356_vm14 = vc.u32 %v4202_v1, %v4197_v11  ;;  %v1357_v42 = vadd.s32 1, %v1353_v23  ;;  %v1573_v32 = vshrl.u32 %v1572_v56, 23  ;;  %vm1448_vm7 = vcmp.lt.s32.totalorder %v4176_v59, 2 }
 0x133   :  { %v1455_v25 = vsel %vm1447_vm9, %v4205_v40, %v4207_v48  ;;  %v1457_v44 = vsel %vm1449_vm0, %v4209_v9, %v1456_v33  ;;  %v4236_v19 = vshll.u32 %v1423_v52, 8  ;;  %v795_v38 = vxor.u32 2147483648, %v4134_v35 }
 0x134   :  { %v929_v56 = vadd.f32 0.041655596, %v928_v30  ;;  %v935_v22 = vmul.f32 -0.00019511016, %v4155_v60  ;;  %v4246_v49 = vsel %vm4172_vm4, %v5742_v13, %v1076_v4  ;;  %vm2509_vm1 = vcmp.lt.s32.totalorder %v2508_v28, 0 }
 0x135   :  { %v1354_v36 = vmul.u32 %v4022_v61, %v1300_v39  ;;  %v1460_v6 = vsel %vm1450_vm8, %v1446_v63, 1326507024  ;;  %v1358_v37 = vsel %vm1356_vm14, %v1357_v42, %v1353_v23  ;;  %v1458_v26 = vsel %vm1448_vm7, %v1455_v25, %v1457_v44  ;;  %v5749_v39 = vld [vmem:[#allocation9_spill] sm:$0xff] }
 0x136   :  { %v1459_v3 = vsel %vm1447_vm9, %v4207_v48, %v4209_v9  ;;  %v1461_v14 = vsel %vm1449_vm0, %v1443_v50, %v1460_v6  ;;  %v1464_v43 = vand.u32 65535, %v4236_v19  ;;  %v1465_v62 = vshrl.u32 %v4236_v19, 16 }
 0x137   :  { %v1488_v61 = vand.u32 65535, %v1458_v26  ;;  %v2516_v18 = vadd.s32 4294967169, %v1573_v32  ;;  %v792_v54 = vxor.u32 2147483648, %v4151_v8  ;;  %v4265_v23 = vsel %vm794_vm11, %v795_v38, %v4151_v8 }
 0x138   :  { %v936_v52 = vadd.f32 0.008332121, %v935_v22  ;;  %v4267_v30 = vsel %vm2509_vm1, 0, %v2508_v28  ;;  %v930_v4 = vmul.f32 %v929_v56, %v4155_v60  ;;  %v4270_v63 = vadd.s32 %v1358_v37, %v1354_v36 }
 0x139   :  { %v1462_v50 = vsel %vm1448_vm7, %v1459_v3, %v1461_v14  ;;  %v1489_v33 = vshrl.u32 %v1458_v26, 16  ;;  %vm791_vm15 = vcmp.eq.s32.totalorder %v4128_v34, 0  ;;  %v1077_v42 = vsub.s32 4, %v5749_v39 }
 0x13a   :  { %v4278_v32 = vmul.f32 %v4246_v49, %v4246_v49  ;;  %v1466_v8 = vand.u32 65535, %v1462_v50  ;;  %v1467_v25 = vshrl.u32 %v1462_v50, 16  ;;  %v1221_v28 = vsub.s32 4294967266, %v4267_v30 }
 0x13b   :  { %v4281_v44 = vmul.u32 %v1489_v33, %v1464_v43  ;;  %v4283_v38 = vmul.u32 %v1488_v61, %v1465_v62  ;;  %v1579_v56 = vadd.s32 1, %v2516_v18  ;;  %v1490_v37 = vmul.u32 %v1488_v61, %v1464_v43 }
 0x13c   :  { %v1468_v22 = vmul.u32 %v1466_v8, %v1464_v43  ;;  %v4285_v36 = vmul.u32 %v1467_v25, %v1464_v43  ;;  %v4287_v6 = vmul.u32 %v1466_v8, %v1465_v62  ;;  %v931_v26 = vadd.f32 -0.4999988, %v930_v4 }
 0x13d   :  { %v937_v3 = vmul.f32 %v936_v52, %v4155_v60  ;;  %v1360_v14 = vadd.s32 536870912, %v4270_v63  ;;  %v1494_v50 = vshll.u32 %v4281_v44, 16  ;;  %v1089_v12 = vmul.f32 -0.00019511016, %v4278_v32 }
 0x13e   :  { %v1201_v45 = vadd.s32 %v3977_v10, %v3980_v16  ;;  %v1217_v18 = vsub.s32 32, %v4267_v30  ;;  %v1472_v29 = vshll.u32 %v4285_v36, 16  ;;  %v1222_v0 = vadd.s32 127, %v1221_v28 }
 0x13f   :  { %v1474_v8 = vshll.u32 %v4287_v6, 16  ;;  %vm1580_vm3 = vcmp.gt.s32.totalorder %v1579_v56, 0  ;;  %vm1498_vm5 = vc.u32 %v1490_v37, %v1494_v50  ;;  %v4299_v52 = vadd.s32 %v1494_v50, %v1490_v37 }
 0x140   :  { %vm1476_vm12 = vc.u32 %v1468_v22, %v1472_v29  ;;  %v1478_v61 = vadd.s32 %v1472_v29, %v1468_v22  ;;  %v938_v4 = vadd.f32 -0.16666654, %v937_v3  ;;  %v4304_v10 = vsel %vm955_vm6, %v1077_v42, %v5749_v39 }
 0x141   :  { %v1082_v16 = vmul.f32 -0.001358992, %v4278_v32  ;;  %v4307_v21 = vshrl.u32 %v1360_v14, 30  ;;  %v1090_v28 = vadd.f32 0.008332121, %v1089_v12  ;;  %v1218_v43 = vshll.u32 %v4119_v24, %v4267_v30 }
 0x142   :  { %v1471_v51 = vmul.u32 %v1467_v25, %v1465_v62  ;;  %v1493_v7 = vmul.u32 %v1489_v33, %v1465_v62  ;;  %v1219_v29 = vshrl.u32 %v1201_v45, %v1217_v18  ;;  %v1477_v22 = vsel %vm1476_vm12, 1, %v5658_v27 }
 0x143   :  { %5750 = vst [vmem:[#allocation26_spill] sm:$0xff] %v4307_v21  ;;  %v1499_v37 = vsel %vm1498_vm5, 1, %v5658_v27  ;;  %v1581_v3 = vsel %vm1580_vm3, %v1579_v56, 0  ;;  %v1223_v50 = vshll.u32 %v1222_v0, 23  ;;  %vm1480_vm10 = vc.u32 %v1478_v61, %v1474_v8 }
 0x144   :  { %v5751_v39 = vshll.u32 %v4283_v38, 16  ;;  %v1583_v42 = vand.u32 31, %v1581_v3  ;;  %v4320_v24 = vsel %vm791_vm15, %v4134_v35, %v792_v54  ;;  %v5752_v45 = vsel %vm4098_vm13, 0, %v4215_v20 }
 0x145   :  { %v4326_v12 = vand.u32 3, %v5752_v45  ;;  %v1362_v62 = vshll.u32 %v4307_v21, 30  ;;  %v5626_v0 = vand.u32 2147483647, %v5748_v31  ;;  %v932_v30 = vmul.f32 %v931_v26, %v4155_v60 }
 0x146   :  { %vm1502_vm2 = vc.u32 %v4299_v52, %v5751_v39  ;;  %v1479_v25 = vadd.s32 %v1477_v22, %v1471_v51  ;;  %v1501_v56 = vadd.s32 %v1499_v37, %v1493_v7  ;;  %v4335_v35 = vmul.f32 %v938_v4, %v4155_v60 }
 0x147   :  { %v1481_v2 = vsel %vm1480_vm10, 1, %v5658_v27  ;;  %v1503_v20 = vsel %vm1502_vm2, 1, %v5658_v27  ;;  %v4339_v54 = vsub.s32 32, %v1583_v42  ;;  %v1083_v14 = vadd.f32 0.041655596, %v1082_v16 }
 0x148   :  { %v1091_v18 = vmul.f32 %v1090_v28, %v4278_v32  ;;  %v4342_v8 = vor.u32 %v1219_v29, %v1218_v43  ;;  %v4344_v26 = vor.u32 4788187, %v1223_v50  ;;  %v4347_v61 = vsub.s32 %v4270_v63, %v1362_v62 }
 0x149   :  { %v1473_v7 = vshrl.u32 %v4285_v36, 16  ;;  %v1495_v51 = vshrl.u32 %v4281_v44, 16  ;;  %v1576_v60 = vand.u32 8388607, %v5626_v0  ;;  %v1483_v4 = vadd.s32 %v1481_v2, %v1479_v25 }
 0x14a   :  { %v1505_v22 = vadd.s32 %v1503_v20, %v1501_v56  ;;  %v4353_v37 = vshrl.u32 %v1581_v3, 5  ;;  %v1586_v16 = vshll.u32 %v5650_v58, %v1583_v42  ;;  %v1587_v43 = vshrl.u32 %v5746_v15, %v4339_v54 }
 0x14b   :  { %v1589_v28 = vshll.u32 %v5746_v15, %v1583_v42  ;;  %v1590_v63 = vshrl.u32 %v5747_v46, %v4339_v54  ;;  %v1592_v36 = vshll.u32 %v5747_v46, %v1583_v42  ;;  %v1593_v44 = vshrl.u32 %v5683_v17, %v4339_v54 }
 0x14c   :  { %v1595_v29 = vshll.u32 %v5683_v17, %v1583_v42  ;;  %v1596_v3 = vshrl.u32 %v5684_v41, %v4339_v54  ;;  %v1598_v50 = vshll.u32 %v5684_v41, %v1583_v42  ;;  %vm1364_vm13 = vcmp.lt.s32.totalorder %v4347_v61, 0 }
 0x14d   :  { %v1365_v39 = vsub.s32 0, %v4347_v61  ;;  %v1431_v45 = vshrl.u32 %v5650_v58, %v4148_v5  ;;  %v1577_v62 = vor.u32 8388608, %v1576_v60  ;;  %v1497_v25 = vshrl.u32 %v4283_v38, 16 }
 0x14e   :  { %v1506_v56 = vadd.s32 %v1505_v22, %v1495_v51  ;;  %v1597_v2 = vor.u32 %v1596_v3, %v1595_v29  ;;  %v1599_v20 = vshrl.u32 %v5687_v55, %v4339_v54  ;;  %v1475_v0 = vshrl.u32 %v4287_v6, 16 }
 0x14f   :  { %v1484_v33 = vadd.s32 %v1483_v4, %v1473_v7  ;;  %v4376_v31 = vor.u32 %v1587_v43, %v1586_v16  ;;  %v4378_v42 = vor.u32 %v1590_v63, %v1589_v28  ;;  %v4380_v13 = vor.u32 %v1593_v44, %v1592_v36  ;;  %v5754_v63 = vld [vmem:[#allocation13_spill] sm:$0xff] }
 0x150   :  { %v1600_v21 = vor.u32 %v1599_v20, %v1598_v50  ;;  %vm1601_vm6 = vcmp.lt.s32.totalorder %v4353_v37, 1  ;;  %vm1604_vm11 = vcmp.lt.s32.totalorder %v4353_v37, 4  ;;  %v1225_v5 = vand.u32 2147483647, %v4344_v26 }
 0x151   :  { %v1227_v51 = vcvt.s32.f32 %v4342_v8  ;;  %v1452_v6 = vsel %vm1450_vm8, %v4209_v9, 2102212464  ;;  %vm1603_vm14 = vcmp.lt.s32.totalorder %v4353_v37, 3  ;;  %v1366_v7 = vsel %vm1364_vm13, %v1365_v39, %v4347_v61 }
 0x152   :  { %v5753_v60 = vshll.u32 %v4283_v38, 16  ;;  %v1507_v22 = vadd.s32 %v1506_v56, %v1497_v25  ;;  %v1610_v26 = vsel %vm1604_vm11, %v1597_v2, 920167782  ;;  %v4400_v8 = vadd.s32 %v1484_v33, %v1475_v0 }
 0x153   :  { %vm1602_vm1 = vcmp.lt.s32.totalorder %v4353_v37, 2  ;;  %v1609_v9 = vsel %vm1601_vm6, %v4376_v31, %v4378_v42  ;;  %v4407_v16 = vshll.u32 %v1577_v62, 8  ;;  %v1451_v38 = vsel %vm1447_vm9, %v1431_v45, %v4205_v40 }
 0x154   :  { %v4396_v4 = vadd.s32 %v4299_v52, %v5753_v60  ;;  %v1453_v52 = vsel %vm1449_vm0, %v4207_v48, %v1452_v6  ;;  %v1611_v0 = vsel %vm1603_vm14, %v4380_v13, %v1610_v26  ;;  %v1614_v33 = vsel %vm1604_vm11, %v1600_v21, 1326507024 }
 0x155   :  { %v4420_v43 = vadd.f32 1.0, %v932_v30  ;;  %v1084_v28 = vmul.f32 %v1083_v14, %v4278_v32  ;;  %vm1109_vm8 = vcmp.lt.s32.totalorder %v5754_v63, 0  ;;  %v1367_v36 = vclz %v1366_v7 }
 0x156   :  { %v1613_v40 = vsel %vm1601_vm6, %v4378_v42, %v4380_v13  ;;  %v1092_v48 = vadd.f32 -0.16666654, %v1091_v18  ;;  %v1511_v44 = vadd.s32 1, %v1507_v22  ;;  %v1612_v29 = vsel %vm1602_vm1, %v1609_v9, %v1611_v0 }
 0x157   :  { %v1615_v21 = vsel %vm1603_vm14, %v1597_v2, %v1614_v33  ;;  %v1454_v30 = vsel %vm1448_vm7, %v1451_v38, %v1453_v52  ;;  %vm1510_vm9 = vc.u32 %v4400_v8, %v4396_v4  ;;  %v1618_v14 = vand.u32 65535, %v4407_v16 }
 0x158   :  { %v1619_v3 = vshrl.u32 %v4407_v16, 16  ;;  %v940_v50 = vadd.f32 1.0, %v4335_v35  ;;  %v1228_v18 = vmul.f32 %v1227_v51, %v1225_v5  ;;  %v1616_v39 = vsel %vm1602_vm1, %v1613_v40, %v1615_v21 }
 0x159   :  { %v1643_v45 = vshrl.u32 %v1612_v29, 16  ;;  %v1085_v62 = vadd.f32 -0.4999988, %v1084_v28  ;;  %v2511_v25 = vadd.s32 4294967294, %v1367_v36  ;;  %v1620_v56 = vand.u32 65535, %v1616_v39 }
 0x15a   :  { %v1621_v2 = vshrl.u32 %v1616_v39, 16  ;;  %v1093_v59 = vmul.f32 %v1092_v48, %v4278_v32  ;;  %v1508_v20 = vmul.u32 %v4236_v19, %v1454_v30  ;;  %v1512_v6 = vsel %vm1510_vm9, %v1511_v44, %v1507_v22 }
 0x15b   :  { %v1642_v7 = vand.u32 65535, %v1612_v29  ;;  %v1622_v60 = vmul.u32 %v1620_v56, %v1618_v14  ;;  %v1624_v9 = vmul.u32 %v1620_v56, %v1619_v3  ;;  %v1645_v38 = vmul.u32 %v1643_v45, %v1618_v14 }
 0x15c   :  { %v1623_v26 = vmul.u32 %v1621_v2, %v1618_v14  ;;  %v4444_v35 = vmul.f32 %v940_v50, %v4139_v47  ;;  %v949_v5 = vxor.u32 2147483648, %v4420_v43  ;;  %v5755_v51 = vsel %vm4172_vm4, 0, %v4304_v10  ;;  %v5759_v50 = vld [vmem:[#allocation17_spill] sm:$0xff] }
 0x15d   :  { %v4451_v52 = vand.u32 3, %v5755_v51  ;;  %v1229_v0 = vxor.u32 2147483648, %v1228_v18  ;;  %v1086_v19 = vmul.f32 %v1085_v62, %v4278_v32  ;;  %vm2512_vm0 = vcmp.lt.s32.totalorder %v2511_v25, 0 }
 0x15e   :  { %v1626_v22 = vshll.u32 %v1623_v26, 16  ;;  %v1628_v33 = vshll.u32 %v1624_v9, 16  ;;  %v1094_v28 = vadd.f32 1.0, %v1093_v59  ;;  %v4454_v36 = vadd.s32 %v1512_v6, %v1508_v20 }
 0x15f   :  { %v1625_v40 = vmul.u32 %v1621_v2, %v1619_v3  ;;  %v1644_v47 = vmul.u32 %v1642_v7, %v1618_v14  ;;  %v1646_v44 = vmul.u32 %v1642_v7, %v1619_v3  ;;  %v1648_v29 = vshll.u32 %v1645_v38, 16 }
 0x160   :  { %vm1630_vm7 = vc.u32 %v1622_v60, %v1626_v22  ;;  %v1632_v48 = vadd.s32 %v1626_v22, %v1622_v60  ;;  %v5756_v53 = vand.u32 2147483647, %v5754_v63  ;;  %v1230_v32 = vsel %vm1109_vm8, %v1229_v0, %v1228_v18 }
 0x161   :  { %v1355_v21 = vadd.s32 %v4197_v11, %v4202_v1  ;;  %v4466_v30 = vsel %vm2512_vm0, 0, %v2511_v25  ;;  %v1726_v14 = vand.u32 2139095040, %v5759_v50  ;;  %v1585_v39 = vshrl.u32 %v5650_v58, %v4339_v54 }
 0x162   :  { %vm4458_vm4 = vcmp.le.f32.partialorder %v5756_v53, 0.7853982  ;;  %v1631_v62 = vsel %vm1630_vm7, 1, %v5658_v27  ;;  %vm1634_vm15 = vc.u32 %v1632_v48, %v1628_v33  ;;  %v1647_v56 = vmul.u32 %v1643_v45, %v1619_v3 }
 0x163   :  { %v1514_v2 = vadd.s32 536870912, %v4454_v36  ;;  %v1627_v59 = vshrl.u32 %v1623_v26, 16  ;;  %v1633_v20 = vadd.s32 %v1631_v62, %v1625_v40  ;;  %v1635_v18 = vsel %vm1634_vm15, 1, %v5658_v27 }
 0x164   :  { %vm790_vm3 = vcmp.lt.s32.totalorder %v4128_v34, 2  ;;  %vm948_vm12 = vcmp.eq.s32.totalorder %v4326_v12, 2  ;;  %v1375_v1 = vsub.s32 4294967266, %v4466_v30  ;;  %v1650_v11 = vshll.u32 %v1646_v44, 16 }
 0x165   :  { %vm1652_vm5 = vc.u32 %v1644_v47, %v1648_v29  ;;  %v1654_v25 = vadd.s32 %v1648_v29, %v1644_v47  ;;  %vm945_vm10 = vcmp.eq.s32.totalorder %v4326_v12, 0  ;;  %v1606_v54 = vsel %vm1604_vm11, %v4380_v13, 2102212464 }
 0x166   :  { %v1629_v3 = vshrl.u32 %v1624_v9, 16  ;;  %v1637_v45 = vadd.s32 %v1635_v18, %v1633_v20  ;;  %v1653_v6 = vsel %vm1652_vm5, 1, %v5658_v27  ;;  %v1649_v7 = vshrl.u32 %v1645_v38, 16 }
 0x167   :  { %v1655_v60 = vadd.s32 %v1653_v6, %v1647_v56  ;;  %vm1656_vm2 = vc.u32 %v1654_v25, %v1650_v11  ;;  %v1727_v26 = vshrl.u32 %v1726_v14, 23  ;;  %v4482_v51 = vshrl.u32 %v1514_v2, 30 }
 0x168   :  { %v1605_v0 = vsel %vm1601_vm6, %v1585_v39, %v4376_v31  ;;  %v1638_v22 = vadd.s32 %v1637_v45, %v1627_v59  ;;  %v1657_v33 = vsel %vm1656_vm2, 1, %v5658_v27  ;;  %v1607_v13 = vsel %vm1603_vm14, %v4378_v42, %v1606_v54 }
 0x169   :  { %v1651_v9 = vshrl.u32 %v1646_v44, 16  ;;  %v1659_v40 = vadd.s32 %v1657_v33, %v1655_v60  ;;  %v2519_v47 = vadd.s32 4294967169, %v1727_v26  ;;  %v1371_v38 = vsub.s32 32, %v4466_v30 }
 0x16a   :  { %v1376_v48 = vadd.s32 127, %v1375_v1  ;;  %v4492_v29 = vadd.s32 %v1638_v22, %v1629_v3  ;;  %v4494_v53 = vadd.s32 %v1654_v25, %v1650_v11  ;;  %v946_v14 = vxor.u32 2147483648, %v4444_v35 }
 0x16b   :  { %v4497_v31 = vadd.f32 1.0, %v1086_v19  ;;  %v1660_v39 = vadd.s32 %v1659_v40, %v1649_v7  ;;  %v1733_v62 = vadd.s32 1, %v2519_v47  ;;  %v4500_v56 = vmul.f32 %v1094_v28, %v4246_v49  ;;  %v5760_v47 = vld [vmem:[#allocation10_spill] sm:$0xff] }
 0x16c   :  { %v1231_v42 = vsub.s32 4, %v4084_v57  ;;  %v1516_v44 = vshll.u32 %v4482_v51, 30  ;;  %v1608_v2 = vsel %vm1602_vm1, %v1605_v0, %v1607_v13  ;;  %v4509_v59 = vsel %vm4458_vm4, %v5754_v63, %v1230_v32 }
 0x16d   :  { %v1372_v19 = vshll.u32 %v4347_v61, %v4466_v30  ;;  %v1661_v20 = vadd.s32 %v1660_v39, %v1651_v9  ;;  %vm1734_vm13 = vcmp.gt.s32.totalorder %v1733_v62, 0  ;;  %v1373_v18 = vshrl.u32 %v1355_v21, %v1371_v38 }
 0x16e   :  { %v1377_v49 = vshll.u32 %v1376_v48, 23  ;;  %vm1664_vm6 = vc.u32 %v4492_v29, %v4494_v53  ;;  %v1735_v28 = vsel %vm1734_vm13, %v1733_v62, 0  ;;  %v1662_v1 = vmul.u32 %v4407_v16, %v1608_v2 }
 0x16f   :  { %v1665_v37 = vadd.s32 1, %v1661_v20  ;;  %v5632_v11 = vand.u32 2147483647, %v5759_v50  ;;  %v1737_v25 = vand.u32 31, %v1735_v28  ;;  %v4521_v32 = vsel %vm790_vm3, %v4320_v24, %v4265_v23 }
 0x170   :  { %v4528_v61 = vsel %vm948_vm12, %v949_v5, %v4444_v35  ;;  %v4532_v16 = vmul.f32 %v4509_v59, %v4509_v59  ;;  %v4535_v21 = vsub.s32 %v4454_v36, %v1516_v44  ;;  %v4540_v34 = vsel %vm945_vm10, %v4420_v43, %v946_v14 }
 0x171   :  { %vm1102_vm11 = vcmp.eq.s32.totalorder %v4451_v52, 2  ;;  %v1666_v23 = vsel %vm1664_vm6, %v1665_v37, %v1661_v20  ;;  %v4543_v24 = vsub.s32 32, %v1737_v25  ;;  %v1103_v35 = vxor.u32 2147483648, %v4497_v31 }
 0x172   :  { %v4549_v5 = vsel %vm1109_vm8, %v1231_v42, %v4084_v57  ;;  %v1374_v30 = vor.u32 %v1373_v18, %v1372_v19  ;;  %v1378_v36 = vor.u32 4788187, %v1377_v49  ;;  %vm1099_vm14 = vcmp.eq.s32.totalorder %v4451_v52, 0  ;;  %v5761_v19 = vld [vmem:[#allocation14_spill] sm:$0xff] }
 0x173   :  { %v1100_v54 = vxor.u32 2147483648, %v4500_v56  ;;  %v1236_v43 = vmul.f32 -0.001358992, %v4532_v16  ;;  %v4554_v3 = vadd.s32 %v1666_v23, %v1662_v1  ;;  %v1730_v45 = vand.u32 8388607, %v5632_v11 }
 0x174   :  { %v1243_v6 = vmul.f32 -0.00019511016, %v4532_v16  ;;  %vm1518_vm1 = vcmp.lt.s32.totalorder %v4535_v21, 0  ;;  %v1519_v57 = vsub.s32 0, %v4535_v21  ;;  %v1743_v7 = vshll.u32 %v5746_v15, %v1737_v25 }
 0x175   :  { %v1744_v60 = vshrl.u32 %v5747_v46, %v4543_v24  ;;  %v1746_v26 = vshll.u32 %v5747_v46, %v1737_v25  ;;  %v1747_v0 = vshrl.u32 %v5683_v17, %v4543_v24  ;;  %v1749_v22 = vshll.u32 %v5683_v17, %v1737_v25 }
 0x176   :  { %v1379_v33 = vand.u32 2147483647, %v1378_v36  ;;  %v1381_v13 = vcvt.s32.f32 %v1374_v30  ;;  %v4568_v9 = vshrl.u32 %v1735_v28, 5  ;;  %v1750_v40 = vshrl.u32 %v5684_v41, %v4543_v24 }
 0x177   :  { %vm788_vm8 = vweird.f32 %v5760_v47  ;;  %vm944_vm9 = vcmp.lt.s32.totalorder %v4326_v12, 2  ;;  %v1668_v38 = vadd.s32 536870912, %v4554_v3  ;;  %v1731_v48 = vor.u32 8388608, %v1730_v45  ;;  %v5762_v45 = vld [vmem:[#allocation18_spill] sm:$0xff] }
 0x178   :  { %v1752_v14 = vshll.u32 %v5684_v41, %v1737_v25  ;;  %v1753_v39 = vshrl.u32 %v5687_v55, %v4543_v24  ;;  %vm1098_vm0 = vcmp.lt.s32.totalorder %v4451_v52, 2  ;;  %v1104_v62 = vsel %vm1102_vm11, %v1103_v35, %v4500_v56 }
 0x179   :  { %v1520_v42 = vsel %vm1518_vm1, %v1519_v57, %v4535_v21  ;;  %v1740_v44 = vshll.u32 %v5650_v58, %v1737_v25  ;;  %v1741_v2 = vshrl.u32 %v5746_v15, %v4543_v24  ;;  %vm1263_vm7 = vcmp.lt.s32.totalorder %v5761_v19, 0 }
 0x17a   :  { %v4589_v20 = vor.u32 %v1744_v60, %v1743_v7  ;;  %v4591_v18 = vor.u32 %v1747_v0, %v1746_v26  ;;  %v1751_v49 = vor.u32 %v1750_v40, %v1749_v22  ;;  %v1754_v28 = vor.u32 %v1753_v39, %v1752_v14  ;;  %v5763_v26 = vld [vmem:[#allocation26_spill] sm:$0xff] }
 0x17b   :  { %v1234_v56 = vsel %vm4458_vm4, 0, %v4549_v5  ;;  %v1237_v1 = vadd.f32 0.041655596, %v1236_v43  ;;  %v1244_v37 = vadd.f32 0.008332121, %v1243_v6  ;;  %vm1755_vm15 = vcmp.lt.s32.totalorder %v4568_v9, 1 }
 0x17c   :  { %v1382_v25 = vmul.f32 %v1381_v13, %v1379_v33  ;;  %v4597_v23 = vshrl.u32 %v1668_v38, 30  ;;  %vm1758_vm3 = vcmp.lt.s32.totalorder %v4568_v9, 4  ;;  %v4600_v35 = vshll.u32 %v1731_v48, 8 }
 0x17d   :  { %v1521_v30 = vclz %v1520_v42  ;;  %v4602_v36 = vor.u32 %v1741_v2, %v1740_v44  ;;  %vm1757_vm12 = vcmp.lt.s32.totalorder %v4568_v9, 3  ;;  %v1880_v57 = vand.u32 2139095040, %v5762_v45 }
 0x17e   :  { %vm1756_vm4 = vcmp.lt.s32.totalorder %v4568_v9, 2  ;;  %v1764_v10 = vsel %vm1758_vm3, %v1751_v49, 920167782  ;;  %v1767_v5 = vsel %vm1755_vm15, %v4589_v20, %v4591_v18  ;;  %v1768_v43 = vsel %vm1758_vm3, %v1754_v28, 1326507024 }
 0x17f   :  { %v1101_v6 = vsel %vm1099_vm14, %v4497_v31, %v1100_v54  ;;  %v1238_v7 = vmul.f32 %v1237_v1, %v4532_v16  ;;  %v1245_v60 = vmul.f32 %v1244_v37, %v4532_v16  ;;  %v1385_v0 = vsub.s32 4, %v5763_v26 }
 0x180   :  { %v1383_v22 = vxor.u32 2147483648, %v1382_v25  ;;  %v1670_v33 = vshll.u32 %v4597_v23, 30  ;;  %v1769_v13 = vsel %vm1757_vm12, %v1751_v49, %v1768_v43  ;;  %v1772_v40 = vand.u32 65535, %v4600_v35 }
 0x181   :  { %v1763_v38 = vsel %vm1755_vm15, %v4602_v36, %v4589_v20  ;;  %v1765_v31 = vsel %vm1757_vm12, %v4591_v18, %v1764_v10  ;;  %v1770_v54 = vsel %vm1756_vm4, %v1767_v5, %v1769_v13  ;;  %v1773_v48 = vshrl.u32 %v4600_v35, 16 }
 0x182   :  { %v2514_v14 = vadd.s32 4294967294, %v1521_v30  ;;  %v1774_v39 = vand.u32 65535, %v1770_v54  ;;  %v1775_v42 = vshrl.u32 %v1770_v54, 16  ;;  %v1881_v44 = vshrl.u32 %v1880_v57, 23 }
 0x183   :  { %v4638_v2 = vsel %vm788_vm8, nan, %v4521_v32  ;;  %v4644_v49 = vsel %vm944_vm9, %v4540_v34, %v4528_v61  ;;  %v1239_v28 = vadd.f32 -0.4999988, %v1238_v7  ;;  %v5765_v1 = vand.u32 2147483647, %v5761_v19 }
 0x184   :  { %5764 = vst [vmem:[#allocation9_spill] sm:$0xff] %v4638_v2  ;;  %v4654_v30 = vsel %vm1098_vm0, %v1101_v6, %v1104_v62  ;;  %v4659_v32 = vsel %vm1263_vm7, %v1385_v0, %v5763_v26  ;;  %v4662_v12 = vsub.s32 %v4554_v3, %v1670_v33  ;;  %v1766_v61 = vsel %vm1756_vm4, %v1763_v38, %v1765_v31 }
 0x185   :  { %vm4648_vm5 = vcmp.le.f32.partialorder %v5765_v1, 0.7853982  ;;  %v4666_v34 = vand.u32 3, %v1234_v56  ;;  %v1384_v47 = vsel %vm1263_vm7, %v1383_v22, %v1382_v25  ;;  %v1777_v57 = vmul.u32 %v1775_v42, %v1772_v40 }
 0x186   :  { %v1778_v52 = vmul.u32 %v1774_v39, %v1773_v48  ;;  %v4670_v62 = vadd.f32 -0.16666654, %v1245_v60  ;;  %vm2515_vm10 = vcmp.lt.s32.totalorder %v2514_v14, 0  ;;  %v1776_v10 = vmul.u32 %v1774_v39, %v1772_v40 }
 0x187   :  { %v2522_v5 = vadd.s32 4294967169, %v1881_v44  ;;  %v4673_v43 = vmul.f32 %v1239_v28, %v4532_v16  ;;  %v1796_v6 = vand.u32 65535, %v1766_v61  ;;  %v1797_v56 = vshrl.u32 %v1766_v61, 16 }
 0x188   :  { %v4681_v25 = vsel %vm4648_vm5, %v5761_v19, %v1384_v47  ;;  %v1673_v7 = vsub.s32 0, %v4662_v12  ;;  %v1779_v60 = vmul.u32 %v1775_v42, %v1773_v48  ;;  %v1780_v26 = vshll.u32 %v1777_v57, 16 }
 0x189   :  { %v4686_v0 = vadd.s32 %v4396_v4, %v4400_v8  ;;  %v4688_v22 = vsel %vm2515_vm10, 0, %v2514_v14  ;;  %vm1672_vm2 = vcmp.lt.s32.totalorder %v4662_v12, 0  ;;  %v1782_v33 = vshll.u32 %v1778_v52, 16 }
 0x18a   :  { %vm1784_vm13 = vc.u32 %v1776_v10, %v1780_v26  ;;  %v1786_v13 = vadd.s32 %v1780_v26, %v1776_v10  ;;  %v5631_v38 = vand.u32 2147483647, %v5762_v45  ;;  %v1887_v31 = vadd.s32 1, %v2522_v5 }
 0x18b   :  { %v1785_v54 = vsel %vm1784_vm13, 1, %v5658_v27  ;;  %v1798_v39 = vmul.u32 %v1796_v6, %v1772_v40  ;;  %v1799_v44 = vmul.u32 %v1797_v56, %v1772_v40  ;;  %v1800_v42 = vmul.u32 %v1796_v6, %v1773_v48 }
 0x18c   :  { %v1674_v28 = vsel %vm1672_vm2, %v1673_v7, %v4662_v12  ;;  %v1781_v1 = vshrl.u32 %v1777_v57, 16  ;;  %v1787_v4 = vadd.s32 %v1785_v54, %v1779_v60  ;;  %vm1788_vm6 = vc.u32 %v1786_v13, %v1782_v33 }
 0x18d   :  { %v1789_v8 = vsel %vm1788_vm6, 1, %v5658_v27  ;;  %v1801_v14 = vmul.u32 %v1797_v56, %v1773_v48  ;;  %v1802_v61 = vshll.u32 %v1799_v44, 16  ;;  %v1804_v47 = vshll.u32 %v1800_v42, 16 }
 0x18e   :  { %v1739_v10 = vshrl.u32 %v5650_v58, %v4543_v24  ;;  %v1791_v26 = vadd.s32 %v1789_v8, %v1787_v4  ;;  %v1884_v5 = vand.u32 8388607, %v5631_v38  ;;  %vm1888_vm11 = vcmp.gt.s32.totalorder %v1887_v31, 0 }
 0x18f   :  { %v1760_v40 = vsel %vm1758_vm3, %v4591_v18, 2102212464  ;;  %vm1806_vm14 = vc.u32 %v1798_v39, %v1802_v61  ;;  %v1808_v57 = vadd.s32 %v1802_v61, %v1798_v39  ;;  %v1889_v6 = vsel %vm1888_vm11, %v1887_v31, 0 }
 0x190   :  { %v1675_v7 = vclz %v1674_v28  ;;  %v1783_v60 = vshrl.u32 %v1778_v52, 16  ;;  %v1792_v48 = vadd.s32 %v1791_v26, %v1781_v1  ;;  %v1807_v56 = vsel %vm1806_vm14, 1, %v5658_v27 }
 0x191   :  { %v1803_v33 = vshrl.u32 %v1799_v44, 16  ;;  %v1809_v13 = vadd.s32 %v1807_v56, %v1801_v14  ;;  %vm1810_vm1 = vc.u32 %v1808_v57, %v1804_v47  ;;  %v1891_v24 = vand.u32 31, %v1889_v6 }
 0x192   :  { %v1529_v54 = vsub.s32 4294967266, %v4688_v22  ;;  %v1759_v4 = vsel %vm1755_vm15, %v1739_v10, %v4602_v36  ;;  %v1761_v18 = vsel %vm1757_vm12, %v4589_v20, %v1760_v40  ;;  %v1811_v31 = vsel %vm1810_vm1, 1, %v5658_v27 }
 0x193   :  { %v1805_v52 = vshrl.u32 %v1800_v42, 16  ;;  %v1813_v39 = vadd.s32 %v1811_v31, %v1809_v13  ;;  %v1885_v28 = vor.u32 8388608, %v1884_v5  ;;  %v4711_v1 = vsub.s32 32, %v1891_v24 }
 0x194   :  { %v2517_v44 = vadd.s32 4294967294, %v1675_v7  ;;  %v4713_v8 = vadd.s32 %v1792_v48, %v1783_v60  ;;  %v4715_v14 = vadd.s32 %v1808_v57, %v1804_v47  ;;  %v1894_v61 = vshll.u32 %v5650_v58, %v1891_v24 }
 0x195   :  { %v1762_v36 = vsel %vm1756_vm4, %v1759_v4, %v1761_v18  ;;  %v1814_v10 = vadd.s32 %v1813_v39, %v1803_v33  ;;  %v1895_v20 = vshrl.u32 %v5746_v15, %v4711_v1  ;;  %v1897_v42 = vshll.u32 %v5746_v15, %v1891_v24 }
 0x196   :  { %v4723_v26 = vshrl.u32 %v1889_v6, 5  ;;  %v1898_v5 = vshrl.u32 %v5747_v46, %v4711_v1  ;;  %v1900_v40 = vshll.u32 %v5747_v46, %v1891_v24  ;;  %v1903_v47 = vshll.u32 %v5683_v17, %v1891_v24 }
 0x197   :  { %v1815_v57 = vadd.s32 %v1814_v10, %v1805_v52  ;;  %v1901_v9 = vshrl.u32 %v5683_v17, %v4711_v1  ;;  %v1904_v7 = vshrl.u32 %v5684_v41, %v4711_v1  ;;  %v1906_v60 = vshll.u32 %v5684_v41, %v1891_v24 }
 0x198   :  { %vm2518_vm8 = vcmp.lt.s32.totalorder %v2517_v44, 0  ;;  %v1816_v6 = vmul.u32 %v4600_v35, %v1762_v36  ;;  %vm1818_vm9 = vc.u32 %v4713_v8, %v4715_v14  ;;  %v4737_v48 = vor.u32 %v1895_v20, %v1894_v61 }
 0x199   :  { %v1819_v56 = vadd.s32 1, %v1815_v57  ;;  %v4739_v33 = vor.u32 %v1898_v5, %v1897_v42  ;;  %v1905_v13 = vor.u32 %v1904_v7, %v1903_v47  ;;  %v1907_v4 = vshrl.u32 %v5687_v55, %v4711_v1 }
 0x19a   :  { %v1525_v18 = vsub.s32 32, %v4688_v22  ;;  %v1530_v31 = vadd.s32 127, %v1529_v54  ;;  %vm1909_vm0 = vcmp.lt.s32.totalorder %v4723_v26, 1  ;;  %vm1912_vm7 = vcmp.lt.s32.totalorder %v4723_v26, 4 }
 0x19b   :  { %v1678_v35 = vsel %vm2518_vm8, 0, %v2517_v44  ;;  %v1820_v24 = vsel %vm1818_vm9, %v1819_v56, %v1815_v57  ;;  %v4746_v52 = vor.u32 %v1901_v9, %v1900_v40  ;;  %v1908_v39 = vor.u32 %v1907_v4, %v1906_v60 }
 0x19c   :  { %v4750_v61 = vmul.f32 %v4681_v25, %v4681_v25  ;;  %v1821_v36 = vadd.s32 %v1820_v24, %v1816_v6  ;;  %vm1911_vm15 = vcmp.lt.s32.totalorder %v4723_v26, 3  ;;  %v4753_v10 = vshll.u32 %v1885_v28, 8 }
 0x19d   :  { %v1247_v54 = vmul.f32 %v4670_v62, %v4532_v16  ;;  %vm1910_vm3 = vcmp.lt.s32.totalorder %v4723_v26, 2  ;;  %v1917_v44 = vsel %vm1909_vm0, %v4737_v48, %v4739_v33  ;;  %v1918_v20 = vsel %vm1912_vm7, %v1905_v13, 920167782 }
 0x19e   :  { %v1390_v42 = vmul.f32 -0.001358992, %v4750_v61  ;;  %v1526_v5 = vshll.u32 %v4535_v21, %v4688_v22  ;;  %v1683_v28 = vsub.s32 4294967266, %v1678_v35  ;;  %v1822_v40 = vadd.s32 536870912, %v1821_v36 }
 0x19f   :  { %v1527_v47 = vshrl.u32 %v4686_v0, %v1525_v18  ;;  %v1531_v16 = vshll.u32 %v1530_v31, 23  ;;  %v1919_v62 = vsel %vm1911_vm15, %v4746_v52, %v1918_v20  ;;  %v1922_v57 = vsel %vm1912_vm7, %v1908_v39, 1326507024 }
 0x1a0   :  { %v4773_v9 = vshrl.u32 %v1822_v40, 30  ;;  %v1920_v7 = vsel %vm1910_vm3, %v1917_v44, %v1919_v62  ;;  %v1921_v21 = vsel %vm1909_vm0, %v4739_v33, %v4746_v52  ;;  %v1926_v0 = vand.u32 65535, %v4753_v10 }
 0x1a1   :  { %v1663_v22 = vadd.s32 %v4494_v53, %v4492_v29  ;;  %v1679_v60 = vsub.s32 32, %v1678_v35  ;;  %v1923_v6 = vsel %vm1911_vm15, %v1905_v13, %v1922_v57  ;;  %v1951_v56 = vshrl.u32 %v1920_v7, 16 }
 0x1a2   :  { %5768 = vst [vmem:[#allocation13_spill] sm:$0xff] %v4773_v9  ;;  %v1684_v4 = vadd.s32 127, %v1683_v28  ;;  %v1824_v18 = vshll.u32 %v4773_v9, 30  ;;  %v1927_v31 = vshrl.u32 %v4753_v10, 16  ;;  %v1950_v24 = vand.u32 65535, %v1920_v7 }
 0x1a3   :  { %v4788_v39 = vadd.f32 1.0, %v1247_v54  ;;  %v1391_v44 = vadd.f32 0.041655596, %v1390_v42  ;;  %v1397_v20 = vmul.f32 -0.00019511016, %v4750_v61  ;;  %v1924_v40 = vsel %vm1910_vm3, %v1921_v21, %v1923_v6 }
 0x1a4   :  { %v1528_v29 = vor.u32 %v1527_v47, %v1526_v5  ;;  %v1532_v53 = vor.u32 4788187, %v1531_v16  ;;  %v4793_v62 = vsub.s32 %v1821_v36, %v1824_v18  ;;  %v4795_v13 = vmul.u32 %v1951_v56, %v1926_v0 }
 0x1a5   :  { %v1680_v28 = vshll.u32 %v4662_v12, %v1678_v35  ;;  %v1681_v57 = vshrl.u32 %v1663_v22, %v1679_v60  ;;  %v1928_v38 = vand.u32 65535, %v1924_v40  ;;  %v1929_v11 = vshrl.u32 %v1924_v40, 16 }
 0x1a6   :  { %v1685_v7 = vshll.u32 %v1684_v4, 23  ;;  %vm1826_vm12 = vcmp.lt.s32.totalorder %v4793_v62, 0  ;;  %v1827_v54 = vsub.s32 0, %v4793_v62  ;;  %v4800_v42 = vmul.u32 %v1950_v24, %v1927_v31 }
 0x1a7   :  { %v1398_v3 = vadd.f32 0.008332121, %v1397_v20  ;;  %v1930_v21 = vmul.u32 %v1928_v38, %v1926_v0  ;;  %v1931_v5 = vmul.u32 %v1929_v11, %v1926_v0  ;;  %v1932_v47 = vmul.u32 %v1928_v38, %v1927_v31 }
 0x1a8   :  { %v1535_v36 = vcvt.s32.f32 %v1528_v29  ;;  %v1828_v16 = vsel %vm1826_vm12, %v1827_v54, %v4793_v62  ;;  %v1952_v6 = vmul.u32 %v1950_v24, %v1926_v0  ;;  %v1956_v12 = vshll.u32 %v4795_v13, 16 }
 0x1a9   :  { %v1533_v35 = vand.u32 2147483647, %v1532_v53  ;;  %v1829_v22 = vclz %v1828_v16  ;;  %v1933_v60 = vmul.u32 %v1929_v11, %v1927_v31  ;;  %v1934_v4 = vshll.u32 %v1931_v5, 16  ;;  %v5769_v53 = vld [vmem:[#allocation15_spill] sm:$0xff] }
 0x1aa   :  { %v1682_v18 = vor.u32 %v1681_v57, %v1680_v28  ;;  %v1686_v40 = vor.u32 4788187, %v1685_v7  ;;  %v1936_v2 = vshll.u32 %v1932_v47, 16  ;;  %v1958_v9 = vshll.u32 %v4800_v42, 16 }
 0x1ab   :  { %v2520_v19 = vadd.s32 4294967294, %v1829_v22  ;;  %v1893_v20 = vshrl.u32 %v5650_v58, %v4711_v1  ;;  %vm1938_vm4 = vc.u32 %v1930_v21, %v1934_v4  ;;  %v1940_v38 = vadd.s32 %v1934_v4, %v1930_v21 }
 0x1ac   :  { %v1939_v29 = vsel %vm1938_vm4, 1, %v5658_v27  ;;  %v1955_v0 = vmul.u32 %v1951_v56, %v1927_v31  ;;  %vm1960_vm10 = vc.u32 %v1952_v6, %v1956_v12  ;;  %v1962_v24 = vadd.s32 %v1956_v12, %v1952_v6 }
 0x1ad   :  { %vm1417_vm2 = vcmp.lt.s32.totalorder %v5769_v53, 0  ;;  %v1536_v11 = vmul.f32 %v1535_v36, %v1533_v35  ;;  %vm2521_vm13 = vcmp.lt.s32.totalorder %v2520_v19, 0  ;;  %v1914_v28 = vsel %vm1912_vm7, %v4746_v52, 2102212464 }
 0x1ae   :  { %v1941_v57 = vadd.s32 %v1939_v29, %v1933_v60  ;;  %v4812_v7 = vsel %vm2521_vm13, 0, %v2520_v19  ;;  %vm1942_vm6 = vc.u32 %v1940_v38, %v1936_v2  ;;  %v1961_v1 = vsel %vm1960_vm10, 1, %v5658_v27  ;;  %v5770_v60 = vld [vmem:[#allocation19_spill] sm:$0xff] }
 0x1af   :  { %vm1964_vm11 = vc.u32 %v1962_v24, %v1958_v9  ;;  %v1687_v54 = vand.u32 2147483647, %v1686_v40  ;;  %v1689_v21 = vcvt.s32.f32 %v1682_v18  ;;  %v1913_v56 = vsel %vm1909_vm0, %v1893_v20, %v4737_v48  ;;  %v5771_v18 = vld [vmem:[#allocation11_spill] sm:$0xff] }
 0x1b0   :  { %v1935_v31 = vshrl.u32 %v1931_v5, 16  ;;  %v1915_v36 = vsel %vm1911_vm15, %v4739_v33, %v1914_v28  ;;  %v1943_v52 = vsel %vm1942_vm6, 1, %v5658_v27  ;;  %v1957_v19 = vshrl.u32 %v4795_v13, 16  ;;  %v5772_v33 = vld [vmem:[#allocation12_spill] sm:$0xff] }
 0x1b1   :  { %v1963_v16 = vadd.s32 %v1961_v1, %v1955_v0  ;;  %v1837_v2 = vsub.s32 4294967266, %v4812_v7  ;;  %v1937_v6 = vshrl.u32 %v1932_v47, 16  ;;  %v1945_v12 = vadd.s32 %v1943_v52, %v1941_v57 }
 0x1b2   :  { %v1965_v35 = vsel %vm1964_vm11, 1, %v5658_v27  ;;  %v1392_v22 = vmul.f32 %v1391_v44, %v4750_v61  ;;  %v1959_v48 = vshrl.u32 %v4800_v42, 16  ;;  %v2034_v4 = vand.u32 2139095040, %v5770_v60 }
 0x1b3   :  { %v1967_v5 = vadd.s32 %v1965_v35, %v1963_v16  ;;  %vm942_vm14 = vweird.f32 %v5771_v18  ;;  %vm1096_vm1 = vweird.f32 %v5772_v33  ;;  %v1399_v13 = vmul.f32 %v1398_v3, %v4750_v61 }
 0x1b4   :  { %v1537_v40 = vxor.u32 2147483648, %v1536_v11  ;;  %v1946_v20 = vadd.s32 %v1945_v12, %v1935_v31  ;;  %v4831_v38 = vadd.s32 %v1962_v24, %v1958_v9  ;;  %vm1253_vm8 = vcmp.eq.s32.totalorder %v4666_v34, 0 }
 0x1b5   :  { %vm1256_vm9 = vcmp.eq.s32.totalorder %v4666_v34, 2  ;;  %v1690_v44 = vmul.f32 %v1689_v21, %v1687_v54  ;;  %v1916_v42 = vsel %vm1910_vm3, %v1913_v56, %v1915_v36  ;;  %v1968_v47 = vadd.s32 %v1967_v5, %v1957_v19  ;;  %v5788_v56 = vld [vmem:[#allocation13_spill] sm:$0xff] }
 0x1b6   :  { %v2035_v29 = vshrl.u32 %v2034_v4, 23  ;;  %v1817_v0 = vadd.s32 %v4715_v14, %v4713_v8  ;;  %v1833_v28 = vsub.s32 32, %v4812_v7  ;;  %v1838_v3 = vadd.s32 127, %v1837_v2  ;;  %v5776_v2 = vld [vmem:[#allocation16_spill] sm:$0xff] }
 0x1b7   :  { %v4840_v57 = vadd.s32 %v1946_v20, %v1937_v6  ;;  %v1241_v9 = vadd.f32 1.0, %v4673_v43  ;;  %v1249_v24 = vmul.f32 %v4788_v39, %v4509_v59  ;;  %v1969_v1 = vadd.s32 %v1968_v47, %v1959_v48 }
 0x1b8   :  { %v2525_v54 = vadd.s32 4294967169, %v2035_v29  ;;  %v1393_v21 = vadd.f32 -0.4999988, %v1392_v22  ;;  %v5773_v26 = vand.u32 2147483647, %v5769_v53  ;;  %v1970_v8 = vmul.u32 %v4753_v10, %v1916_v42 }
 0x1b9   :  { %vm1972_vm7 = vc.u32 %v4840_v57, %v4831_v38  ;;  %v1400_v14 = vadd.f32 -0.16666654, %v1399_v13  ;;  %v1538_v43 = vsel %vm1417_vm2, %v1537_v40, %v1536_v11  ;;  %v1973_v31 = vadd.s32 1, %v1969_v1 }
 0x1ba   :  { %vm4847_vm0 = vcmp.le.f32.partialorder %v5773_v26, 0.7853982  ;;  %v2041_v59 = vadd.s32 1, %v2525_v54  ;;  %v1691_v39 = vxor.u32 2147483648, %v1690_v44  ;;  %v1834_v36 = vshll.u32 %v4793_v62, %v4812_v7 }
 0x1bb   :  { %v1835_v52 = vshrl.u32 %v1817_v0, %v1833_v28  ;;  %v1839_v19 = vshll.u32 %v1838_v3, 23  ;;  %v1257_v16 = vxor.u32 2147483648, %v1241_v9  ;;  %vm1571_vm15 = vcmp.lt.s32.totalorder %v5776_v2, 0 }
 0x1bc   :  { %v1974_v6 = vsel %vm1972_vm7, %v1973_v31, %v1969_v1  ;;  %vm2042_vm3 = vcmp.gt.s32.totalorder %v2041_v59, 0  ;;  %v1254_v10 = vxor.u32 2147483648, %v1249_v24  ;;  %v5777_v12 = vand.u32 2147483647, %v5776_v2 }
 0x1bd   :  { %v1975_v11 = vadd.s32 %v1974_v6, %v1970_v8  ;;  %v2043_v22 = vsel %vm2042_vm3, %v2041_v59, 0  ;;  %v1394_v48 = vmul.f32 %v1393_v21, %v4750_v61  ;;  %v1401_v62 = vmul.f32 %v1400_v14, %v4750_v61 }
 0x1be   :  { %vm4861_vm12 = vcmp.le.f32.partialorder %v5777_v12, 0.7853982  ;;  %v4870_v7 = vsel %vm4847_vm0, %v5769_v53, %v1538_v43  ;;  %v2045_v5 = vand.u32 31, %v2043_v22  ;;  %v1692_v4 = vsel %vm1571_vm15, %v1691_v39, %v1690_v44 }
 0x1bf   :  { %v1836_v13 = vor.u32 %v1835_v52, %v1834_v36  ;;  %v1840_v40 = vor.u32 4788187, %v1839_v19  ;;  %v1976_v20 = vadd.s32 536870912, %v1975_v11  ;;  %v4877_v42 = vsel %vm942_vm14, nan, %v4644_v49 }
 0x1c0   :  { %v4882_v61 = vsel %vm1096_vm1, nan, %v4654_v30  ;;  %v5637_v47 = vand.u32 2147483647, %v5770_v60  ;;  %v4885_v29 = vsub.s32 32, %v2045_v5  ;;  %v4889_v44 = vsel %vm1253_vm8, %v1241_v9, %v1254_v10 }
 0x1c1   :  { %v4893_v0 = vsel %vm1256_vm9, %v1257_v16, %v1249_v24  ;;  %v5780_v49 = vsel %vm4648_vm5, 0, %v4659_v32  ;;  %v4901_v30 = vshrl.u32 %v1976_v20, 30  ;;  %v4903_v33 = vadd.f32 1.0, %v1394_v48 }
 0x1c2   :  { %v4899_v18 = vand.u32 3, %v5780_v49  ;;  %v1402_v28 = vadd.f32 1.0, %v1401_v62  ;;  %v4907_v3 = vmul.f32 %v4870_v7, %v4870_v7  ;;  %v4912_v9 = vsel %vm4861_vm12, %v5776_v2, %v1692_v4 }
 0x1c3   :  { %v1841_v24 = vand.u32 2147483647, %v1840_v40  ;;  %v1843_v37 = vcvt.s32.f32 %v1836_v13  ;;  %v1978_v32 = vshll.u32 %v4901_v30, 30  ;;  %v2057_v1 = vshll.u32 %v5683_v17, %v2045_v5 }
 0x1c4   :  { %v2038_v54 = vand.u32 8388607, %v5637_v47  ;;  %v4918_v21 = vshrl.u32 %v2043_v22, 5  ;;  %v2048_v26 = vshll.u32 %v5650_v58, %v2045_v5  ;;  %v2058_v8 = vshrl.u32 %v5684_v41, %v4885_v29 }
 0x1c5   :  { %v1979_v14 = vsub.s32 %v1975_v11, %v1978_v32  ;;  %v2049_v43 = vshrl.u32 %v5746_v15, %v4885_v29  ;;  %v2051_v31 = vshll.u32 %v5746_v15, %v2045_v5  ;;  %v2054_v59 = vshll.u32 %v5747_v46, %v2045_v5 }
 0x1c6   :  { %v2052_v39 = vshrl.u32 %v5747_v46, %v4885_v29  ;;  %v2055_v36 = vshrl.u32 %v5683_v17, %v4885_v29  ;;  %v2060_v52 = vshll.u32 %v5684_v41, %v2045_v5  ;;  %v2061_v19 = vshrl.u32 %v5687_v55, %v4885_v29 }
 0x1c7   :  { %v1844_v16 = vmul.f32 %v1843_v37, %v1841_v24  ;;  %vm1980_vm5 = vcmp.lt.s32.totalorder %v1979_v14, 0  ;;  %v1981_v6 = vsub.s32 0, %v1979_v14  ;;  %v2059_v10 = vor.u32 %v2058_v8, %v2057_v1 }
 0x1c8   :  { %v4935_v12 = vmul.f32 %v1402_v28, %v4681_v25  ;;  %v1551_v15 = vmul.f32 -0.00019511016, %v4907_v3  ;;  %v4940_v46 = vmul.f32 %v4912_v9, %v4912_v9  ;;  %v5781_v17 = vand.u32 2147483647, %v5759_v50 }
 0x1c9   :  { %v1982_v55 = vsel %vm1980_vm5, %v1981_v6, %v1979_v14  ;;  %v2039_v11 = vor.u32 8388608, %v2038_v54  ;;  %v2062_v22 = vor.u32 %v2061_v19, %v2060_v52  ;;  %vm2066_vm10 = vcmp.lt.s32.totalorder %v4918_v21, 4 }
 0x1ca   :  { %vm4944_vm4 = vcmp.le.f32.partialorder %v5781_v17, 0.7853982  ;;  %v1983_v48 = vclz %v1982_v55  ;;  %v4949_v25 = vor.u32 %v2049_v43, %v2048_v26  ;;  %v4951_v62 = vor.u32 %v2052_v39, %v2051_v31 }
 0x1cb   :  { %v2056_v5 = vor.u32 %v2055_v36, %v2054_v59  ;;  %v1845_v4 = vxor.u32 2147483648, %v1844_v16  ;;  %vm2063_vm13 = vcmp.lt.s32.totalorder %v4918_v21, 1  ;;  %vm2065_vm6 = vcmp.lt.s32.totalorder %v4918_v21, 3 }
 0x1cc   :  { %v2072_v13 = vsel %vm2066_vm10, %v2059_v10, 920167782  ;;  %v1544_v40 = vmul.f32 -0.001358992, %v4907_v3  ;;  %v1552_v20 = vadd.f32 0.008332121, %v1551_v15  ;;  %v1971_v24 = vadd.s32 %v4831_v38, %v4840_v57 }
 0x1cd   :  { %vm1725_vm11 = vcmp.lt.s32.totalorder %v5759_v50, 0  ;;  %v2523_v49 = vadd.s32 4294967294, %v1983_v48  ;;  %v1705_v28 = vmul.f32 -0.00019511016, %v4940_v46  ;;  %v2076_v37 = vsel %vm2066_vm10, %v2062_v22, 1326507024 }
 0x1ce   :  { %v4964_v32 = vshll.u32 %v2039_v11, 8  ;;  %vm2064_vm1 = vcmp.lt.s32.totalorder %v4918_v21, 2  ;;  %v2071_v1 = vsel %vm2063_vm13, %v4949_v25, %v4951_v62  ;;  %v2073_v54 = vsel %vm2065_vm6, %v2056_v5, %v2072_v13 }
 0x1cf   :  { %vm2524_vm14 = vcmp.lt.s32.totalorder %v2523_v49, 0  ;;  %v1846_v26 = vsel %vm1725_vm11, %v1845_v4, %v1844_v16  ;;  %v2075_v57 = vsel %vm2063_vm13, %v4951_v62, %v2056_v5  ;;  %v2077_v8 = vsel %vm2065_vm6, %v2059_v10, %v2076_v37 }
 0x1d0   :  { %v1986_v38 = vsel %vm2524_vm14, 0, %v2523_v49  ;;  %v4980_v43 = vadd.f32 0.041655596, %v1544_v40  ;;  %v4983_v36 = vmul.f32 %v1552_v20, %v4907_v3  ;;  %v2074_v52 = vsel %vm2064_vm1, %v2071_v1, %v2073_v54 }
 0x1d1   :  { %v1987_v31 = vsub.s32 32, %v1986_v38  ;;  %v1988_v59 = vshll.u32 %v1979_v14, %v1986_v38  ;;  %v1991_v39 = vsub.s32 4294967266, %v1986_v38  ;;  %v2080_v19 = vand.u32 65535, %v4964_v32 }
 0x1d2   :  { %v2081_v16 = vshrl.u32 %v4964_v32, 16  ;;  %v4992_v6 = vsel %vm4944_vm4, %v5759_v50, %v1846_v26  ;;  %v2078_v14 = vsel %vm2064_vm1, %v2075_v57, %v2077_v8  ;;  %v1698_v17 = vmul.f32 -0.001358992, %v4940_v46 }
 0x1d3   :  { %v1989_v10 = vshrl.u32 %v1971_v24, %v1987_v31  ;;  %v1992_v15 = vadd.s32 127, %v1991_v39  ;;  %v1706_v55 = vadd.f32 0.008332121, %v1705_v28  ;;  %v2082_v11 = vand.u32 65535, %v2078_v14 }
 0x1d4   :  { %v2083_v22 = vshrl.u32 %v2078_v14, 16  ;;  %v2104_v13 = vand.u32 65535, %v2074_v52  ;;  %v2105_v40 = vshrl.u32 %v2074_v52, 16  ;;  %v4999_v20 = vmul.f32 %v4992_v6, %v4992_v6 }
 0x1d5   :  { %v1990_v48 = vor.u32 %v1989_v10, %v1988_v59  ;;  %v1993_v4 = vshll.u32 %v1992_v15, 23  ;;  %v2084_v49 = vmul.u32 %v2082_v11, %v2080_v19  ;;  %v2086_v24 = vmul.u32 %v2082_v11, %v2081_v16 }
 0x1d6   :  { %v2085_v37 = vmul.u32 %v2083_v22, %v2080_v19  ;;  %v5784_v1 = vand.u32 2147483647, %v5762_v45  ;;  %vm1879_vm9 = vcmp.lt.s32.totalorder %v5762_v45, 0  ;;  %v2047_v38 = vshrl.u32 %v5650_v58, %v4885_v29 }
 0x1d7   :  { %v1994_v28 = vor.u32 4788187, %v1993_v4  ;;  %v1997_v26 = vcvt.s32.f32 %v1990_v48  ;;  %v2087_v57 = vmul.u32 %v2083_v22, %v2081_v16  ;;  %v2090_v31 = vshll.u32 %v2086_v24, 16 }
 0x1d8   :  { %vm5003_vm8 = vcmp.le.f32.partialorder %v5784_v1, 0.7853982  ;;  %v2088_v8 = vshll.u32 %v2085_v37, 16  ;;  %v2106_v39 = vmul.u32 %v2104_v13, %v2080_v19  ;;  %v2107_v52 = vmul.u32 %v2105_v40, %v2080_v19 }
 0x1d9   :  { %v1995_v59 = vand.u32 2147483647, %v1994_v28  ;;  %v2108_v10 = vmul.u32 %v2104_v13, %v2081_v16  ;;  %v1859_v15 = vmul.f32 -0.00019511016, %v4999_v20  ;;  %v2068_v14 = vsel %vm2066_vm10, %v2056_v5, 2102212464 }
 0x1da   :  { %vm2092_vm7 = vc.u32 %v2084_v49, %v2088_v8  ;;  %v2094_v11 = vadd.s32 %v2088_v8, %v2084_v49  ;;  %v2109_v4 = vmul.u32 %v2105_v40, %v2081_v16  ;;  %v2110_v47 = vshll.u32 %v2107_v52, 16 }
 0x1db   :  { %v1998_v1 = vmul.f32 %v1997_v26, %v1995_v59  ;;  %v2093_v48 = vsel %vm2092_vm7, 1, %v5658_v27  ;;  %v2089_v58 = vshrl.u32 %v2085_v37, 16  ;;  %v2112_v22 = vshll.u32 %v2108_v10, 16 }
 0x1dc   :  { %v2095_v29 = vadd.s32 %v2093_v48, %v2087_v57  ;;  %vm2096_vm3 = vc.u32 %v2094_v11, %v2090_v31  ;;  %vm1407_vm5 = vcmp.eq.s32.totalorder %v4899_v18, 0  ;;  %vm2114_vm14 = vc.u32 %v2106_v39, %v2110_v47 }
 0x1dd   :  { %v1999_v19 = vxor.u32 2147483648, %v1998_v1  ;;  %v2097_v13 = vsel %vm2096_vm3, 1, %v5658_v27  ;;  %v2116_v28 = vadd.s32 %v2110_v47, %v2106_v39  ;;  %v2067_v5 = vsel %vm2063_vm13, %v2047_v38, %v4949_v25 }
 0x1de   :  { %v2091_v49 = vshrl.u32 %v2086_v24, 16  ;;  %v2099_v26 = vadd.s32 %v2097_v13, %v2095_v29  ;;  %v2115_v16 = vsel %vm2114_vm14, 1, %v5658_v27  ;;  %v2111_v37 = vshrl.u32 %v2107_v52, 16 }
 0x1df   :  { %v2000_v40 = vsel %vm1879_vm9, %v1999_v19, %v1998_v1  ;;  %v2117_v57 = vadd.s32 %v2115_v16, %v2109_v4  ;;  %vm2118_vm10 = vc.u32 %v2116_v28, %v2112_v22  ;;  %vm1252_vm7 = vcmp.lt.s32.totalorder %v4666_v34, 2 }
 0x1e0   :  { %v5026_v47 = vsel %vm5003_vm8, %v5762_v45, %v2000_v40  ;;  %v2069_v25 = vsel %vm2065_vm6, %v4951_v62, %v2068_v14  ;;  %v2100_v24 = vadd.s32 %v2099_v26, %v2089_v58  ;;  %v2119_v38 = vsel %vm2118_vm10, 1, %v5658_v27 }
 0x1e1   :  { %vm1406_vm13 = vcmp.lt.s32.totalorder %v4899_v18, 2  ;;  %v1699_v8 = vadd.f32 0.041655596, %v1698_v17  ;;  %v5035_v31 = vmul.f32 %v5026_v47, %v5026_v47  ;;  %v2113_v59 = vshrl.u32 %v2108_v10, 16 }
 0x1e2   :  { %v2121_v39 = vadd.s32 %v2119_v38, %v2117_v57  ;;  %v1411_v52 = vxor.u32 2147483648, %v4903_v33  ;;  %v1539_v11 = vsub.s32 4, %v4482_v51  ;;  %v5039_v1 = vadd.s32 %v2100_v24, %v2091_v49  ;;  %v5787_v38 = vld [vmem:[#allocation14_spill] sm:$0xff] }
 0x1e3   :  { %v5041_v48 = vadd.s32 %v2116_v28, %v2112_v22  ;;  %v1707_v62 = vmul.f32 %v1706_v55, %v4940_v46  ;;  %v2013_v27 = vmul.f32 -0.00019511016, %v5035_v31  ;;  %v2070_v17 = vsel %vm2064_vm1, %v2067_v5, %v2069_v25 }
 0x1e4   :  { %v2122_v14 = vadd.s32 %v2121_v39, %v2111_v37  ;;  %v1408_v4 = vxor.u32 2147483648, %v4935_v12  ;;  %vm1410_vm6 = vcmp.eq.s32.totalorder %v4899_v18, 2  ;;  %v1852_v10 = vmul.f32 -0.001358992, %v4999_v20 }
 0x1e5   :  { %v1860_v58 = vadd.f32 0.008332121, %v1859_v15  ;;  %v1546_v29 = vmul.f32 %v4980_v43, %v4907_v3  ;;  %v1554_v22 = vadd.f32 -0.16666654, %v4983_v36  ;;  %v1700_v55 = vmul.f32 %v1699_v8, %v4940_v46 }
 0x1e6   :  { %v2123_v19 = vadd.s32 %v2122_v14, %v2113_v59  ;;  %v2006_v13 = vmul.f32 -0.001358992, %v5035_v31  ;;  %v2014_v21 = vadd.f32 0.008332121, %v2013_v27  ;;  %v2124_v28 = vmul.u32 %v4964_v32, %v2070_v17 }
 0x1e7   :  { %vm2126_vm1 = vc.u32 %v5039_v1, %v5041_v48  ;;  %v1412_v5 = vsel %vm1410_vm6, %v1411_v52, %v4935_v12  ;;  %v1540_v15 = vsel %vm1417_vm2, %v1539_v11, %v4482_v51  ;;  %v1708_v43 = vadd.f32 -0.16666654, %v1707_v62 }
 0x1e8   :  { %v2127_v49 = vadd.s32 1, %v2123_v19  ;;  %v1409_v36 = vsel %vm1407_vm5, %v4903_v33, %v1408_v4  ;;  %v1693_v26 = vsub.s32 4, %v4597_v23  ;;  %v1853_v16 = vadd.f32 0.041655596, %v1852_v10 }
 0x1e9   :  { %v1861_v32 = vmul.f32 %v1860_v58, %v4999_v20  ;;  %v1547_v40 = vadd.f32 -0.4999988, %v1546_v29  ;;  %v1555_v37 = vmul.f32 %v1554_v22, %v4907_v3  ;;  %v1701_v57 = vadd.f32 -0.4999988, %v1700_v55 }
 0x1ea   :  { %v2128_v12 = vsel %vm2126_vm1, %v2127_v49, %v2123_v19  ;;  %vm1250_vm3 = vweird.f32 %v5754_v63  ;;  %v2007_v25 = vadd.f32 0.041655596, %v2006_v13  ;;  %v2015_v51 = vmul.f32 %v2014_v21, %v5035_v31 }
 0x1eb   :  { %v2129_v24 = vadd.s32 %v2128_v12, %v2124_v28  ;;  %v1259_v33 = vsel %vm1252_vm7, %v4889_v44, %v4893_v0  ;;  %vm1404_vm2 = vweird.f32 %v5787_v38  ;;  %v1542_v8 = vsel %vm4847_vm0, 0, %v1540_v15 }
 0x1ec   :  { %v1709_v59 = vmul.f32 %v1708_v43, %v4940_v46  ;;  %v1413_v39 = vsel %vm1406_vm13, %v1409_v36, %v1412_v5  ;;  %v1854_v52 = vmul.f32 %v1853_v16, %v4999_v20  ;;  %v1862_v11 = vadd.f32 -0.16666654, %v1861_v32 }
 0x1ed   :  { %v2130_v62 = vadd.s32 536870912, %v2129_v24  ;;  %v1548_v27 = vmul.f32 %v1547_v40, %v4907_v3  ;;  %v1556_v17 = vadd.f32 1.0, %v1555_v37  ;;  %v1694_v34 = vsel %vm1571_vm15, %v1693_v26, %v4597_v23 }
 0x1ee   :  { %v1702_v44 = vmul.f32 %v1701_v57, %v4940_v46  ;;  %v1847_v0 = vsub.s32 4, %v5788_v56  ;;  %v2008_v14 = vmul.f32 %v2007_v25, %v5035_v31  ;;  %v2016_v4 = vadd.f32 -0.16666654, %v2015_v51 }
 0x1ef   :  { %v5088_v18 = vshrl.u32 %v2130_v62, 30  ;;  %v5092_v10 = vsel %vm1250_vm3, nan, %v1259_v33  ;;  %v5096_v3 = vsel %vm1404_vm2, nan, %v1413_v39  ;;  %v5098_v58 = vand.u32 3, %v1542_v8 }
 0x1f0   :  { %v1710_v23 = vadd.f32 1.0, %v1709_v59  ;;  %v1696_v46 = vsel %vm4861_vm12, 0, %v1694_v34  ;;  %v1855_v29 = vadd.f32 -0.4999988, %v1854_v52  ;;  %v1863_v22 = vmul.f32 %v1862_v11, %v4999_v20  ;;  %v5789_v52 = vld [vmem:[#allocation20_spill] sm:$0xff] }
 0x1f1   :  { %v2132_v55 = vshll.u32 %v5088_v18, 30  ;;  %v1549_v19 = vadd.f32 1.0, %v1548_v27  ;;  %v1557_v63 = vmul.f32 %v1556_v17, %v4870_v7  ;;  %v1703_v13 = vadd.f32 1.0, %v1702_v44  ;;  %v5790_v44 = vld [vmem:[#allocation23_spill] sm:$0xff] }
 0x1f2   :  { %v2001_v21 = vsub.s32 4, %v4901_v30  ;;  %v1848_v28 = vsel %vm1725_vm11, %v1847_v0, %v5788_v56  ;;  %v2009_v5 = vadd.f32 -0.4999988, %v2008_v14  ;;  %v2017_v15 = vmul.f32 %v2016_v4, %v5035_v31 }
 0x1f3   :  { %v2133_v35 = vsub.s32 %v2129_v24, %v2132_v55  ;;  %vm1561_vm0 = vcmp.eq.s32.totalorder %v5098_v58, 0  ;;  %vm1564_vm15 = vcmp.eq.s32.totalorder %v5098_v58, 2  ;;  %v1711_v43 = vmul.f32 %v1710_v23, %v4912_v9 }
 0x1f4   :  { %v1713_v49 = vand.u32 3, %v1696_v46  ;;  %v1856_v7 = vmul.f32 %v1855_v29, %v4999_v20  ;;  %v1864_v36 = vadd.f32 1.0, %v1863_v22  ;;  %v1562_v16 = vxor.u32 2147483648, %v1557_v63 }
 0x1f5   :  { %vm2134_vm12 = vcmp.lt.s32.totalorder %v2133_v35, 0  ;;  %v2135_v26 = vsub.s32 0, %v2133_v35  ;;  %v1565_v32 = vxor.u32 2147483648, %v1549_v19  ;;  %v1850_v40 = vsel %vm4944_vm4, 0, %v1848_v28  ;;  %v5794_v28 = vld [vmem:[#allocation8_spill] sm:$0xff] }
 0x1f6   :  { %v2002_v37 = vsel %vm1879_vm9, %v2001_v21, %v4901_v30  ;;  %v1719_v57 = vxor.u32 2147483648, %v1703_v13  ;;  %v2010_v12 = vmul.f32 %v2009_v5, %v5035_v31  ;;  %v2018_v25 = vadd.f32 1.0, %v2017_v15 }
 0x1f7   :  { %v2136_v9 = vsel %vm2134_vm12, %v2135_v26, %v2133_v35  ;;  %vm1715_vm11 = vcmp.eq.s32.totalorder %v1713_v49, 0  ;;  %v1716_v51 = vxor.u32 2147483648, %v1711_v43  ;;  %vm1718_vm5 = vcmp.eq.s32.totalorder %v1713_v49, 2 }
 0x1f8   :  { %v2137_v20 = vclz %v2136_v9  ;;  %v1857_v24 = vadd.f32 1.0, %v1856_v7  ;;  %v1865_v33 = vmul.f32 %v1864_v36, %v4992_v6  ;;  %v1867_v38 = vand.u32 3, %v1850_v40  ;;  %v5797_v36 = vld [vmem:[#allocation31_spill] sm:$0xff]  ;;  %v5799_v9 = vld [vmem:[#allocation22_spill] sm:$0xff] }
 0x1f9   :  { %v2004_v41 = vsel %vm5003_vm8, 0, %v2002_v37  ;;  %vm1558_vm4 = vweird.f32 %v5769_v53  ;;  %vm1560_vm9 = vcmp.lt.s32.totalorder %v5098_v58, 2  ;;  %v1563_v30 = vsel %vm1561_vm0, %v1549_v19, %v1562_v16  ;;  %v5793_v58 = vld [vmem:[#allocation29_spill] sm:$0xff]  ;;  %v5798_v37 = vld [vmem:[#allocation32_spill] sm:$0xff]  ;;  %v5801_v53 = vld [vmem:[#allocation27_spill] sm:$0xff] }
 0x1fa   :  { %v1566_v31 = vsel %vm1564_vm15, %v1565_v32, %v1557_v63  ;;  %v2526_v8 = vadd.s32 4294967294, %v2137_v20  ;;  %vm1714_vm14 = vcmp.lt.s32.totalorder %v1713_v49, 2  ;;  %v1720_v59 = vsel %vm1718_vm5, %v1719_v57, %v1711_v43  ;;  %v5791_v63 = vld [vmem:[#allocation28_spill] sm:$0xff]  ;;  %v5795_v43 = vld [vmem:[#allocation30_spill] sm:$0xff]  ;;  %v5796_v49 = vld [vmem:[#allocation9_spill] sm:$0xff] }
 0x1fb   :  { %v2011_v39 = vadd.f32 1.0, %v2010_v12  ;;  %v2019_v6 = vmul.f32 %v2018_v25, %v5026_v47  ;;  %vm310_vm10 = vcmp.eq.f32.partialorder %v5789_v52, 0.0  ;;  %vm1712_vm8 = vweird.f32 %v5776_v2  ;;  %v5805_v2 = vld [vmem:[#allocation21_spill] sm:$0xff] }
 0x1fc   :  { %v1717_v54 = vsel %vm1715_vm11, %v1703_v13, %v1716_v51  ;;  %v2021_v11 = vand.u32 3, %v2004_v41  ;;  %v2125_v62 = vadd.s32 %v5041_v48, %v5039_v1  ;;  %vm2527_vm7 = vcmp.lt.s32.totalorder %v2526_v8, 0  ;;  %v5792_v13 = vld [vmem:[#allocation36_spill] sm:$0xff] }
 0x1fd   :  { %vm1869_vm13 = vcmp.eq.s32.totalorder %v1867_v38, 0  ;;  %v1870_v27 = vxor.u32 2147483648, %v1865_v33  ;;  %v1873_v17 = vxor.u32 2147483648, %v1857_v24  ;;  %v2140_v34 = vsel %vm2527_vm7, 0, %v2526_v8 }
 0x1fe   :  { %vm322_vm6 = vcmp.eq.f32.partialorder %v5790_v44, 0.0  ;;  %vm1872_vm1 = vcmp.eq.s32.totalorder %v1867_v38, 2  ;;  %v2141_v56 = vsub.s32 32, %v2140_v34  ;;  %v2142_v47 = vshll.u32 %v2133_v35, %v2140_v34 }
 0x1ff   :  { %v2145_v0 = vsub.s32 4294967266, %v2140_v34  ;;  %v1567_v14 = vsel %vm1560_vm9, %v1563_v30, %v1566_v31  ;;  %v1721_v4 = vsel %vm1714_vm14, %v1717_v54, %v1720_v59  ;;  %v2024_v23 = vxor.u32 2147483648, %v2019_v6  ;;  %v5803_v31 = vld [vmem:[#allocation33_spill] sm:$0xff] }
 0x200   :  { %v2027_v46 = vxor.u32 2147483648, %v2011_v39  ;;  %vm2023_vm3 = vcmp.eq.s32.totalorder %v2021_v11, 0  ;;  %vm2026_vm2 = vcmp.eq.s32.totalorder %v2021_v11, 2  ;;  %v2143_v1 = vshrl.u32 %v2125_v62, %v2141_v56 }
 0x201   :  { %v2146_v48 = vadd.s32 127, %v2145_v0  ;;  %vm1868_vm0 = vcmp.lt.s32.totalorder %v1867_v38, 2  ;;  %v1871_v29 = vsel %vm1869_vm13, %v1857_v24, %v1870_v27  ;;  %v1874_v22 = vsel %vm1872_vm1, %v1873_v17, %v1865_v33  ;;  %v5800_v33 = vld [vmem:[#allocation25_spill] sm:$0xff]  ;;  %v5807_v27 = vld [vmem:[#allocation24_spill] sm:$0xff]  ;;  %v5808_v17 = vld [vmem:[#allocation35_spill] sm:$0xff] }
 0x202   :  { %vm2022_vm15 = vcmp.lt.s32.totalorder %v2021_v11, 2  ;;  %v2144_v55 = vor.u32 %v2143_v1, %v2142_v47  ;;  %v2185_v21 = vmul.f32 %v5792_v13, %v5791_v63  ;;  %v2186_v5 = vmul.f32 %v5794_v28, %v5793_v58 }
 0x203   :  { %v2147_v19 = vshll.u32 %v2146_v48, 23  ;;  %v2025_v15 = vsel %vm2023_vm3, %v2011_v39, %v2024_v23  ;;  %v2028_v35 = vsel %vm2026_vm2, %v2027_v46, %v2019_v6  ;;  %v2187_v7 = vmul.f32 %v5796_v49, %v5795_v43 }
 0x204   :  { %v2188_v26 = vmul.f32 %v4877_v42, %v5797_v36  ;;  %v2151_v32 = vcvt.s32.f32 %v2144_v55  ;;  %v2155_v40 = vsub.s32 4, %v5088_v18  ;;  %v2189_v57 = vmul.f32 %v4882_v61, %v5798_v37  ;;  %2437 = vst [vmem:[#allocation5] sm:$0xff] %v2185_v21  ;;  %v2613_v55 = vld [vmem:[#allocation2 + $0x68] sm:$0xff]  ;;  %v2614_v21 = vld [vmem:[#allocation2 + $0x70] sm:$0xff] }
 0x205   :  { %v2148_v16 = vor.u32 4788187, %v2147_v19  ;;  %v5153_v12 = vsel %vm1558_vm4, nan, %v1567_v14  ;;  %vm1866_vm12 = vweird.f32 %v5759_v50  ;;  %v1875_v25 = vsel %vm1868_vm0, %v1871_v29, %v1874_v22  ;;  %2438 = vst [vmem:[#allocation5 + $0x8] sm:$0xff] %v2186_v5  ;;  %v2612_v29 = vld [vmem:[#allocation2 + $0x60] sm:$0xff] }
 0x206   :  { %v2190_v51 = vmul.f32 %v5092_v10, %v5799_v9  ;;  %vm2020_vm11 = vweird.f32 %v5762_v45  ;;  %v2029_v20 = vsel %vm2022_vm15, %v2025_v15, %v2028_v35  ;;  %v2191_v41 = vmul.f32 %v5096_v3, %v5800_v33  ;;  %2439 = vst [vmem:[#allocation5 + $0x10] sm:$0xff] %v2187_v7  ;;  %v2615_v15 = vld [vmem:[#allocation2 + $0x78] sm:$0xff] }
 0x207   :  { %v2149_v24 = vand.u32 2147483647, %v2148_v16  ;;  %v5802_v30 = vand.u32 2147483648, %v5789_v52  ;;  %v5172_v38 = vsel %vm1712_vm8, nan, %v1721_v4  ;;  %vm2033_vm5 = vcmp.lt.s32.totalorder %v5770_v60, 0  ;;  %2440 = vst [vmem:[#allocation5 + $0x18] sm:$0xff] %v2188_v26 }
 0x208   :  { %v2192_v8 = vmul.f32 %v5153_v12, %v5803_v31  ;;  %v5177_v59 = vsel %vm1866_vm12, nan, %v1875_v25  ;;  %v2156_v6 = vsel %vm2033_vm5, %v2155_v40, %v5088_v18  ;;  %v5804_v52 = vld [vmem:[#allocation34_spill] sm:$0xff]  ;;  %2441 = vst [vmem:[#allocation5 + $0x20] sm:$0xff] %v2189_v57  ;;  %v5806_v11 = vand.u32 2147483648, %v5790_v44  ;;  %v2617_v57 = vld [vmem:[#allocation2 + $0x88] sm:$0xff] }
 0x209   :  { %v5168_v50 = vsel %vm310_vm10, %v5802_v30, %v5801_v53  ;;  %v2152_v39 = vmul.f32 %v2151_v32, %v2149_v24  ;;  %v2193_v54 = vmul.f32 %v5172_v38, %v5804_v52  ;;  %v331_v34 = vmul.f32 %v5808_v17, %v5807_v27  ;;  %2442 = vst [vmem:[#allocation5 + $0x28] sm:$0xff] %v2190_v51  ;;  %v2616_v32 = vld [vmem:[#allocation2 + $0x80] sm:$0xff]  ;;  %v2618_v51 = vld [vmem:[#allocation2 + $0x90] sm:$0xff]  ;;  %v2619_v24 = vld [vmem:[#allocation2 + $0x98] sm:$0xff] }
 0x20a   :  { %v5189_v62 = vsel %vm322_vm6, %v5806_v11, %v5805_v2  ;;  %v5195_v56 = vsel %vm2020_vm11, nan, %v2029_v20  ;;  %v2194_v18 = vmul.f32 %v5177_v59, %v5168_v50  ;;  %vm332_vm4 = vcmp.eq.f32.partialorder %v5807_v27, inf  ;;  %2443 = vst [vmem:[#allocation5 + $0x30] sm:$0xff] %v2191_v41  ;;  %v2620_v53 = vld [vmem:[#allocation2 + $0xa0] sm:$0xff]  ;;  %v5218_v2 = vld [vmem:[#allocation2 + $0xb0] sm:$0xff] }
 0x20b   :  { %v5809_v47 = vand.u32 2147483647, %v5770_v60  ;;  %v2153_v0 = vxor.u32 2147483648, %v2152_v39  ;;  %v2195_v44 = vmul.f32 %v5195_v56, %v5189_v62  ;;  %2444 = vst [vmem:[#allocation5 + $0x38] sm:$0xff] %v2192_v8  ;;  %v335_v45 = vand.u32 2147483648, %v5807_v27 }
 0x20c   :  { %2445 = vst [vmem:[#allocation5 + $0x40] sm:$0xff] %v2193_v54  ;;  %v333_v23 = vsel %vm332_vm4, %v5807_v27, %v331_v34  ;;  %vm334_vm14 = vcmp.eq.f32.partialorder %v5807_v27, 0.0  ;;  %v2197_v22 = vand.u32 8388608, %v2612_v29  ;;  %v2198_v19 = vand.u32 8388608, %v2613_v55 }
 0x20d   :  { %vm2032_vm9 = vcmp.le.f32.partialorder %v5809_v47, 0.7853982  ;;  %v2154_v4 = vsel %vm2033_vm5, %v2153_v0, %v2152_v39  ;;  %2446 = vst [vmem:[#allocation5 + $0x48] sm:$0xff] %v2194_v18  ;;  %v2199_v5 = vand.u32 8388608, %v2614_v21  ;;  %v2200_v35 = vand.u32 8388608, %v2615_v15 }
 0x20e   :  { %v2158_v14 = vsel %vm2032_vm9, 0, %v2156_v6  ;;  %v5210_v46 = vsel %vm2032_vm9, %v5770_v60, %v2154_v4  ;;  %2447 = vst [vmem:[#allocation5 + $0x50] sm:$0xff] %v2195_v44  ;;  %v5216_v7 = vsel %vm334_vm14, %v335_v45, %v333_v23  ;;  %v2201_v40 = vand.u32 8388608, %v2616_v32  ;;  %v2621_v6 = vld [vmem:[#allocation2 + $0xa8] sm:$0xff] }
 0x20f   :  { %v2159_v1 = vmul.f32 %v5210_v46, %v5210_v46  ;;  %v5214_v48 = vand.u32 3, %v2158_v14  ;;  %v2202_v25 = vand.u32 8388608, %v2617_v57  ;;  %v2203_v20 = vand.u32 8388608, %v2618_v51 }
 0x210   :  { %v2204_v41 = vand.u32 8388608, %v2619_v24  ;;  %v2205_v30 = vand.u32 8388608, %v2620_v53  ;;  %v2206_v54 = vand.u32 8388608, %v2621_v6  ;;  %v2207_v11 = vand.u32 8388608, %v5218_v2 }
 0x211   :  { %v2160_v26 = vmul.f32 -0.001358992, %v2159_v1  ;;  %v2167_v16 = vmul.f32 -0.00019511016, %v2159_v1  ;;  %vm2180_vm10 = vcmp.eq.s32.totalorder %v5214_v48, 2  ;;  %vm5222_vm8 = vcmp.ne.s32.totalorder %v2197_v22, 0 }
 0x212   :  { %vm5226_vm7 = vcmp.ne.s32.totalorder %v2198_v19, 0  ;;  %vm5230_vm13 = vcmp.ne.s32.totalorder %v2199_v5, 0  ;;  %vm5234_vm6 = vcmp.ne.s32.totalorder %v2200_v35, 0  ;;  %vm5238_vm1 = vcmp.ne.s32.totalorder %v2201_v40, 0 }
 0x213   :  { %v2161_v8 = vadd.f32 0.041655596, %v2160_v26  ;;  %v2168_v39 = vadd.f32 0.008332121, %v2167_v16  ;;  %vm2177_vm3 = vcmp.eq.s32.totalorder %v5214_v48, 0  ;;  %vm5243_vm2 = vcmp.ne.s32.totalorder %v2202_v25, 0 }
 0x214   :  { %vm5247_vm0 = vcmp.ne.s32.totalorder %v2203_v20, 0  ;;  %v2245_v4 = vmul.f32 %v5792_v13, %v5792_v13  ;;  %v2246_v23 = vmul.f32 %v5794_v28, %v5794_v28  ;;  %vm2176_vm15 = vcmp.lt.s32.totalorder %v5214_v48, 2 }
 0x215   :  { %v2162_v47 = vmul.f32 %v2161_v8, %v2159_v1  ;;  %v2169_v0 = vmul.f32 %v2168_v39, %v2159_v1  ;;  %vm5256_vm12 = vcmp.ne.s32.totalorder %v2204_v41, 0  ;;  %v2247_v19 = vmul.f32 %v5796_v49, %v5796_v49 }
 0x216   :  { %vm2174_vm11 = vweird.f32 %v5770_v60  ;;  %vm5263_vm5 = vcmp.ne.s32.totalorder %v2205_v30, 0  ;;  %vm5267_vm4 = vcmp.ne.s32.totalorder %v2206_v54, 0  ;;  %v2686_v28 = vmov -1.0  }
 0x217   :  { %v2163_v29 = vadd.f32 -0.4999988, %v2162_v47  ;;  %v2170_v22 = vadd.f32 -0.16666654, %v2169_v0  ;;  %v2221_v5 = vsel %vm5222_vm8, 1.0, %v2686_v28  ;;  %v2222_v15 = vsel %vm5226_vm7, 1.0, %v2686_v28 }
 0x218   :  { %v2248_v26 = vmul.f32 %v4877_v42, %v4877_v42  ;;  %v2257_v16 = vsub.f32 1.0, %v2245_v4  ;;  %v2223_v32 = vsel %vm5230_vm13, 1.0, %v2686_v28  ;;  %v2224_v40 = vsel %vm5234_vm6, 1.0, %v2686_v28 }
 0x219   :  { %v2164_v49 = vmul.f32 %v2163_v29, %v2159_v1  ;;  %v2171_v35 = vmul.f32 %v2170_v22, %v2159_v1  ;;  %v2249_v57 = vmul.f32 %v4882_v61, %v4882_v61  ;;  %v2258_v25 = vsub.f32 1.0, %v2246_v23 }
 0x21a   :  { %v2250_v1 = vmul.f32 %v5092_v10, %v5092_v10  ;;  %v2259_v24 = vsub.f32 1.0, %v2247_v19  ;;  %v2225_v42 = vsel %vm5238_vm1, 1.0, %v2686_v28  ;;  %v2226_v41 = vsel %vm5243_vm2, 1.0, %v2686_v28 }
 0x21b   :  { %v2165_v51 = vadd.f32 1.0, %v2164_v49  ;;  %v2172_v20 = vadd.f32 1.0, %v2171_v35  ;;  %v2227_v53 = vsel %vm5247_vm0, 1.0, %v2686_v28  ;;  %v2251_v61 = vmul.f32 %v5096_v3, %v5096_v3 }
 0x21c   :  { %v2260_v10 = vsub.f32 1.0, %v2248_v26  ;;  %v5301_v39 = vmax.f32 %v2257_v16, 0.0  ;;  %v2228_v6 = vsel %vm5256_vm12, 1.0, %v2686_v28  ;;  %v2252_v54 = vmul.f32 %v5153_v12, %v5153_v12 }
 0x21d   :  { %v2173_v30 = vmul.f32 %v2172_v20, %v5210_v46  ;;  %v2181_v8 = vxor.u32 2147483648, %v2165_v51  ;;  %v2261_v27 = vsub.f32 1.0, %v2249_v57  ;;  %v5308_v17 = vmax.f32 %v2258_v25, 0.0 }
 0x21e   :  { %v2262_v18 = vsub.f32 1.0, %v2250_v1  ;;  %v5312_v46 = vmax.f32 %v2259_v24, 0.0  ;;  %v5317_v47 = vsel %vm5263_vm5, 1.0, %v2686_v28  ;;  %v2253_v0 = vmul.f32 %v5172_v38, %v5172_v38 }
 0x21f   :  { %v2178_v34 = vxor.u32 2147483648, %v2173_v30  ;;  %v2182_v3 = vsel %vm2180_vm10, %v2181_v8, %v2173_v30  ;;  %v2263_v44 = vsub.f32 1.0, %v2251_v61  ;;  %2588 = vrsqrt.f32 %v5301_v39 }
 0x220   :  { %v2254_v14 = vmul.f32 %v5177_v59, %v5177_v59  ;;  %v2255_v45 = vmul.f32 %v5195_v56, %v5195_v56  ;;  %v5328_v4 = vmax.f32 %v2260_v10, 0.0  ;;  %v2264_v29 = vsub.f32 1.0, %v2252_v54 }
 0x221   :  { %v2179_v12 = vsel %vm2177_vm3, %v2165_v51, %v2178_v34  ;;  %v5332_v22 = vmax.f32 %v2261_v27, 0.0  ;;  %2590 = vrsqrt.f32 %v5308_v17  ;;  %v5340_v59 = vsel %vm5267_vm4, 1.0, %v2686_v28 }
 0x222   :  { %v2183_v23 = vsel %vm2176_vm15, %v2179_v12, %v2182_v3  ;;  %v5342_v55 = vmax.f32 %v2262_v18, 0.0  ;;  %2592 = vrsqrt.f32 %v5312_v46  ;;  %v5347_v48 = vmul.f32 %v2221_v5, %v5791_v63 }
 0x223   :  { %v2184_v38 = vsel %vm2174_vm11, nan, %v2183_v23  ;;  %v5350_v19 = vmul.f32 %v2222_v15, %v5793_v58  ;;  %v5352_v21 = vmax.f32 %v2263_v44, 0.0  ;;  %v5355_v60 = vmul.f32 %v2223_v32, %v5795_v43 }
 0x224   :  { %v2196_v56 = vmul.f32 %v2184_v38, %v5216_v7  ;;  %v2265_v13 = vsub.f32 1.0, %v2253_v0  ;;  %v2266_v49 = vsub.f32 1.0, %v2254_v14  ;;  %2594 = vrsqrt.f32 %v5328_v4 }
 0x225   :  { %v2589_v35 = vpop.eup %2588  ;;  %v5359_v26 = vmul.f32 %v2224_v40, %v5797_v36  ;;  %v2267_v16 = vsub.f32 1.0, %v2255_v45  ;;  %v5361_v57 = vmax.f32 %v2264_v29, 0.0  ;;  %2596 = vrsqrt.f32 %v5332_v22 }
 0x226   :  { %2448 = vst [vmem:[#allocation5 + $0x58] sm:$0xff] %v2196_v56  ;;  %v5365_v63 = vmul.f32 %v2225_v42, %v5798_v37  ;;  %v5368_v58 = vmul.f32 %v2226_v41, %v5799_v9  ;;  %v2282_v43 = vmul.f32 %v2589_v35, %v5301_v39  ;;  %2598 = vrsqrt.f32 %v5342_v55 }
 0x227   :  { %v2591_v5 = vpop.eup %2590  ;;  %v5373_v36 = vmul.f32 %v2227_v53, %v5800_v33  ;;  %v5376_v15 = vmul.f32 %v2228_v6, %v5803_v31  ;;  %v2256_v32 = vmul.f32 %v2184_v38, %v2184_v38  ;;  %2600 = vrsqrt.f32 %v5352_v21 }
 0x228   :  { %v2593_v40 = vpop.eup %2592  ;;  %v5379_v37 = vmax.f32 %v2265_v13, 0.0  ;;  %v5381_v25 = vmax.f32 %v2266_v49, 0.0  ;;  %v2283_v9 = vmul.f32 %v2589_v35, %v2282_v43  ;;  %v2294_v51 = vmul.f32 %v2591_v5, %v5308_v17 }
 0x229   :  { %v5384_v20 = vmax.f32 %v2267_v16, 0.0  ;;  %v2291_v1 = vand.u32 2147483648, %v5301_v39  ;;  %v2306_v33 = vmul.f32 %v2593_v40, %v5312_v46  ;;  %2602 = vrsqrt.f32 %v5361_v57 }
 0x22a   :  { %v2595_v31 = vpop.eup %2594  ;;  %v2284_v24 = vmul.f32 0.5, %v2283_v9  ;;  %vm2288_vm9 = vcmp.eq.f32.partialorder %v5301_v39, inf  ;;  %v2295_v42 = vmul.f32 %v2591_v5, %v2294_v51  ;;  %v2303_v41 = vand.u32 2147483648, %v5308_v17 }
 0x22b   :  { %v2315_v53 = vand.u32 2147483648, %v5312_v46  ;;  %v2597_v61 = vpop.eup %2596  ;;  %v2268_v30 = vsub.f32 1.0, %v2256_v32  ;;  %v2307_v8 = vmul.f32 %v2593_v40, %v2306_v33  ;;  %v2318_v10 = vmul.f32 %v2595_v31, %v5328_v4 }
 0x22c   :  { %v2327_v6 = vand.u32 2147483648, %v5328_v4  ;;  %v2599_v54 = vpop.eup %2598  ;;  %v2285_v27 = vsub.f32 1.5, %v2284_v24  ;;  %v2296_v34 = vmul.f32 0.5, %v2295_v42  ;;  %v2330_v3 = vmul.f32 %v2597_v61, %v5332_v22 }
 0x22d   :  { %v2339_v18 = vand.u32 2147483648, %v5332_v22  ;;  %v2601_v0 = vpop.eup %2600  ;;  %v2308_v44 = vmul.f32 0.5, %v2307_v8  ;;  %v2319_v12 = vmul.f32 %v2595_v31, %v2318_v10  ;;  %v2342_v14 = vmul.f32 %v2599_v54, %v5342_v55 }
 0x22e   :  { %2604 = vrsqrt.f32 %v5379_v37  ;;  %v2286_v45 = vmul.f32 %v2589_v35, %v2285_v27  ;;  %v2297_v23 = vsub.f32 1.5, %v2296_v34  ;;  %vm2300_vm14 = vcmp.eq.f32.partialorder %v5308_v17, inf }
 0x22f   :  { %v2331_v29 = vmul.f32 %v2597_v61, %v2330_v3  ;;  %v2354_v38 = vmul.f32 %v2601_v0, %v5352_v21  ;;  %v5400_v56 = vpop.eup %2602  ;;  %vm2290_vm10 = vcmp.eq.f32.partialorder %v5301_v39, 0.0  ;;  %v2309_v13 = vsub.f32 1.5, %v2308_v44 }
 0x230   :  { %vm2312_vm8 = vcmp.eq.f32.partialorder %v5312_v46, inf  ;;  %v2320_v49 = vmul.f32 0.5, %v2319_v12  ;;  %vm2324_vm7 = vcmp.eq.f32.partialorder %v5328_v4, inf  ;;  %v2343_v16 = vmul.f32 %v2599_v54, %v2342_v14 }
 0x231   :  { %2606 = vrsqrt.f32 %v5381_v25  ;;  %v2287_v35 = vmul.f32 %v2286_v45, %v5301_v39  ;;  %v2332_v43 = vmul.f32 0.5, %v2331_v29  ;;  %vm2336_vm13 = vcmp.eq.f32.partialorder %v5332_v22, inf }
 0x232   :  { %vm2348_vm6 = vcmp.eq.f32.partialorder %v5342_v55, inf  ;;  %v2355_v32 = vmul.f32 %v2601_v0, %v2354_v38  ;;  %v2298_v9 = vmul.f32 %v2591_v5, %v2297_v23  ;;  %vm2302_vm1 = vcmp.eq.f32.partialorder %v5308_v17, 0.0 }
 0x233   :  { %v2321_v51 = vsub.f32 1.5, %v2320_v49  ;;  %v2344_v33 = vmul.f32 0.5, %v2343_v16  ;;  %v2366_v24 = vmul.f32 %v5400_v56, %v5361_v57  ;;  %v5412_v42 = vmax.f32 %v2268_v30, 0.0 }
 0x234   :  { %v2310_v8 = vmul.f32 %v2593_v40, %v2309_v13  ;;  %vm2314_vm3 = vcmp.eq.f32.partialorder %v5312_v46, 0.0  ;;  %vm2326_vm2 = vcmp.eq.f32.partialorder %v5328_v4, 0.0  ;;  %v2333_v10 = vsub.f32 1.5, %v2332_v43  ;;  %v2605_v34 = vpop.eup %2604 }
 0x235   :  { %v2356_v27 = vmul.f32 0.5, %v2355_v32  ;;  %v2322_v3 = vmul.f32 %v2595_v31, %v2321_v51  ;;  %vm2338_vm0 = vcmp.eq.f32.partialorder %v5332_v22, 0.0  ;;  %v2345_v5 = vsub.f32 1.5, %v2344_v33 }
 0x236   :  { %vm2350_vm15 = vcmp.eq.f32.partialorder %v5342_v55, 0.0  ;;  %v2351_v44 = vand.u32 2147483648, %v5342_v55  ;;  %vm2360_vm12 = vcmp.eq.f32.partialorder %v5352_v21, inf  ;;  %v2334_v30 = vmul.f32 %v2597_v61, %v2333_v10 }
 0x237   :  { %v2357_v12 = vsub.f32 1.5, %v2356_v27  ;;  %vm2362_vm11 = vcmp.eq.f32.partialorder %v5352_v21, 0.0  ;;  %v2363_v40 = vand.u32 2147483648, %v5352_v21  ;;  %v2367_v14 = vmul.f32 %v5400_v56, %v2366_v24  ;;  %v2607_v45 = vpop.eup %2606 }
 0x238   :  { %v2289_v31 = vsel %vm2288_vm9, %v5301_v39, %v2287_v35  ;;  %v2299_v23 = vmul.f32 %v2298_v9, %v5308_v17  ;;  %v2346_v29 = vmul.f32 %v2599_v54, %v2345_v5  ;;  %v2311_v38 = vmul.f32 %v2310_v8, %v5312_v46 }
 0x239   :  { %v2323_v61 = vmul.f32 %v2322_v3, %v5328_v4  ;;  %v2358_v13 = vmul.f32 %v2601_v0, %v2357_v12  ;;  %v2368_v49 = vmul.f32 0.5, %v2367_v14  ;;  %v2335_v16 = vmul.f32 %v2334_v30, %v5332_v22 }
 0x23a   :  { %v2347_v43 = vmul.f32 %v2346_v29, %v5342_v55  ;;  %vm2374_vm4 = vcmp.eq.f32.partialorder %v5361_v57, 0.0  ;;  %v2378_v32 = vmul.f32 %v2605_v34, %v5379_v37  ;;  %v2390_v35 = vmul.f32 %v2607_v45, %v5381_v25 }
 0x23b   :  { %v2359_v54 = vmul.f32 %v2358_v13, %v5352_v21  ;;  %v2369_v9 = vsub.f32 1.5, %v2368_v49  ;;  %v2375_v51 = vand.u32 2147483648, %v5361_v57  ;;  %vm2384_vm9 = vcmp.eq.f32.partialorder %v5379_v37, inf }
 0x23c   :  { %v2301_v0 = vsel %vm2300_vm14, %v5308_v17, %v2299_v23  ;;  %v2379_v33 = vmul.f32 %v2605_v34, %v2378_v32  ;;  %vm2386_vm5 = vcmp.eq.f32.partialorder %v5379_v37, 0.0  ;;  %v2387_v24 = vand.u32 2147483648, %v5379_v37 }
 0x23d   :  { %v2391_v8 = vmul.f32 %v2607_v45, %v2390_v35  ;;  %v2292_v10 = vsel %vm2290_vm10, %v2291_v1, %v2289_v31  ;;  %v2313_v27 = vsel %vm2312_vm8, %v5312_v46, %v2311_v38  ;;  %v2325_v3 = vsel %vm2324_vm7, %v5328_v4, %v2323_v61 }
 0x23e   :  { %v2370_v5 = vmul.f32 %v5400_v56, %v2369_v9  ;;  %v2337_v30 = vsel %vm2336_vm13, %v5332_v22, %v2335_v16  ;;  %v2349_v12 = vsel %vm2348_vm6, %v5342_v55, %v2347_v43  ;;  %v2380_v39 = vmul.f32 0.5, %v2379_v33 }
 0x23f   :  { %v2392_v1 = vmul.f32 0.5, %v2391_v8  ;;  %v2304_v14 = vsel %vm2302_vm1, %v2303_v41, %v2301_v0  ;;  %v2361_v31 = vsel %vm2360_vm12, %v5352_v21, %v2359_v54  ;;  %2608 = vrsqrt.f32 %v5384_v20 }
 0x240   :  { %v2371_v56 = vmul.f32 %v2370_v5, %v5361_v57  ;;  %v2316_v23 = vsel %vm2314_vm3, %v2315_v53, %v2313_v27  ;;  %v2328_v29 = vsel %vm2326_vm2, %v2327_v6, %v2325_v3  ;;  %v2381_v17 = vsub.f32 1.5, %v2380_v39 }
 0x241   :  { %v2393_v41 = vsub.f32 1.5, %v2392_v1  ;;  %v2340_v38 = vsel %vm2338_vm0, %v2339_v18, %v2337_v30  ;;  %v2352_v61 = vsel %vm2350_vm15, %v2351_v44, %v2349_v12  ;;  %vm2396_vm14 = vcmp.eq.f32.partialorder %v5381_v25, inf }
 0x242   :  { %2610 = vrsqrt.f32 %v5412_v42  ;;  %v2364_v46 = vsel %vm2362_vm11, %v2363_v40, %v2361_v31  ;;  %vm5830_vm10 = vcmp.eq.f32.partialorder %v5361_v57, inf  ;;  %v2382_v53 = vmul.f32 %v2605_v34, %v2381_v17 }
 0x243   :  { %v2373_v4 = vsel %vm5830_vm10, %v5361_v57, %v2371_v56  ;;  %v2394_v6 = vmul.f32 %v2607_v45, %v2393_v41  ;;  %v2399_v13 = vand.u32 2147483648, %v5381_v25  ;;  %v2425_v22 = vmul.f32 %v2292_v10, %v5347_v48 }
 0x244   :  { %v2426_v55 = vmul.f32 %v2304_v14, %v5350_v19  ;;  %v2427_v18 = vmul.f32 %v2316_v23, %v5355_v60  ;;  %v2383_v44 = vmul.f32 %v2382_v53, %v5379_v37  ;;  %vm2398_vm8 = vcmp.eq.f32.partialorder %v5381_v25, 0.0 }
 0x245   :  { %v2395_v49 = vmul.f32 %v2394_v6, %v5381_v25  ;;  %v2428_v21 = vmul.f32 %v2328_v29, %v5359_v26  ;;  %v2609_v40 = vpop.eup %2608  ;;  %v2241_v34 = vmul.f32 %v5317_v47, %v5804_v52  ;;  %v2242_v45 = vmul.f32 %v5340_v59, %v5168_v50  ;;  %2449 = vst [vmem:[#allocation5 + $0x60] sm:$0xff] %v2425_v22 }
 0x246   :  { %v2376_v48 = vsel %vm2374_vm4, %v2375_v51, %v2373_v4  ;;  %v2429_v19 = vmul.f32 %v2340_v38, %v5365_v63  ;;  %v2385_v60 = vsel %vm2384_vm9, %v5379_v37, %v2383_v44  ;;  %v2402_v16 = vmul.f32 %v2609_v40, %v5384_v20  ;;  %2450 = vst [vmem:[#allocation5 + $0x68] sm:$0xff] %v2426_v55  ;;  %v2623_v63 = vld [vmem:[#allocation2 + $0xb8] sm:$0xff] }
 0x247   :  { %v2397_v26 = vsel %vm2396_vm14, %v5381_v25, %v2395_v49  ;;  %v2430_v52 = vmul.f32 %v2352_v61, %v5368_v58  ;;  %v2388_v47 = vsel %vm2386_vm5, %v2387_v24, %v2385_v60  ;;  %v2431_v57 = vmul.f32 %v2364_v46, %v5373_v36  ;;  %2451 = vst [vmem:[#allocation5 + $0x70] sm:$0xff] %v2427_v18 }
 0x248   :  { %v2611_v50 = vpop.eup %2610  ;;  %v2400_v59 = vsel %vm2398_vm8, %v2399_v13, %v2397_v26  ;;  %v2208_v43 = vand.u32 8388608, %v2623_v63  ;;  %v2403_v32 = vmul.f32 %v2609_v40, %v2402_v16  ;;  %v2432_v25 = vmul.f32 %v2376_v48, %v5376_v15  ;;  %2452 = vst [vmem:[#allocation5 + $0x78] sm:$0xff] %v2428_v21 }
 0x249   :  { %v2414_v35 = vmul.f32 %v2611_v50, %v5412_v42  ;;  %v2433_v54 = vmul.f32 %v2388_v47, %v2241_v34  ;;  %2453 = vst [vmem:[#allocation5 + $0x80] sm:$0xff] %v2429_v19  ;;  %vm2219_vm7 = vcmp.ne.s32.totalorder %v2207_v11, 0  ;;  %v2434_v9 = vmul.f32 %v2400_v59, %v2242_v45 }
 0x24a   :  { %v2404_v58 = vmul.f32 0.5, %v2403_v32  ;;  %2454 = vst [vmem:[#allocation5 + $0x88] sm:$0xff] %v2430_v52  ;;  %vm2220_vm13 = vcmp.ne.s32.totalorder %v2208_v43, 0  ;;  %v2231_v0 = vsel %vm2219_vm7, 1.0, %v2686_v28  ;;  %vm2408_vm6 = vcmp.eq.f32.partialorder %v5384_v20, inf }
 0x24b   :  { %v2415_v37 = vmul.f32 %v2611_v50, %v2414_v35  ;;  %2455 = vst [vmem:[#allocation5 + $0x90] sm:$0xff] %v2431_v57  ;;  %v2232_v24 = vsel %vm2220_vm13, 1.0, %v2686_v28  ;;  %v2411_v2 = vand.u32 2147483648, %v5384_v20  ;;  %v2243_v11 = vmul.f32 %v2231_v0, %v5189_v62 }
 0x24c   :  { %v2405_v36 = vsub.f32 1.5, %v2404_v58  ;;  %2456 = vst [vmem:[#allocation5 + $0x98] sm:$0xff] %v2432_v25  ;;  %vm2410_vm1 = vcmp.eq.f32.partialorder %v5384_v20, 0.0  ;;  %vm2420_vm3 = vcmp.eq.f32.partialorder %v5412_v42, inf  ;;  %v2423_v27 = vand.u32 2147483648, %v5412_v42 }
 0x24d   :  { %v2416_v51 = vmul.f32 0.5, %v2415_v37  ;;  %2457 = vst [vmem:[#allocation5 + $0xa0] sm:$0xff] %v2433_v54  ;;  %v2244_v3 = vmul.f32 %v2232_v24, %v5216_v7  ;;  %vm2422_vm2 = vcmp.eq.f32.partialorder %v5412_v42, 0.0 }
 0x24e   :  { %v2406_v33 = vmul.f32 %v2609_v40, %v2405_v36  ;;  %2458 = vst [vmem:[#allocation5 + $0xa8] sm:$0xff] %v2434_v9 }
 0x24f   :  { %v2417_v15 = vsub.f32 1.5, %v2416_v51 }
 0x250   :  { %v2407_v8 = vmul.f32 %v2406_v33, %v5384_v20 }
 0x251   :  { %v2418_v10 = vmul.f32 %v2611_v50, %v2417_v15 }
 0x252   :  { %v2409_v5 = vsel %vm2408_vm6, %v5384_v20, %v2407_v8 }
 0x253   :  { %v2419_v28 = vmul.f32 %v2418_v10, %v5412_v42  ;;  %v2412_v30 = vsel %vm2410_vm1, %v2411_v2, %v2409_v5 }
 0x254   :  { %v2435_v12 = vmul.f32 %v2412_v30, %v2243_v11 }
 0x255   :  { %v2421_v62 = vsel %vm2420_vm3, %v5412_v42, %v2419_v28 }
 0x256   :  { %v2424_v39 = vsel %vm2422_vm2, %v2423_v27, %v2421_v62  ;;  %2459 = vst [vmem:[#allocation5 + $0xb0] sm:$0xff] %v2435_v12 }
 0x257   :  { %v2436_v1 = vmul.f32 %v2424_v39, %v2244_v3 }
 0x259   :  { %2460 = vst [vmem:[#allocation5 + $0xb8] sm:$0xff] %v2436_v1 }
 0x25a   :  { %2473 = dma.vmem_to_hbm [thread:$0]  %s2466_s13, 3072, %s2468_s16, [#allocation4], %s2677_s11, %s2677_s11, %s2678_s12  }
 0x25b   :  { %2674 = dma.done.wait [#allocation4], 3072  }
 0x25c   :  { %2675 = vsyncadd [#allocation4], 4294964224 }
 0x25d   :  { %2478 = vsyncpa [#allocation3], 1 }
 0x25e   :  { %2479 = vsyncpa [#allocation4], 1 }

</bundles_post_ra>
